<compile_context>
chip_gen: v5e
topology: v5e:2x2
jax: 0.10.0
libtpu: 0.0.40
codegen_flags: <defaults>
</compile_context>

<pallas_src>
import jax
import jax.numpy as jnp
from jax import lax
from jax.experimental import pallas as pl
from jax.experimental.pallas import tpu as pltpu


_PADC = 8                               # sublane-aligned column pad in scratches
_NN_DIMS = (((1,), (0,)), ((), ()))     # plain (M,K) x (K,N) contraction


def _double_conv_kernel(xm_ref, xt_ref, xb_ref, w1_ref, b1_ref, w2_ref, b2_ref,
                        o_ref, xpad_ref, mid_ref):
    # xm_ref  : (1, TH, W, Cin)        current row tile of the input (NHWC)
    # xt_ref  : (1, 2,  W, Cin)        2 rows above the tile (clamped at t == 0)
    # xb_ref  : (1, 2,  W, Cin)        2 rows below the tile (clamped at t == T-1)
    # w1_ref  : (9, Cin, Cmid)         conv1 weights, leading index = dy*3 + dx
    # b1_ref  : (1, Cmid)              f32
    # w2_ref  : (9, Cmid, Cout)        conv2 weights
    # b2_ref  : (1, Cout)              f32
    # o_ref   : (1, Cout, TH*W)        lane-dense output tile
    # xpad_ref: (TH+4, W+2*PADC, Cin)  scratch: input rows + halo, data at +PADC
    # mid_ref : (TH+2, W+2*PADC, Cmid) scratch: conv1 output + conv2 halo
    t = pl.program_id(1)
    num_t = pl.num_programs(1)

    _, TH, W, Cin = xm_ref.shape
    Cmid = w1_ref.shape[2]
    Cout = w2_ref.shape[2]
    f32 = jnp.float32
    L = _PADC - 1                       # zero column just left of the data
    R = _PADC + W                       # zero column just right of the data

    # ---- stage input tile + 2-row halos (aligned, full-width stores) -------
    xpad_ref[2:TH + 2, _PADC:_PADC + W, :] = xm_ref[0].astype(xpad_ref.dtype)

    @pl.when(t > 0)
    def _():
        xpad_ref[0:2, _PADC:_PADC + W, :] = xt_ref[0].astype(xpad_ref.dtype)

    @pl.when(t == 0)                    # image top: conv1 sees zero rows
    def _():
        xpad_ref[0:2, _PADC:_PADC + W, :] = jnp.zeros((2, W, Cin), xpad_ref.dtype)

    @pl.when(t < num_t - 1)
    def _():
        xpad_ref[TH + 2:TH + 4, _PADC:_PADC + W, :] = xb_ref[0].astype(xpad_ref.dtype)

    @pl.when(t == num_t - 1)            # image bottom
    def _():
        xpad_ref[TH + 2:TH + 4, _PADC:_PADC + W, :] = jnp.zeros((2, W, Cin), xpad_ref.dtype)

    # only the two border columns the conv actually reads need to be zero
    xpad_ref[:, L:L + 1, :] = jnp.zeros((TH + 4, 1, Cin), xpad_ref.dtype)
    xpad_ref[:, R:R + 1, :] = jnp.zeros((TH + 4, 1, Cin), xpad_ref.dtype)

    # ---- conv1 + ReLU: 9 accumulating MXU matmuls (no im2col temporary) ----
    S1 = (TH + 2) * W
    acc1 = jnp.zeros((S1, Cmid), f32)
    for dy in range(3):
        for dx in range(3):
            xs = xpad_ref[dy:dy + TH + 2, L + dx:L + dx + W, :]   # (TH+2, W, Cin)
            acc1 = acc1 + lax.dot_general(
                xs.reshape(S1, Cin), w1_ref[dy * 3 + dx], _NN_DIMS,
                preferred_element_type=f32)
    mid = jnp.maximum(acc1 + b1_ref[...], 0.0)                    # (S1, Cmid) f32

    # ---- stage conv1 output (aligned) + conv2's zero halo ------------------
    mid_ref[0:TH + 2, _PADC:_PADC + W, :] = (
        mid.reshape(TH + 2, W, Cmid).astype(mid_ref.dtype))
    mid_ref[:, L:L + 1, :] = jnp.zeros((TH + 2, 1, Cmid), mid_ref.dtype)
    mid_ref[:, R:R + 1, :] = jnp.zeros((TH + 2, 1, Cmid), mid_ref.dtype)

    @pl.when(t == 0)                    # intermediate row j = -1 is conv2 padding
    def _():
        mid_ref[0:1, :, :] = jnp.zeros((1, W + 2 * _PADC, Cmid), mid_ref.dtype)

    @pl.when(t == num_t - 1)            # intermediate row j = H is conv2 padding
    def _():
        mid_ref[TH + 1:TH + 2, :, :] = jnp.zeros((1, W + 2 * _PADC, Cmid), mid_ref.dtype)

    # ---- conv2 + ReLU: 9 accumulating MXU matmuls --------------------------
    S2 = TH * W
    acc2 = jnp.zeros((S2, Cout), f32)
    for dy in range(3):
        for dx in range(3):
            ms = mid_ref[dy:dy + TH, L + dx:L + dx + W, :]        # (TH, W, Cmid)
            acc2 = acc2 + lax.dot_general(
                ms.reshape(S2, Cmid), w2_ref[dy * 3 + dx], _NN_DIMS,
                preferred_element_type=f32)
    out = jnp.maximum(acc2 + b2_ref[...], 0.0)                    # (S2, Cout)

    # single transpose -> lane-dense (Cout, TH*W) store (wrapper only reshapes)
    o_ref[0] = out.T.astype(o_ref.dtype)


def _round_up(v, m):
    return -(-v // m) * m


def _phys_bytes(shape, itemsize):
    """Approximate *physical* VMEM footprint with (8, 128) tiling of the last
    two dims (this is what makes small-channel NHWC blocks ~40x their logical
    size, per the perf review)."""
    s = list(shape)
    if len(s) >= 1:
        s[-1] = _round_up(s[-1], 128)
    if len(s) >= 2:
        s[-2] = _round_up(s[-2], 8)
    n = 1
    for d in s:
        n *= d
    return n * itemsize


def _tile_vmem_bytes(th, W, Cin, Cmid, Cout, op_bytes):
    wp = W + 2 * _PADC
    scratch = (_phys_bytes((th + 4, wp, Cin), op_bytes)
               + _phys_bytes((th + 2, wp, Cmid), op_bytes))
    blocks = 2 * (_phys_bytes((1, th, W, Cin), op_bytes)           # main tile
                  + 2 * _phys_bytes((1, 2, W, Cin), op_bytes)      # halo slivers
                  + _phys_bytes((1, Cout, th * W), 4))             # output tile
    weights = 2 * (_phys_bytes((9, Cin, Cmid), op_bytes)
                   + _phys_bytes((9, Cmid, Cout), op_bytes)
                   + _phys_bytes((1, Cmid), 4) + _phys_bytes((1, Cout), 4))
    accs = (_phys_bytes(((th + 2) * W, Cmid), 4)                   # conv1 accumulator
            + 2 * _phys_bytes((th * W, Cout), 4))                  # conv2 acc + transpose
    return scratch + blocks + weights + accs


def _vmem_capacity_bytes():
    try:
        return int(pltpu.get_tpu_info().vmem_capacity_bytes)
    except Exception:
        return 64 << 20            # conservative (v7x per-TensorCore VMEM)


def _pick_tile_h(H, W, Cin, Cmid, Cout, op_bytes, budget_bytes):
    """Largest even row tile dividing H whose output block stays lane-dense
    ((c*W) % 128 == 0, or covers the whole image) and whose *physical* VMEM
    footprint fits the per-generation budget.  Falls back explicitly to the
    smallest valid candidate instead of silently waiving the constraints."""
    cands = [c for c in range(2, H + 1, 2)
             if H % c == 0 and ((c * W) % 128 == 0 or c == H)]
    if not cands:
        cands = [H]
    fitting = [c for c in cands
               if _tile_vmem_bytes(c, W, Cin, Cmid, Cout, op_bytes) <= budget_bytes]
    return max(fitting) if fitting else min(cands)


def double_conv_forward(x_nchw, params, *, tile_h=None, operand_dtype=None):
    """Fused Conv3x3+ReLU+Conv3x3+ReLU.  x_nchw: (N, Cin, H, W) as in PyTorch.

    operand_dtype: dtype fed to the MXU (accumulation is always f32).  Pass
    jnp.bfloat16 on v6e/v7x for ~2x matmul rate and half the operand VMEM.
    """
    N, Cin, H, W = x_nchw.shape
    w1_t, b1, w2_t, b2 = params["w1"], params["b1"], params["w2"], params["b2"]
    Cmid = w1_t.shape[0]
    Cout = w2_t.shape[0]
    assert w1_t.shape == (Cmid, Cin, 3, 3) and w2_t.shape == (Cout, Cmid, 3, 3)
    assert H % 2 == 0, "kernel assumes an even image height"
    # TODO(synk): support odd H (needs a different halo block size).

    op_dt = jnp.dtype(operand_dtype) if operand_dtype is not None else x_nchw.dtype
    op_bytes = op_dt.itemsize

    # torch (Cout, Cin, 3, 3) -> (dy, dx, Cin, Cout) -> (9, Cin, Cout); leading
    # index = dy*3 + dx, matching the in-kernel shifted-window order.
    w1m = jnp.transpose(w1_t, (2, 3, 1, 0)).reshape(9, Cin, Cmid).astype(op_dt)
    w2m = jnp.transpose(w2_t, (2, 3, 1, 0)).reshape(9, Cmid, Cout).astype(op_dt)
    b1m = b1.reshape(1, Cmid).astype(jnp.float32)
    b2m = b2.reshape(1, Cout).astype(jnp.float32)

    # NCHW -> NHWC once at the module boundary (channels innermost for the
    # im2col-free shifted-window matmuls).  Pad Cin to a multiple of 8: the
    # zero channels contribute nothing and keep the tiny-K matmul aligned.
    # TODO(synk): in a full UNet keep a single layout end-to-end.
    x_op = jnp.transpose(x_nchw, (0, 2, 3, 1)).astype(op_dt)
    cin_p = _round_up(Cin, 8)
    if cin_p != Cin:
        x_op = jnp.pad(x_op, ((0, 0), (0, 0), (0, 0), (0, cin_p - Cin)))
        w1m = jnp.pad(w1m, ((0, 0), (0, cin_p - Cin), (0, 0)))

    cap = _vmem_capacity_bytes()
    vmem_limit = int(min(cap, 128 << 20) * 3 // 4)   # ~48 MiB on v7x, ~96 MiB on v5e/v6e
    if tile_h is None:
        tile_h = _pick_tile_h(H, W, cin_p, Cmid, Cout, op_bytes,
                              budget_bytes=int(vmem_limit * 0.6))
    assert H % tile_h == 0 and tile_h % 2 == 0
    assert (tile_h * W) % 128 == 0 or tile_h == H, (
        "output tile must be lane-dense (tile_h*W % 128 == 0) or cover the image")
    num_t = H // tile_h
    hh = tile_h // 2

    out_flat = pl.pallas_call(
        _double_conv_kernel,
        out_shape=jax.ShapeDtypeStruct((N, Cout, H * W), x_nchw.dtype),
        grid=(N, num_t),
        in_specs=[
            # main row tile
            pl.BlockSpec((1, tile_h, W, cin_p), lambda n, t: (n, t, 0, 0)),
            # 2-row halo above (block units of 2 rows, clamped at the top)
            pl.BlockSpec((1, 2, W, cin_p),
                         lambda n, t: (n, jnp.maximum(t * hh - 1, 0), 0, 0)),
            # 2-row halo below (clamped at the bottom)
            pl.BlockSpec((1, 2, W, cin_p),
                         lambda n, t: (n, jnp.minimum((t + 1) * hh, H // 2 - 1), 0, 0)),
            # weights / biases: constant block index -> fetched once, resident
            pl.BlockSpec((9, cin_p, Cmid), lambda n, t: (0, 0, 0)),
            pl.BlockSpec((1, Cmid), lambda n, t: (0, 0)),
            pl.BlockSpec((9, Cmid, Cout), lambda n, t: (0, 0, 0)),
            pl.BlockSpec((1, Cout), lambda n, t: (0, 0)),
        ],
        out_specs=pl.BlockSpec((1, Cout, tile_h * W), lambda n, t: (n, 0, t)),
        scratch_shapes=[
            pltpu.VMEM((tile_h + 4, W + 2 * _PADC, cin_p), op_dt),
            pltpu.VMEM((tile_h + 2, W + 2 * _PADC, Cmid), op_dt),
        ],
        compiler_params=pltpu.CompilerParams(
            dimension_semantics=("parallel", "parallel"),
            vmem_limit_bytes=vmem_limit),
    )(x_op, x_op, x_op, w1m, b1m, w2m, b2m)

    return out_flat.reshape(N, Cout, H, W)


@jax.jit
def in_conv_forward(x_nchw, params):
    # matches InConv.forward (DoubleConv with batch_norm=False), NCHW in/out
    return double_conv_forward(x_nchw, params)


def init_params(key, in_ch, out_ch):
    # Deterministic synthetic init with PyTorch Conv2d-like scale
    # (uniform +/- 1/sqrt(fan_in)); weights kept in torch (Cout, Cin, 3, 3).
    k1, k2, k3, k4 = jax.random.split(key, 4)
    s1 = 1.0 / jnp.sqrt(in_ch * 9.0)
    s2 = 1.0 / jnp.sqrt(out_ch * 9.0)
    return {
        "w1": jax.random.uniform(k1, (out_ch, in_ch, 3, 3), jnp.float32, -s1, s1),
        "b1": jax.random.uniform(k2, (out_ch,), jnp.float32, -s1, s1),
        "w2": jax.random.uniform(k3, (out_ch, out_ch, 3, 3), jnp.float32, -s2, s2),
        "b2": jax.random.uniform(k4, (out_ch,), jnp.float32, -s2, s2),
    }


def _reference(x_nchw, params):
    # pure-JAX reference (NCHW / OIHW) for correctness check
    y = lax.conv_general_dilated(x_nchw, params["w1"], (1, 1), "SAME")
    y = jax.nn.relu(y + params["b1"][None, :, None, None])
    y = lax.conv_general_dilated(y, params["w2"], (1, 1), "SAME")
    y = jax.nn.relu(y + params["b2"][None, :, None, None])
    return y


if __name__ == "__main__":
    key = jax.random.PRNGKey(0)
    kx, kp, kx2, kp2 = jax.random.split(key, 4)

    # Test 1: module-sized shapes (single row tile path).
    N, in_ch, out_ch, H, W = 2, 4, 8, 16, 16
    x = jax.random.normal(kx, (N, in_ch, H, W), jnp.float32)      # NCHW like PyTorch
    params = init_params(kp, in_ch, out_ch)
    out = jax.block_until_ready(in_conv_forward(x, params))
    ref = _reference(x, params)
    assert out.shape == (N, out_ch, H, W), out.shape
    assert jnp.allclose(out, ref, atol=1e-3, rtol=1e-3), \
        float(jnp.max(jnp.abs(out - ref)))

    # Test 2: multi-tile path (num_t = 3) exercising the row-halo / clamp /
    # boundary-zeroing logic (previously untested per the review).
    N2, c2_in, c2_out, H2, W2 = 1, 3, 8, 48, 32
    x2 = jax.random.normal(kx2, (N2, c2_in, H2, W2), jnp.float32)
    params2 = init_params(kp2, c2_in, c2_out)
    out2 = jax.block_until_ready(
        jax.jit(lambda a, p: double_conv_forward(a, p, tile_h=16))(x2, params2))
    ref2 = _reference(x2, params2)
    assert out2.shape == (N2, c2_out, H2, W2), out2.shape
    assert jnp.allclose(out2, ref2, atol=1e-3, rtol=1e-3), \
        float(jnp.max(jnp.abs(out2 - ref2)))

    print("KERNEL_OK")
</pallas_src>

<mosaic_0001>
module attributes {stable_mosaic.version = 11 : i64} {
  func.func @_double_conv_kernel(%arg0: i32, %arg1: i32, %arg2: memref<1x16x16x8xf32, #tpu.memory_space<vmem>>, %arg3: memref<1x2x16x8xf32, #tpu.memory_space<vmem>>, %arg4: memref<1x2x16x8xf32, #tpu.memory_space<vmem>>, %arg5: memref<9x8x8xf32, #tpu.memory_space<vmem>>, %arg6: memref<1x8xf32, #tpu.memory_space<vmem>>, %arg7: memref<9x8x8xf32, #tpu.memory_space<vmem>>, %arg8: memref<1x8xf32, #tpu.memory_space<vmem>>, %arg9: memref<1x8x256xf32, #tpu.memory_space<vmem>>, %arg10: memref<20x32x8xf32, #tpu.memory_space<vmem>>, %arg11: memref<18x32x8xf32, #tpu.memory_space<vmem>>) attributes {dimension_semantics = [#tpu.dimension_semantics<parallel>, #tpu.dimension_semantics<parallel>], iteration_bounds = array<i64: 2, 1>, scalar_prefetch = 0 : i64, scratch_operands = 2 : i64, tpu.core_type = #tpu.core_type<tc>, window_params = [{transform_indices = @transform_0, window_bounds = array<i64: 1, 16, 16, 8>}, {transform_indices = @transform_1, window_bounds = array<i64: 1, 2, 16, 8>}, {transform_indices = @transform_2, window_bounds = array<i64: 1, 2, 16, 8>}, {pipeline_mode = #tpu.pipeline_mode<synchronous>, transform_indices = @transform_3, window_bounds = array<i64: 9, 8, 8>}, {pipeline_mode = #tpu.pipeline_mode<synchronous>, transform_indices = @transform_4, window_bounds = array<i64: 1, 8>}, {pipeline_mode = #tpu.pipeline_mode<synchronous>, transform_indices = @transform_5, window_bounds = array<i64: 9, 8, 8>}, {pipeline_mode = #tpu.pipeline_mode<synchronous>, transform_indices = @transform_6, window_bounds = array<i64: 1, 8>}, {transform_indices = @transform_7, window_bounds = array<i64: 1, 8, 256>}]} {
    %c0 = arith.constant 0 : index
    %c0_0 = arith.constant 0 : index
    %c0_1 = arith.constant 0 : index
    %c0_2 = arith.constant 0 : index
    %0 = vector.load %arg2[%c0, %c0_0, %c0_1, %c0_2] : memref<1x16x16x8xf32, #tpu.memory_space<vmem>>, vector<1x16x16x8xf32>
    %1 = vector.shape_cast %0 : vector<1x16x16x8xf32> to vector<16x16x8xf32>
    %c2 = arith.constant 2 : index
    %c8 = arith.constant 8 : index
    %c0_3 = arith.constant 0 : index
    %2 = vector.load %arg10[%c2, %c8, %c0_3] : memref<20x32x8xf32, #tpu.memory_space<vmem>>, vector<16x16x8xf32>
    tpu.vector_store %arg10[%c2, %c8, %c0_3], %1 {strides = array<i32>} : memref<20x32x8xf32, #tpu.memory_space<vmem>>, vector<16x16x8xf32>,
    %c0_i32 = arith.constant 0 : i32
    %3 = arith.cmpi sgt, %arg1, %c0_i32 : i32
    %4 = arith.extui %3 : i1 to i32
    %c0_i32_4 = arith.constant 0 : i32
    %5 = arith.cmpi ne, %4, %c0_i32_4 : i32
    scf.if %5 {
      %c0_162 = arith.constant 0 : index
      %c0_163 = arith.constant 0 : index
      %c0_164 = arith.constant 0 : index
      %c0_165 = arith.constant 0 : index
      %155 = vector.load %arg3[%c0_162, %c0_163, %c0_164, %c0_165] : memref<1x2x16x8xf32, #tpu.memory_space<vmem>>, vector<1x2x16x8xf32>
      %156 = vector.shape_cast %155 : vector<1x2x16x8xf32> to vector<2x16x8xf32>
      %c0_166 = arith.constant 0 : index
      %c8_167 = arith.constant 8 : index
      %c0_168 = arith.constant 0 : index
      %157 = vector.load %arg10[%c0_166, %c8_167, %c0_168] : memref<20x32x8xf32, #tpu.memory_space<vmem>>, vector<2x16x8xf32>
      tpu.vector_store %arg10[%c0_166, %c8_167, %c0_168], %156 {strides = array<i32>} : memref<20x32x8xf32, #tpu.memory_space<vmem>>, vector<2x16x8xf32>,
    } else {
    }
    %c0_i32_5 = arith.constant 0 : i32
    %6 = arith.cmpi eq, %arg1, %c0_i32_5 : i32
    %7 = arith.extui %6 : i1 to i32
    %c0_i32_6 = arith.constant 0 : i32
    %8 = arith.cmpi ne, %7, %c0_i32_6 : i32
    scf.if %8 {
      %cst_162 = arith.constant 0.000000e+00 : f32
      %155 = vector.broadcast %cst_162 : f32 to vector<2x16x8xf32>
      %c0_163 = arith.constant 0 : index
      %c8_164 = arith.constant 8 : index
      %c0_165 = arith.constant 0 : index
      %156 = vector.load %arg10[%c0_163, %c8_164, %c0_165] : memref<20x32x8xf32, #tpu.memory_space<vmem>>, vector<2x16x8xf32>
      tpu.vector_store %arg10[%c0_163, %c8_164, %c0_165], %155 {strides = array<i32>} : memref<20x32x8xf32, #tpu.memory_space<vmem>>, vector<2x16x8xf32>,
    } else {
    }
    %c0_i32_7 = arith.constant 0 : i32
    %9 = arith.cmpi slt, %arg1, %c0_i32_7 : i32
    %10 = arith.extui %9 : i1 to i32
    %c0_i32_8 = arith.constant 0 : i32
    %11 = arith.cmpi ne, %10, %c0_i32_8 : i32
    scf.if %11 {
      %c0_162 = arith.constant 0 : index
      %c0_163 = arith.constant 0 : index
      %c0_164 = arith.constant 0 : index
      %c0_165 = arith.constant 0 : index
      %155 = vector.load %arg4[%c0_162, %c0_163, %c0_164, %c0_165] : memref<1x2x16x8xf32, #tpu.memory_space<vmem>>, vector<1x2x16x8xf32>
      %156 = vector.shape_cast %155 : vector<1x2x16x8xf32> to vector<2x16x8xf32>
      %c18 = arith.constant 18 : index
      %c8_166 = arith.constant 8 : index
      %c0_167 = arith.constant 0 : index
      %157 = vector.load %arg10[%c18, %c8_166, %c0_167] : memref<20x32x8xf32, #tpu.memory_space<vmem>>, vector<2x16x8xf32>
      tpu.vector_store %arg10[%c18, %c8_166, %c0_167], %156 {strides = array<i32>} : memref<20x32x8xf32, #tpu.memory_space<vmem>>, vector<2x16x8xf32>,
    } else {
    }
    %c0_i32_9 = arith.constant 0 : i32
    %12 = arith.cmpi eq, %arg1, %c0_i32_9 : i32
    %13 = arith.extui %12 : i1 to i32
    %c0_i32_10 = arith.constant 0 : i32
    %14 = arith.cmpi ne, %13, %c0_i32_10 : i32
    scf.if %14 {
      %cst_162 = arith.constant 0.000000e+00 : f32
      %155 = vector.broadcast %cst_162 : f32 to vector<2x16x8xf32>
      %c18 = arith.constant 18 : index
      %c8_163 = arith.constant 8 : index
      %c0_164 = arith.constant 0 : index
      %156 = vector.load %arg10[%c18, %c8_163, %c0_164] : memref<20x32x8xf32, #tpu.memory_space<vmem>>, vector<2x16x8xf32>
      tpu.vector_store %arg10[%c18, %c8_163, %c0_164], %155 {strides = array<i32>} : memref<20x32x8xf32, #tpu.memory_space<vmem>>, vector<2x16x8xf32>,
    } else {
    }
    %cst = arith.constant 0.000000e+00 : f32
    %15 = vector.broadcast %cst : f32 to vector<20x1x8xf32>
    %c0_11 = arith.constant 0 : index
    %c7 = arith.constant 7 : index
    %c0_12 = arith.constant 0 : index
    %16 = vector.load %arg10[%c0_11, %c7, %c0_12] : memref<20x32x8xf32, #tpu.memory_space<vmem>>, vector<20x1x8xf32>
    tpu.vector_store %arg10[%c0_11, %c7, %c0_12], %15 {strides = array<i32>} : memref<20x32x8xf32, #tpu.memory_space<vmem>>, vector<20x1x8xf32>,
    %cst_13 = arith.constant 0.000000e+00 : f32
    %17 = vector.broadcast %cst_13 : f32 to vector<20x1x8xf32>
    %c0_14 = arith.constant 0 : index
    %c24 = arith.constant 24 : index
    %c0_15 = arith.constant 0 : index
    %18 = vector.load %arg10[%c0_14, %c24, %c0_15] : memref<20x32x8xf32, #tpu.memory_space<vmem>>, vector<20x1x8xf32>
    tpu.vector_store %arg10[%c0_14, %c24, %c0_15], %17 {strides = array<i32>} : memref<20x32x8xf32, #tpu.memory_space<vmem>>, vector<20x1x8xf32>,
    %cst_16 = arith.constant 0.000000e+00 : f32
    %19 = vector.broadcast %cst_16 : f32 to vector<288x8xf32>
    %c0_17 = arith.constant 0 : index
    %c7_18 = arith.constant 7 : index
    %c0_19 = arith.constant 0 : index
    %20 = vector.load %arg10[%c0_17, %c7_18, %c0_19] : memref<20x32x8xf32, #tpu.memory_space<vmem>>, vector<18x16x8xf32>
    %21 = vector.shape_cast %20 : vector<18x16x8xf32> to vector<288x8xf32>
    %c0_20 = arith.constant 0 : index
    %c0_21 = arith.constant 0 : index
    %c0_22 = arith.constant 0 : index
    %22 = vector.load %arg5[%c0_20, %c0_21, %c0_22] : memref<9x8x8xf32, #tpu.memory_space<vmem>>, vector<1x8x8xf32>
    %23 = vector.shape_cast %22 : vector<1x8x8xf32> to vector<8x8xf32>
    %cst_23 = arith.constant dense<0.000000e+00> : vector<288x8xf32>
    %24 = tpu.matmul %21, %23, %cst_23 {dimension_numbers = #tpu.dot_dimension_numbers<[1], [0], [0], [1], [0, 0, 1, 1], [], []>} : vector<288x8xf32>, vector<8x8xf32>, vector<288x8xf32> -> vector<288x8xf32>
    %25 = arith.addf %19, %24 : vector<288x8xf32>
    %c0_24 = arith.constant 0 : index
    %c8_25 = arith.constant 8 : index
    %c0_26 = arith.constant 0 : index
    %26 = vector.load %arg10[%c0_24, %c8_25, %c0_26] : memref<20x32x8xf32, #tpu.memory_space<vmem>>, vector<18x16x8xf32>
    %27 = vector.shape_cast %26 : vector<18x16x8xf32> to vector<288x8xf32>
    %c1 = arith.constant 1 : index
    %c0_27 = arith.constant 0 : index
    %c0_28 = arith.constant 0 : index
    %28 = vector.load %arg5[%c1, %c0_27, %c0_28] : memref<9x8x8xf32, #tpu.memory_space<vmem>>, vector<1x8x8xf32>
    %29 = vector.shape_cast %28 : vector<1x8x8xf32> to vector<8x8xf32>
    %cst_29 = arith.constant dense<0.000000e+00> : vector<288x8xf32>
    %30 = tpu.matmul %27, %29, %cst_29 {dimension_numbers = #tpu.dot_dimension_numbers<[1], [0], [0], [1], [0, 0, 1, 1], [], []>} : vector<288x8xf32>, vector<8x8xf32>, vector<288x8xf32> -> vector<288x8xf32>
    %31 = arith.addf %25, %30 : vector<288x8xf32>
    %c0_30 = arith.constant 0 : index
    %c9 = arith.constant 9 : index
    %c0_31 = arith.constant 0 : index
    %32 = vector.load %arg10[%c0_30, %c9, %c0_31] : memref<20x32x8xf32, #tpu.memory_space<vmem>>, vector<18x16x8xf32>
    %33 = vector.shape_cast %32 : vector<18x16x8xf32> to vector<288x8xf32>
    %c2_32 = arith.constant 2 : index
    %c0_33 = arith.constant 0 : index
    %c0_34 = arith.constant 0 : index
    %34 = vector.load %arg5[%c2_32, %c0_33, %c0_34] : memref<9x8x8xf32, #tpu.memory_space<vmem>>, vector<1x8x8xf32>
    %35 = vector.shape_cast %34 : vector<1x8x8xf32> to vector<8x8xf32>
    %cst_35 = arith.constant dense<0.000000e+00> : vector<288x8xf32>
    %36 = tpu.matmul %33, %35, %cst_35 {dimension_numbers = #tpu.dot_dimension_numbers<[1], [0], [0], [1], [0, 0, 1, 1], [], []>} : vector<288x8xf32>, vector<8x8xf32>, vector<288x8xf32> -> vector<288x8xf32>
    %37 = arith.addf %31, %36 : vector<288x8xf32>
    %c1_36 = arith.constant 1 : index
    %c7_37 = arith.constant 7 : index
    %c0_38 = arith.constant 0 : index
    %38 = vector.load %arg10[%c1_36, %c7_37, %c0_38] : memref<20x32x8xf32, #tpu.memory_space<vmem>>, vector<18x16x8xf32>
    %39 = vector.shape_cast %38 : vector<18x16x8xf32> to vector<288x8xf32>
    %c3 = arith.constant 3 : index
    %c0_39 = arith.constant 0 : index
    %c0_40 = arith.constant 0 : index
    %40 = vector.load %arg5[%c3, %c0_39, %c0_40] : memref<9x8x8xf32, #tpu.memory_space<vmem>>, vector<1x8x8xf32>
    %41 = vector.shape_cast %40 : vector<1x8x8xf32> to vector<8x8xf32>
    %cst_41 = arith.constant dense<0.000000e+00> : vector<288x8xf32>
    %42 = tpu.matmul %39, %41, %cst_41 {dimension_numbers = #tpu.dot_dimension_numbers<[1], [0], [0], [1], [0, 0, 1, 1], [], []>} : vector<288x8xf32>, vector<8x8xf32>, vector<288x8xf32> -> vector<288x8xf32>
    %43 = arith.addf %37, %42 : vector<288x8xf32>
    %c1_42 = arith.constant 1 : index
    %c8_43 = arith.constant 8 : index
    %c0_44 = arith.constant 0 : index
    %44 = vector.load %arg10[%c1_42, %c8_43, %c0_44] : memref<20x32x8xf32, #tpu.memory_space<vmem>>, vector<18x16x8xf32>
    %45 = vector.shape_cast %44 : vector<18x16x8xf32> to vector<288x8xf32>
    %c4 = arith.constant 4 : index
    %c0_45 = arith.constant 0 : index
    %c0_46 = arith.constant 0 : index
    %46 = vector.load %arg5[%c4, %c0_45, %c0_46] : memref<9x8x8xf32, #tpu.memory_space<vmem>>, vector<1x8x8xf32>
    %47 = vector.shape_cast %46 : vector<1x8x8xf32> to vector<8x8xf32>
    %cst_47 = arith.constant dense<0.000000e+00> : vector<288x8xf32>
    %48 = tpu.matmul %45, %47, %cst_47 {dimension_numbers = #tpu.dot_dimension_numbers<[1], [0], [0], [1], [0, 0, 1, 1], [], []>} : vector<288x8xf32>, vector<8x8xf32>, vector<288x8xf32> -> vector<288x8xf32>
    %49 = arith.addf %43, %48 : vector<288x8xf32>
    %c1_48 = arith.constant 1 : index
    %c9_49 = arith.constant 9 : index
    %c0_50 = arith.constant 0 : index
    %50 = vector.load %arg10[%c1_48, %c9_49, %c0_50] : memref<20x32x8xf32, #tpu.memory_space<vmem>>, vector<18x16x8xf32>
    %51 = vector.shape_cast %50 : vector<18x16x8xf32> to vector<288x8xf32>
    %c5 = arith.constant 5 : index
    %c0_51 = arith.constant 0 : index
    %c0_52 = arith.constant 0 : index
    %52 = vector.load %arg5[%c5, %c0_51, %c0_52] : memref<9x8x8xf32, #tpu.memory_space<vmem>>, vector<1x8x8xf32>
    %53 = vector.shape_cast %52 : vector<1x8x8xf32> to vector<8x8xf32>
    %cst_53 = arith.constant dense<0.000000e+00> : vector<288x8xf32>
    %54 = tpu.matmul %51, %53, %cst_53 {dimension_numbers = #tpu.dot_dimension_numbers<[1], [0], [0], [1], [0, 0, 1, 1], [], []>} : vector<288x8xf32>, vector<8x8xf32>, vector<288x8xf32> -> vector<288x8xf32>
    %55 = arith.addf %49, %54 : vector<288x8xf32>
    %c2_54 = arith.constant 2 : index
    %c7_55 = arith.constant 7 : index
    %c0_56 = arith.constant 0 : index
    %56 = vector.load %arg10[%c2_54, %c7_55, %c0_56] : memref<20x32x8xf32, #tpu.memory_space<vmem>>, vector<18x16x8xf32>
    %57 = vector.shape_cast %56 : vector<18x16x8xf32> to vector<288x8xf32>
    %c6 = arith.constant 6 : index
    %c0_57 = arith.constant 0 : index
    %c0_58 = arith.constant 0 : index
    %58 = vector.load %arg5[%c6, %c0_57, %c0_58] : memref<9x8x8xf32, #tpu.memory_space<vmem>>, vector<1x8x8xf32>
    %59 = vector.shape_cast %58 : vector<1x8x8xf32> to vector<8x8xf32>
    %cst_59 = arith.constant dense<0.000000e+00> : vector<288x8xf32>
    %60 = tpu.matmul %57, %59, %cst_59 {dimension_numbers = #tpu.dot_dimension_numbers<[1], [0], [0], [1], [0, 0, 1, 1], [], []>} : vector<288x8xf32>, vector<8x8xf32>, vector<288x8xf32> -> vector<288x8xf32>
    %61 = arith.addf %55, %60 : vector<288x8xf32>
    %c2_60 = arith.constant 2 : index
    %c8_61 = arith.constant 8 : index
    %c0_62 = arith.constant 0 : index
    %62 = vector.load %arg10[%c2_60, %c8_61, %c0_62] : memref<20x32x8xf32, #tpu.memory_space<vmem>>, vector<18x16x8xf32>
    %63 = vector.shape_cast %62 : vector<18x16x8xf32> to vector<288x8xf32>
    %c7_63 = arith.constant 7 : index
    %c0_64 = arith.constant 0 : index
    %c0_65 = arith.constant 0 : index
    %64 = vector.load %arg5[%c7_63, %c0_64, %c0_65] : memref<9x8x8xf32, #tpu.memory_space<vmem>>, vector<1x8x8xf32>
    %65 = vector.shape_cast %64 : vector<1x8x8xf32> to vector<8x8xf32>
    %cst_66 = arith.constant dense<0.000000e+00> : vector<288x8xf32>
    %66 = tpu.matmul %63, %65, %cst_66 {dimension_numbers = #tpu.dot_dimension_numbers<[1], [0], [0], [1], [0, 0, 1, 1], [], []>} : vector<288x8xf32>, vector<8x8xf32>, vector<288x8xf32> -> vector<288x8xf32>
    %67 = arith.addf %61, %66 : vector<288x8xf32>
    %c2_67 = arith.constant 2 : index
    %c9_68 = arith.constant 9 : index
    %c0_69 = arith.constant 0 : index
    %68 = vector.load %arg10[%c2_67, %c9_68, %c0_69] : memref<20x32x8xf32, #tpu.memory_space<vmem>>, vector<18x16x8xf32>
    %69 = vector.shape_cast %68 : vector<18x16x8xf32> to vector<288x8xf32>
    %c8_70 = arith.constant 8 : index
    %c0_71 = arith.constant 0 : index
    %c0_72 = arith.constant 0 : index
    %70 = vector.load %arg5[%c8_70, %c0_71, %c0_72] : memref<9x8x8xf32, #tpu.memory_space<vmem>>, vector<1x8x8xf32>
    %71 = vector.shape_cast %70 : vector<1x8x8xf32> to vector<8x8xf32>
    %cst_73 = arith.constant dense<0.000000e+00> : vector<288x8xf32>
    %72 = tpu.matmul %69, %71, %cst_73 {dimension_numbers = #tpu.dot_dimension_numbers<[1], [0], [0], [1], [0, 0, 1, 1], [], []>} : vector<288x8xf32>, vector<8x8xf32>, vector<288x8xf32> -> vector<288x8xf32>
    %73 = arith.addf %67, %72 : vector<288x8xf32>
    %c0_74 = arith.constant 0 : index
    %c0_75 = arith.constant 0 : index
    %74 = vector.load %arg6[%c0_74, %c0_75] : memref<1x8xf32, #tpu.memory_space<vmem>>, vector<1x8xf32>
    %75 = vector.broadcast %74 : vector<1x8xf32> to vector<288x8xf32>
    %76 = arith.addf %73, %75 : vector<288x8xf32>
    %cst_76 = arith.constant 0.000000e+00 : f32
    %77 = vector.broadcast %cst_76 : f32 to vector<288x8xf32>
    %78 = arith.maximumf %76, %77 : vector<288x8xf32>
    %79 = vector.shape_cast %78 : vector<288x8xf32> to vector<18x16x8xf32>
    %c0_77 = arith.constant 0 : index
    %c8_78 = arith.constant 8 : index
    %c0_79 = arith.constant 0 : index
    %80 = vector.load %arg11[%c0_77, %c8_78, %c0_79] : memref<18x32x8xf32, #tpu.memory_space<vmem>>, vector<18x16x8xf32>
    tpu.vector_store %arg11[%c0_77, %c8_78, %c0_79], %79 {strides = array<i32>} : memref<18x32x8xf32, #tpu.memory_space<vmem>>, vector<18x16x8xf32>,
    %cst_80 = arith.constant 0.000000e+00 : f32
    %81 = vector.broadcast %cst_80 : f32 to vector<18x1x8xf32>
    %c0_81 = arith.constant 0 : index
    %c7_82 = arith.constant 7 : index
    %c0_83 = arith.constant 0 : index
    %82 = vector.load %arg11[%c0_81, %c7_82, %c0_83] : memref<18x32x8xf32, #tpu.memory_space<vmem>>, vector<18x1x8xf32>
    tpu.vector_store %arg11[%c0_81, %c7_82, %c0_83], %81 {strides = array<i32>} : memref<18x32x8xf32, #tpu.memory_space<vmem>>, vector<18x1x8xf32>,
    %cst_84 = arith.constant 0.000000e+00 : f32
    %83 = vector.broadcast %cst_84 : f32 to vector<18x1x8xf32>
    %c0_85 = arith.constant 0 : index
    %c24_86 = arith.constant 24 : index
    %c0_87 = arith.constant 0 : index
    %84 = vector.load %arg11[%c0_85, %c24_86, %c0_87] : memref<18x32x8xf32, #tpu.memory_space<vmem>>, vector<18x1x8xf32>
    tpu.vector_store %arg11[%c0_85, %c24_86, %c0_87], %83 {strides = array<i32>} : memref<18x32x8xf32, #tpu.memory_space<vmem>>, vector<18x1x8xf32>,
    %c0_i32_88 = arith.constant 0 : i32
    %85 = arith.cmpi eq, %arg1, %c0_i32_88 : i32
    %86 = arith.extui %85 : i1 to i32
    %c0_i32_89 = arith.constant 0 : i32
    %87 = arith.cmpi ne, %86, %c0_i32_89 : i32
    scf.if %87 {
      %cst_162 = arith.constant 0.000000e+00 : f32
      %155 = vector.broadcast %cst_162 : f32 to vector<1x32x8xf32>
      %c0_163 = arith.constant 0 : index
      %c0_164 = arith.constant 0 : index
      %c0_165 = arith.constant 0 : index
      %156 = vector.load %arg11[%c0_163, %c0_164, %c0_165] : memref<18x32x8xf32, #tpu.memory_space<vmem>>, vector<1x32x8xf32>
      tpu.vector_store %arg11[%c0_163, %c0_164, %c0_165], %155 {strides = array<i32>} : memref<18x32x8xf32, #tpu.memory_space<vmem>>, vector<1x32x8xf32>,
    } else {
    }
    %c0_i32_90 = arith.constant 0 : i32
    %88 = arith.cmpi eq, %arg1, %c0_i32_90 : i32
    %89 = arith.extui %88 : i1 to i32
    %c0_i32_91 = arith.constant 0 : i32
    %90 = arith.cmpi ne, %89, %c0_i32_91 : i32
    scf.if %90 {
      %cst_162 = arith.constant 0.000000e+00 : f32
      %155 = vector.broadcast %cst_162 : f32 to vector<1x32x8xf32>
      %c17 = arith.constant 17 : index
      %c0_163 = arith.constant 0 : index
      %c0_164 = arith.constant 0 : index
      %156 = vector.load %arg11[%c17, %c0_163, %c0_164] : memref<18x32x8xf32, #tpu.memory_space<vmem>>, vector<1x32x8xf32>
      tpu.vector_store %arg11[%c17, %c0_163, %c0_164], %155 {strides = array<i32>} : memref<18x32x8xf32, #tpu.memory_space<vmem>>, vector<1x32x8xf32>,
    } else {
    }
    %cst_92 = arith.constant 0.000000e+00 : f32
    %91 = vector.broadcast %cst_92 : f32 to vector<256x8xf32>
    %c0_93 = arith.constant 0 : index
    %c7_94 = arith.constant 7 : index
    %c0_95 = arith.constant 0 : index
    %92 = vector.load %arg11[%c0_93, %c7_94, %c0_95] : memref<18x32x8xf32, #tpu.memory_space<vmem>>, vector<16x16x8xf32>
    %93 = vector.shape_cast %92 : vector<16x16x8xf32> to vector<256x8xf32>
    %c0_96 = arith.constant 0 : index
    %c0_97 = arith.constant 0 : index
    %c0_98 = arith.constant 0 : index
    %94 = vector.load %arg7[%c0_96, %c0_97, %c0_98] : memref<9x8x8xf32, #tpu.memory_space<vmem>>, vector<1x8x8xf32>
    %95 = vector.shape_cast %94 : vector<1x8x8xf32> to vector<8x8xf32>
    %cst_99 = arith.constant dense<0.000000e+00> : vector<256x8xf32>
    %96 = tpu.matmul %93, %95, %cst_99 {dimension_numbers = #tpu.dot_dimension_numbers<[1], [0], [0], [1], [0, 0, 1, 1], [], []>} : vector<256x8xf32>, vector<8x8xf32>, vector<256x8xf32> -> vector<256x8xf32>
    %97 = arith.addf %91, %96 : vector<256x8xf32>
    %c0_100 = arith.constant 0 : index
    %c8_101 = arith.constant 8 : index
    %c0_102 = arith.constant 0 : index
    %98 = vector.load %arg11[%c0_100, %c8_101, %c0_102] : memref<18x32x8xf32, #tpu.memory_space<vmem>>, vector<16x16x8xf32>
    %99 = vector.shape_cast %98 : vector<16x16x8xf32> to vector<256x8xf32>
    %c1_103 = arith.constant 1 : index
    %c0_104 = arith.constant 0 : index
    %c0_105 = arith.constant 0 : index
    %100 = vector.load %arg7[%c1_103, %c0_104, %c0_105] : memref<9x8x8xf32, #tpu.memory_space<vmem>>, vector<1x8x8xf32>
    %101 = vector.shape_cast %100 : vector<1x8x8xf32> to vector<8x8xf32>
    %cst_106 = arith.constant dense<0.000000e+00> : vector<256x8xf32>
    %102 = tpu.matmul %99, %101, %cst_106 {dimension_numbers = #tpu.dot_dimension_numbers<[1], [0], [0], [1], [0, 0, 1, 1], [], []>} : vector<256x8xf32>, vector<8x8xf32>, vector<256x8xf32> -> vector<256x8xf32>
    %103 = arith.addf %97, %102 : vector<256x8xf32>
    %c0_107 = arith.constant 0 : index
    %c9_108 = arith.constant 9 : index
    %c0_109 = arith.constant 0 : index
    %104 = vector.load %arg11[%c0_107, %c9_108, %c0_109] : memref<18x32x8xf32, #tpu.memory_space<vmem>>, vector<16x16x8xf32>
    %105 = vector.shape_cast %104 : vector<16x16x8xf32> to vector<256x8xf32>
    %c2_110 = arith.constant 2 : index
    %c0_111 = arith.constant 0 : index
    %c0_112 = arith.constant 0 : index
    %106 = vector.load %arg7[%c2_110, %c0_111, %c0_112] : memref<9x8x8xf32, #tpu.memory_space<vmem>>, vector<1x8x8xf32>
    %107 = vector.shape_cast %106 : vector<1x8x8xf32> to vector<8x8xf32>
    %cst_113 = arith.constant dense<0.000000e+00> : vector<256x8xf32>
    %108 = tpu.matmul %105, %107, %cst_113 {dimension_numbers = #tpu.dot_dimension_numbers<[1], [0], [0], [1], [0, 0, 1, 1], [], []>} : vector<256x8xf32>, vector<8x8xf32>, vector<256x8xf32> -> vector<256x8xf32>
    %109 = arith.addf %103, %108 : vector<256x8xf32>
    %c1_114 = arith.constant 1 : index
    %c7_115 = arith.constant 7 : index
    %c0_116 = arith.constant 0 : index
    %110 = vector.load %arg11[%c1_114, %c7_115, %c0_116] : memref<18x32x8xf32, #tpu.memory_space<vmem>>, vector<16x16x8xf32>
    %111 = vector.shape_cast %110 : vector<16x16x8xf32> to vector<256x8xf32>
    %c3_117 = arith.constant 3 : index
    %c0_118 = arith.constant 0 : index
    %c0_119 = arith.constant 0 : index
    %112 = vector.load %arg7[%c3_117, %c0_118, %c0_119] : memref<9x8x8xf32, #tpu.memory_space<vmem>>, vector<1x8x8xf32>
    %113 = vector.shape_cast %112 : vector<1x8x8xf32> to vector<8x8xf32>
    %cst_120 = arith.constant dense<0.000000e+00> : vector<256x8xf32>
    %114 = tpu.matmul %111, %113, %cst_120 {dimension_numbers = #tpu.dot_dimension_numbers<[1], [0], [0], [1], [0, 0, 1, 1], [], []>} : vector<256x8xf32>, vector<8x8xf32>, vector<256x8xf32> -> vector<256x8xf32>
    %115 = arith.addf %109, %114 : vector<256x8xf32>
    %c1_121 = arith.constant 1 : index
    %c8_122 = arith.constant 8 : index
    %c0_123 = arith.constant 0 : index
    %116 = vector.load %arg11[%c1_121, %c8_122, %c0_123] : memref<18x32x8xf32, #tpu.memory_space<vmem>>, vector<16x16x8xf32>
    %117 = vector.shape_cast %116 : vector<16x16x8xf32> to vector<256x8xf32>
    %c4_124 = arith.constant 4 : index
    %c0_125 = arith.constant 0 : index
    %c0_126 = arith.constant 0 : index
    %118 = vector.load %arg7[%c4_124, %c0_125, %c0_126] : memref<9x8x8xf32, #tpu.memory_space<vmem>>, vector<1x8x8xf32>
    %119 = vector.shape_cast %118 : vector<1x8x8xf32> to vector<8x8xf32>
    %cst_127 = arith.constant dense<0.000000e+00> : vector<256x8xf32>
    %120 = tpu.matmul %117, %119, %cst_127 {dimension_numbers = #tpu.dot_dimension_numbers<[1], [0], [0], [1], [0, 0, 1, 1], [], []>} : vector<256x8xf32>, vector<8x8xf32>, vector<256x8xf32> -> vector<256x8xf32>
    %121 = arith.addf %115, %120 : vector<256x8xf32>
    %c1_128 = arith.constant 1 : index
    %c9_129 = arith.constant 9 : index
    %c0_130 = arith.constant 0 : index
    %122 = vector.load %arg11[%c1_128, %c9_129, %c0_130] : memref<18x32x8xf32, #tpu.memory_space<vmem>>, vector<16x16x8xf32>
    %123 = vector.shape_cast %122 : vector<16x16x8xf32> to vector<256x8xf32>
    %c5_131 = arith.constant 5 : index
    %c0_132 = arith.constant 0 : index
    %c0_133 = arith.constant 0 : index
    %124 = vector.load %arg7[%c5_131, %c0_132, %c0_133] : memref<9x8x8xf32, #tpu.memory_space<vmem>>, vector<1x8x8xf32>
    %125 = vector.shape_cast %124 : vector<1x8x8xf32> to vector<8x8xf32>
    %cst_134 = arith.constant dense<0.000000e+00> : vector<256x8xf32>
    %126 = tpu.matmul %123, %125, %cst_134 {dimension_numbers = #tpu.dot_dimension_numbers<[1], [0], [0], [1], [0, 0, 1, 1], [], []>} : vector<256x8xf32>, vector<8x8xf32>, vector<256x8xf32> -> vector<256x8xf32>
    %127 = arith.addf %121, %126 : vector<256x8xf32>
    %c2_135 = arith.constant 2 : index
    %c7_136 = arith.constant 7 : index
    %c0_137 = arith.constant 0 : index
    %128 = vector.load %arg11[%c2_135, %c7_136, %c0_137] : memref<18x32x8xf32, #tpu.memory_space<vmem>>, vector<16x16x8xf32>
    %129 = vector.shape_cast %128 : vector<16x16x8xf32> to vector<256x8xf32>
    %c6_138 = arith.constant 6 : index
    %c0_139 = arith.constant 0 : index
    %c0_140 = arith.constant 0 : index
    %130 = vector.load %arg7[%c6_138, %c0_139, %c0_140] : memref<9x8x8xf32, #tpu.memory_space<vmem>>, vector<1x8x8xf32>
    %131 = vector.shape_cast %130 : vector<1x8x8xf32> to vector<8x8xf32>
    %cst_141 = arith.constant dense<0.000000e+00> : vector<256x8xf32>
    %132 = tpu.matmul %129, %131, %cst_141 {dimension_numbers = #tpu.dot_dimension_numbers<[1], [0], [0], [1], [0, 0, 1, 1], [], []>} : vector<256x8xf32>, vector<8x8xf32>, vector<256x8xf32> -> vector<256x8xf32>
    %133 = arith.addf %127, %132 : vector<256x8xf32>
    %c2_142 = arith.constant 2 : index
    %c8_143 = arith.constant 8 : index
    %c0_144 = arith.constant 0 : index
    %134 = vector.load %arg11[%c2_142, %c8_143, %c0_144] : memref<18x32x8xf32, #tpu.memory_space<vmem>>, vector<16x16x8xf32>
    %135 = vector.shape_cast %134 : vector<16x16x8xf32> to vector<256x8xf32>
    %c7_145 = arith.constant 7 : index
    %c0_146 = arith.constant 0 : index
    %c0_147 = arith.constant 0 : index
    %136 = vector.load %arg7[%c7_145, %c0_146, %c0_147] : memref<9x8x8xf32, #tpu.memory_space<vmem>>, vector<1x8x8xf32>
    %137 = vector.shape_cast %136 : vector<1x8x8xf32> to vector<8x8xf32>
    %cst_148 = arith.constant dense<0.000000e+00> : vector<256x8xf32>
    %138 = tpu.matmul %135, %137, %cst_148 {dimension_numbers = #tpu.dot_dimension_numbers<[1], [0], [0], [1], [0, 0, 1, 1], [], []>} : vector<256x8xf32>, vector<8x8xf32>, vector<256x8xf32> -> vector<256x8xf32>
    %139 = arith.addf %133, %138 : vector<256x8xf32>
    %c2_149 = arith.constant 2 : index
    %c9_150 = arith.constant 9 : index
    %c0_151 = arith.constant 0 : index
    %140 = vector.load %arg11[%c2_149, %c9_150, %c0_151] : memref<18x32x8xf32, #tpu.memory_space<vmem>>, vector<16x16x8xf32>
    %141 = vector.shape_cast %140 : vector<16x16x8xf32> to vector<256x8xf32>
    %c8_152 = arith.constant 8 : index
    %c0_153 = arith.constant 0 : index
    %c0_154 = arith.constant 0 : index
    %142 = vector.load %arg7[%c8_152, %c0_153, %c0_154] : memref<9x8x8xf32, #tpu.memory_space<vmem>>, vector<1x8x8xf32>
    %143 = vector.shape_cast %142 : vector<1x8x8xf32> to vector<8x8xf32>
    %cst_155 = arith.constant dense<0.000000e+00> : vector<256x8xf32>
    %144 = tpu.matmul %141, %143, %cst_155 {dimension_numbers = #tpu.dot_dimension_numbers<[1], [0], [0], [1], [0, 0, 1, 1], [], []>} : vector<256x8xf32>, vector<8x8xf32>, vector<256x8xf32> -> vector<256x8xf32>
    %145 = arith.addf %139, %144 : vector<256x8xf32>
    %c0_156 = arith.constant 0 : index
    %c0_157 = arith.constant 0 : index
    %146 = vector.load %arg8[%c0_156, %c0_157] : memref<1x8xf32, #tpu.memory_space<vmem>>, vector<1x8xf32>
    %147 = vector.broadcast %146 : vector<1x8xf32> to vector<256x8xf32>
    %148 = arith.addf %145, %147 : vector<256x8xf32>
    %cst_158 = arith.constant 0.000000e+00 : f32
    %149 = vector.broadcast %cst_158 : f32 to vector<256x8xf32>
    %150 = arith.maximumf %148, %149 : vector<256x8xf32>
    %151 = tpu.transpose %150, [1, 0] : vector<256x8xf32> -> vector<8x256xf32>
    %c0_159 = arith.constant 0 : index
    %c0_160 = arith.constant 0 : index
    %c0_161 = arith.constant 0 : index
    %152 = vector.load %arg9[%c0_159, %c0_160, %c0_161] : memref<1x8x256xf32, #tpu.memory_space<vmem>>, vector<1x8x256xf32>
    %153 = vector.shape_cast %152 : vector<1x8x256xf32> to vector<8x256xf32>
    %154 = vector.shape_cast %151 : vector<8x256xf32> to vector<1x8x256xf32>
    tpu.vector_store %arg9[%c0_159, %c0_160, %c0_161], %154 {strides = array<i32>} : memref<1x8x256xf32, #tpu.memory_space<vmem>>, vector<1x8x256xf32>,
    return
  }
  func.func @transform_0(%arg0: i32, %arg1: i32) -> (i32, i32, i32, i32) {
    %c0_i32 = arith.constant 0 : i32
    %c0_i32_0 = arith.constant 0 : i32
    %c0_i32_1 = arith.constant 0 : i32
    return %arg0, %arg1, %c0_i32, %c0_i32_0 : i32, i32, i32, i32
  }
  func.func @transform_1(%arg0: i32, %arg1: i32) -> (i32, i32, i32, i32) {
    %c8_i32 = arith.constant 8 : i32
    %0 = arith.muli %arg1, %c8_i32 : i32
    %c1_i32 = arith.constant 1 : i32
    %1 = arith.subi %0, %c1_i32 : i32
    %c0_i32 = arith.constant 0 : i32
    %2 = arith.maxsi %1, %c0_i32 : i32
    %c0_i32_0 = arith.constant 0 : i32
    %c0_i32_1 = arith.constant 0 : i32
    %c0_i32_2 = arith.constant 0 : i32
    return %arg0, %2, %c0_i32_0, %c0_i32_1 : i32, i32, i32, i32
  }
  func.func @transform_2(%arg0: i32, %arg1: i32) -> (i32, i32, i32, i32) {
    %c1_i32 = arith.constant 1 : i32
    %0 = arith.addi %arg1, %c1_i32 : i32
    %c8_i32 = arith.constant 8 : i32
    %1 = arith.muli %0, %c8_i32 : i32
    %c7_i32 = arith.constant 7 : i32
    %2 = arith.minsi %1, %c7_i32 : i32
    %c0_i32 = arith.constant 0 : i32
    %c0_i32_0 = arith.constant 0 : i32
    %c0_i32_1 = arith.constant 0 : i32
    return %arg0, %2, %c0_i32, %c0_i32_0 : i32, i32, i32, i32
  }
  func.func @transform_3(%arg0: i32, %arg1: i32) -> (i32, i32, i32) {
    %c0_i32 = arith.constant 0 : i32
    %c0_i32_0 = arith.constant 0 : i32
    %c0_i32_1 = arith.constant 0 : i32
    %c0_i32_2 = arith.constant 0 : i32
    return %c0_i32, %c0_i32_0, %c0_i32_1 : i32, i32, i32
  }
  func.func @transform_4(%arg0: i32, %arg1: i32) -> (i32, i32) {
    %c0_i32 = arith.constant 0 : i32
    %c0_i32_0 = arith.constant 0 : i32
    %c0_i32_1 = arith.constant 0 : i32
    return %c0_i32, %c0_i32_0 : i32, i32
  }
  func.func @transform_5(%arg0: i32, %arg1: i32) -> (i32, i32, i32) {
    %c0_i32 = arith.constant 0 : i32
    %c0_i32_0 = arith.constant 0 : i32
    %c0_i32_1 = arith.constant 0 : i32
    %c0_i32_2 = arith.constant 0 : i32
    return %c0_i32, %c0_i32_0, %c0_i32_1 : i32, i32, i32
  }
  func.func @transform_6(%arg0: i32, %arg1: i32) -> (i32, i32) {
    %c0_i32 = arith.constant 0 : i32
    %c0_i32_0 = arith.constant 0 : i32
    %c0_i32_1 = arith.constant 0 : i32
    return %c0_i32, %c0_i32_0 : i32, i32
  }
  func.func @transform_7(%arg0: i32, %arg1: i32) -> (i32, i32, i32) {
    %c0_i32 = arith.constant 0 : i32
    %c0_i32_0 = arith.constant 0 : i32
    return %arg0, %c0_i32, %arg1 : i32, i32, i32
  }
}

</mosaic_0001>

<bundles_post_ra>
// kernel: in_conv_forward.1
= control target key start
LH: loop header
LB: loop body
LE: loop exit
PB: predicated region body
PF: predicated region fallthrough
CT: control target
= control target key end

     0   :  { %s6923_s24 = smov 0   ;;  %s6925_s1 = smov 0   ;;  %s9713_s0 = inlined_call_operand.vmem [shape: f32[2,16,16,8], index: 0, kind: input, shape index: {}, may-alias: {0,1,2}]   ;;  %s9714_s1 = inlined_call_operand.vmem [shape: f32[2,16,16,8], index: 1, kind: input, shape index: {}, may-alias: {0,1,2}]   ;;  %s9715_s2 = inlined_call_operand.vmem [shape: f32[2,16,16,8], index: 2, kind: input, shape index: {}, may-alias: {0,1,2}]   ;;  %s9716_s3 = inlined_call_operand.vmem [shape: f32[9,8,8], index: 3, kind: input, shape index: {}]   ;;  %s9717_s4 = inlined_call_operand.vmem [shape: f32[1,8], index: 4, kind: input, shape index: {}]   ;;  %s9718_s5 = inlined_call_operand.vmem [shape: f32[9,8,8], index: 5, kind: input, shape index: {}]   ;;  %s9719_s6 = inlined_call_operand.vmem [shape: f32[1,8], index: 6, kind: input, shape index: {}]   ;;  %s9720_s7 = inlined_call_operand.vmem [shape: f32[2,8,256], index: 7, kind: output, shape index: {}]  }
   0x1   :  { %s6927_s2 = smov 0  }
   0x2 LB: > { %s29_s25 = sadd.s32 1, %s6876_s1  ;;  %p6136_p0 = scmp.ge.s32.totalorder %s6880_s2, 1  ;;  %s6880_s2 = sphi %s6927_s2, %s17_s2   ;;  %s6876_s1 = sphi %s6925_s1, %s10101_s1   ;;  %s6872_s24 = sphi %s6923_s24, %s10100_s24  }
   0x3   : > { %p31_p1 = scmp.ge.s32.totalorder %s29_s25, 2  ;;  %p327_p2 = scmp.lt.s32.totalorder %s6880_s2, 3 }
   0x5   : > { %s10103_s25 = smov (%p31_p1, %s29_s25), 0  ;;  %p328_p3 = pnand %p6136_p0, %p327_p2 }
   0x7   : > { %331 = sbr.rel (%p328_p3) target bundleno = 1849 (0x739), region = 48 }
   0xc   : > { %v6145_v0 = vld [vmem:[%s9716_s3 + $0x8] sm:$0xff]  ;;  %v639_v1 = vld [vmem:[%s9716_s3] sm:$0xff]  ;;  %vm488_vm0 = vcmask 64512   ;;  %v9721_v2 = vmov 0.0   ;;  %vm562_vm1 = vcmask 57344   ;;  %v6218_v5 = vld [vmem:[%s9716_s3 + $0x10] sm:$0xff] }
   0xd   : > { %801 = vmatpush.msra.mxu0 %v6145_v0  ;;  %1034 = vmatpush.msra.mxu1 %v639_v1  ;;  %537 = vst.msk [vmem:[#allocation2 + $0x8] sm:$0xff] %vm488_vm0, %v9721_v2  ;;  %p397_p4 = scmp.lt.s32.totalorder %s6872_s24, 1 }
   0xe   : > { %538 = vst.msk [vmem:[#allocation2 + $0x10] sm:$0xff] %vm488_vm0, %v9721_v2  ;;  %6780 = vmatpush.msra.mxu3 %v6145_v0  ;;  %6782 = vmatpush.msra.mxu2 %v6218_v5 }
   0xf   : > { %539 = vst.msk [vmem:[#allocation2 + $0x28] sm:$0xff] %vm488_vm0, %v9721_v2  ;;  %1305 = vmatpush.msrb.mxu0 %v6218_v5  ;;  %s10105_s24 = smov (!%p397_p4, %s6872_s24), 1 }
  0x10   : > { %6781 = vmatpush.msrb.mxu3 %v639_v1  ;;  %540 = vst.msk [vmem:[#allocation2 + $0x30] sm:$0xff] %vm488_vm0, %v9721_v2  ;;  %s6775_s9 = sshll.u32 %s10105_s24, 8  ;;  %s6779_s30 = sshll.u32 %s10105_s24, 4 }
  0x11   : > { %558 = vst.msk [vmem:[#allocation2 + $0x248] sm:$0xff] %vm488_vm0, %v9721_v2  ;;  %s7146_s12 = scalar_lea.vmem %s9713_s0, %s6775_s9  ;;  %s453_s10 = scalar_lea.vmem %s9720_s7, %s6779_s30 }
  0x12   : > { %559 = vst.msk [vmem:[#allocation2 + $0x250] sm:$0xff] %vm488_vm0, %v9721_v2  ;;  %v485_v12 = vld [vmem:[%s7146_s12 + $0xf0] sm:$0xff]  ;;  %v486_v13 = vld [vmem:[%s7146_s12 + $0xf8] sm:$0xff]  ;;  %v471_v14 = vld [vmem:[%s7146_s12 + $0x80] sm:$0xff] }
  0x13   : > { %560 = vst.msk [vmem:[#allocation2 + $0x268] sm:$0xff] %vm488_vm0, %v9721_v2  ;;  %v472_v15 = vld [vmem:[%s7146_s12 + $0x88] sm:$0xff]  ;;  %v473_v16 = vld [vmem:[%s7146_s12 + $0x90] sm:$0xff]  ;;  %v455_v17 = vld [vmem:[%s7146_s12] sm:$0xff] }
  0x14   : > { %v640_v3 = vld [vmem:[#allocation2 + $0x8] sm:$0xff]  ;;  %561 = vst.msk [vmem:[#allocation2 + $0x270] sm:$0xff] %vm488_vm0, %v9721_v2  ;;  %v474_v18 = vld [vmem:[%s7146_s12 + $0x98] sm:$0xff]  ;;  %v475_v21 = vld [vmem:[%s7146_s12 + $0xa0] sm:$0xff] }
  0x15   : > { %6146 = vmatmul.msk.f32.vlgmr.msra.gmra.mxu0 %vm488_vm0, %v640_v3  ;;  %563 = vst.msk [vmem:[#allocation2 + $0x7] sm:$0x1] %vm562_vm1, %v9721_v2  ;;  %v641_v6 = vld [vmem:[#allocation2 + $0x10] sm:$0xff]  ;;  %v456_v19 = vld [vmem:[%s7146_s12 + $0x8] sm:$0xff]  ;;  %v458_v27 = vld [vmem:[%s7146_s12 + $0x18] sm:$0xff] }
  0x16   : > { %564 = vst.msk [vmem:[#allocation2 + $0x27] sm:$0x1] %vm562_vm1, %v9721_v2  ;;  %v604_v7 = vld [vmem:[#allocation2 + $0xf] sm:$0xff]  ;;  %v459_v32 = vld [vmem:[%s7146_s12 + $0x20] sm:$0xff]  ;;  %v478_v36 = vld [vmem:[%s7146_s12 + $0xb8] sm:$0xff] }
  0x17   : > { %565 = vst.msk [vmem:[#allocation2 + $0x47] sm:$0x1] %vm562_vm1, %v9721_v2  ;;  %v7103_v8 = vld [vmem:[#allocation2 + $0x28] sm:$0xff]  ;;  %v7131_v10 = vld [vmem:[#allocation2 + $0x30] sm:$0xff]  ;;  %v479_v41 = vld [vmem:[%s7146_s12 + $0xc0] sm:$0xff] }
  0x18   : > { %566 = vst.msk [vmem:[#allocation2 + $0x67] sm:$0x1] %vm562_vm1, %v9721_v2  ;;  %v7133_v11 = vld [vmem:[#allocation2 + $0x2f] sm:$0xff]  ;;  %v462_v47 = vld [vmem:[%s7146_s12 + $0x38] sm:$0xff]  ;;  %v463_v52 = vld [vmem:[%s7146_s12 + $0x40] sm:$0xff] }
  0x19   : > { %567 = vst.msk [vmem:[#allocation2 + $0x87] sm:$0x1] %vm562_vm1, %v9721_v2  ;;  %v457_v22 = vld [vmem:[%s7146_s12 + $0x10] sm:$0xff]  ;;  %v476_v26 = vld [vmem:[%s7146_s12 + $0xa8] sm:$0xff]  ;;  %v466_v55 = vld [vmem:[%s7146_s12 + $0x58] sm:$0xff] }
  0x1a   : > { %568 = vst.msk [vmem:[#allocation2 + $0xa7] sm:$0x1] %vm562_vm1, %v9721_v2  ;;  %v477_v31 = vld [vmem:[%s7146_s12 + $0xb0] sm:$0xff]  ;;  %v460_v37 = vld [vmem:[%s7146_s12 + $0x28] sm:$0xff]  ;;  %v482_v57 = vld [vmem:[%s7146_s12 + $0xd8] sm:$0xff] }
  0x1b   : > { %569 = vst.msk [vmem:[#allocation2 + $0xc7] sm:$0x1] %vm562_vm1, %v9721_v2  ;;  %v461_v42 = vld [vmem:[%s7146_s12 + $0x30] sm:$0xff]  ;;  %v480_v46 = vld [vmem:[%s7146_s12 + $0xc8] sm:$0xff]  ;;  %v467_v62 = vld [vmem:[%s7146_s12 + $0x60] sm:$0xff] }
  0x1c   : > { %v603_v4 = vld [vmem:[#allocation2 + $0x7] sm:$0xff]  ;;  %570 = vst.msk [vmem:[#allocation2 + $0xe7] sm:$0x1] %vm562_vm1, %v9721_v2  ;;  %v481_v51 = vld [vmem:[%s7146_s12 + $0xd0] sm:$0xff] }
  0x1d   : > { %6182 = vmatmul.msk.f32.vlgmr.msra.gmra.mxu1 %vm488_vm0, %v603_v4  ;;  %571 = vst.msk [vmem:[#allocation2 + $0x107] sm:$0x1] %vm562_vm1, %v9721_v2  ;;  %6147 = vmatmul.msk.f32.gmra.mxu0 %vm488_vm0, %v641_v6  ;;  %v7105_v9 = vld [vmem:[#allocation2 + $0x27] sm:$0xff]  ;;  %v465_v3 = vld [vmem:[%s7146_s12 + $0x50] sm:$0xff] }
  0x1e   : > { %572 = vst.msk [vmem:[#allocation2 + $0x127] sm:$0x1] %vm562_vm1, %v9721_v2  ;;  %v464_v58 = vld [vmem:[%s7146_s12 + $0x48] sm:$0xff]  ;;  %v483_v1 = vld [vmem:[%s7146_s12 + $0xe0] sm:$0xff] }
  0x1f   : > { %573 = vst.msk [vmem:[#allocation2 + $0x147] sm:$0x1] %vm562_vm1, %v9721_v2  ;;  %v468_v63 = vld [vmem:[%s7146_s12 + $0x68] sm:$0xff] }
  0x20   : > { %574 = vst.msk [vmem:[#allocation2 + $0x167] sm:$0x1] %vm562_vm1, %v9721_v2 }
  0x21   : > { %575 = vst.msk [vmem:[#allocation2 + $0x187] sm:$0x1] %vm562_vm1, %v9721_v2 }
  0x22   : > { %576 = vst.msk [vmem:[#allocation2 + $0x1a7] sm:$0x1] %vm562_vm1, %v9721_v2 }
  0x23   : > { %577 = vst.msk [vmem:[#allocation2 + $0x1c7] sm:$0x1] %vm562_vm1, %v9721_v2 }
  0x24   : > { %578 = vst.msk [vmem:[#allocation2 + $0x1e7] sm:$0x1] %vm562_vm1, %v9721_v2 }
  0x25   : > { %579 = vst.msk [vmem:[#allocation2 + $0x207] sm:$0x1] %vm562_vm1, %v9721_v2  ;;  %6183 = vmatmul.msk.f32.gmra.mxu1 %vm488_vm0, %v604_v7  ;;  %6148 = vmatmul.msk.f32.gmra.mxu0 %vm488_vm0, %v7103_v8 }
  0x26   : > { %580 = vst.msk [vmem:[#allocation2 + $0x227] sm:$0x1] %vm562_vm1, %v9721_v2 }
  0x27   : > { %581 = vst.msk [vmem:[#allocation2 + $0x247] sm:$0x1] %vm562_vm1, %v9721_v2 }
  0x28   : > { %582 = vst.msk [vmem:[#allocation2 + $0x267] sm:$0x1] %vm562_vm1, %v9721_v2 }
  0x29   : > { %583 = vst.msk [vmem:[#allocation2 + $0x18] sm:$0x1] %vm562_vm1, %v9721_v2 }
  0x2a   : > { %584 = vst.msk [vmem:[#allocation2 + $0x38] sm:$0x1] %vm562_vm1, %v9721_v2 }
  0x2b   : > { %585 = vst.msk [vmem:[#allocation2 + $0x58] sm:$0x1] %vm562_vm1, %v9721_v2 }
  0x2c   : > { %586 = vst.msk [vmem:[#allocation2 + $0x78] sm:$0x1] %vm562_vm1, %v9721_v2 }
  0x2d   : > { %587 = vst.msk [vmem:[#allocation2 + $0x98] sm:$0x1] %vm562_vm1, %v9721_v2  ;;  %6184 = vmatmul.msk.f32.gmra.mxu1 %vm488_vm0, %v7105_v9  ;;  %6149 = vmatmul.msk.f32.gmra.mxu0 %vm488_vm0, %v7131_v10 }
  0x2e   : > { %588 = vst.msk [vmem:[#allocation2 + $0xb8] sm:$0x1] %vm562_vm1, %v9721_v2 }
  0x2f   : > { %589 = vst.msk [vmem:[#allocation2 + $0xd8] sm:$0x1] %vm562_vm1, %v9721_v2 }
  0x30   : > { %590 = vst.msk [vmem:[#allocation2 + $0xf8] sm:$0x1] %vm562_vm1, %v9721_v2 }
  0x31   : > { %591 = vst.msk [vmem:[#allocation2 + $0x118] sm:$0x1] %vm562_vm1, %v9721_v2 }
  0x32   : > { %592 = vst.msk [vmem:[#allocation2 + $0x138] sm:$0x1] %vm562_vm1, %v9721_v2 }
  0x33   : > { %593 = vst.msk [vmem:[#allocation2 + $0x158] sm:$0x1] %vm562_vm1, %v9721_v2 }
  0x34   : > { %594 = vst.msk [vmem:[#allocation2 + $0x178] sm:$0x1] %vm562_vm1, %v9721_v2 }
  0x35   : > { %595 = vst.msk [vmem:[#allocation2 + $0x198] sm:$0x1] %vm562_vm1, %v9721_v2  ;;  %6185 = vmatmul.msk.f32.gmra.mxu1 %vm488_vm0, %v7133_v11 }
  0x36   : > { %596 = vst.msk [vmem:[#allocation2 + $0x1b8] sm:$0x1] %vm562_vm1, %v9721_v2 }
  0x37   : > { %597 = vst.msk [vmem:[#allocation2 + $0x1d8] sm:$0x1] %vm562_vm1, %v9721_v2 }
  0x38   : > { %598 = vst.msk [vmem:[#allocation2 + $0x1f8] sm:$0x1] %vm562_vm1, %v9721_v2 }
  0x39   : > { %599 = vst.msk [vmem:[#allocation2 + $0x218] sm:$0x1] %vm562_vm1, %v9721_v2 }
  0x3a   : > { %600 = vst.msk [vmem:[#allocation2 + $0x238] sm:$0x1] %vm562_vm1, %v9721_v2 }
  0x3b   : > { %601 = vst.msk [vmem:[#allocation2 + $0x258] sm:$0x1] %vm562_vm1, %v9721_v2 }
  0x3c   : > { %602 = vst.msk [vmem:[#allocation2 + $0x278] sm:$0x1] %vm562_vm1, %v9721_v2 }
  0x3d   : > { %3406 = vst.msk [vmem:[#allocation3 + $0x7] sm:$0x1] %vm562_vm1, %v9721_v2 }
  0x3e   : > { %3407 = vst.msk [vmem:[#allocation3 + $0x27] sm:$0x1] %vm562_vm1, %v9721_v2 }
  0x3f   : > { %3408 = vst.msk [vmem:[#allocation3 + $0x47] sm:$0x1] %vm562_vm1, %v9721_v2 }
  0x40   : > { %3409 = vst.msk [vmem:[#allocation3 + $0x67] sm:$0x1] %vm562_vm1, %v9721_v2 }
  0x41   : > { %3410 = vst.msk [vmem:[#allocation3 + $0x87] sm:$0x1] %vm562_vm1, %v9721_v2 }
  0x42   : > { %3411 = vst.msk [vmem:[#allocation3 + $0xa7] sm:$0x1] %vm562_vm1, %v9721_v2 }
  0x43   : > { %3412 = vst.msk [vmem:[#allocation3 + $0xc7] sm:$0x1] %vm562_vm1, %v9721_v2 }
  0x44   : > { %3413 = vst.msk [vmem:[#allocation3 + $0xe7] sm:$0x1] %vm562_vm1, %v9721_v2 }
  0x45   : > { %3414 = vst.msk [vmem:[#allocation3 + $0x107] sm:$0x1] %vm562_vm1, %v9721_v2 }
  0x46   : > { %3415 = vst.msk [vmem:[#allocation3 + $0x127] sm:$0x1] %vm562_vm1, %v9721_v2 }
  0x47   : > { %3416 = vst.msk [vmem:[#allocation3 + $0x147] sm:$0x1] %vm562_vm1, %v9721_v2 }
  0x48   : > { %3417 = vst.msk [vmem:[#allocation3 + $0x167] sm:$0x1] %vm562_vm1, %v9721_v2 }
  0x49   : > { %3418 = vst.msk [vmem:[#allocation3 + $0x187] sm:$0x1] %vm562_vm1, %v9721_v2 }
  0x4a   : > { %3419 = vst.msk [vmem:[#allocation3 + $0x1a7] sm:$0x1] %vm562_vm1, %v9721_v2 }
  0x4b   : > { %3420 = vst.msk [vmem:[#allocation3 + $0x1c7] sm:$0x1] %vm562_vm1, %v9721_v2 }
  0x4c   : > { %3421 = vst.msk [vmem:[#allocation3 + $0x1e7] sm:$0x1] %vm562_vm1, %v9721_v2 }
  0x4d   : > { %3422 = vst.msk [vmem:[#allocation3 + $0x207] sm:$0x1] %vm562_vm1, %v9721_v2 }
  0x4e   : > { %3423 = vst.msk [vmem:[#allocation3 + $0x227] sm:$0x1] %vm562_vm1, %v9721_v2 }
  0x4f   : > { %3424 = vst.msk [vmem:[#allocation3 + $0x18] sm:$0x1] %vm562_vm1, %v9721_v2 }
  0x50   : > { %3425 = vst.msk [vmem:[#allocation3 + $0x38] sm:$0x1] %vm562_vm1, %v9721_v2 }
  0x51   : > { %3426 = vst.msk [vmem:[#allocation3 + $0x58] sm:$0x1] %vm562_vm1, %v9721_v2 }
  0x52   : > { %3427 = vst.msk [vmem:[#allocation3 + $0x78] sm:$0x1] %vm562_vm1, %v9721_v2 }
  0x53   : > { %3428 = vst.msk [vmem:[#allocation3 + $0x98] sm:$0x1] %vm562_vm1, %v9721_v2 }
  0x54   : > { %3429 = vst.msk [vmem:[#allocation3 + $0xb8] sm:$0x1] %vm562_vm1, %v9721_v2 }
  0x55   : > { %3430 = vst.msk [vmem:[#allocation3 + $0xd8] sm:$0x1] %vm562_vm1, %v9721_v2 }
  0x56   : > { %3431 = vst.msk [vmem:[#allocation3 + $0xf8] sm:$0x1] %vm562_vm1, %v9721_v2 }
  0x57   : > { %3432 = vst.msk [vmem:[#allocation3 + $0x118] sm:$0x1] %vm562_vm1, %v9721_v2 }
  0x58   : > { %3433 = vst.msk [vmem:[#allocation3 + $0x138] sm:$0x1] %vm562_vm1, %v9721_v2 }
  0x59   : > { %3434 = vst.msk [vmem:[#allocation3 + $0x158] sm:$0x1] %vm562_vm1, %v9721_v2 }
  0x5a   : > { %3435 = vst.msk [vmem:[#allocation3 + $0x178] sm:$0x1] %vm562_vm1, %v9721_v2 }
  0x5b   : > { %3436 = vst.msk [vmem:[#allocation3 + $0x198] sm:$0x1] %vm562_vm1, %v9721_v2 }
  0x5c   : > { %3437 = vst.msk [vmem:[#allocation3 + $0x1b8] sm:$0x1] %vm562_vm1, %v9721_v2 }
  0x5d   : > { %3438 = vst.msk [vmem:[#allocation3 + $0x1d8] sm:$0x1] %vm562_vm1, %v9721_v2 }
  0x5e   : > { %3439 = vst.msk [vmem:[#allocation3 + $0x1f8] sm:$0x1] %vm562_vm1, %v9721_v2 }
  0x5f   : > { %3440 = vst.msk [vmem:[#allocation3 + $0x218] sm:$0x1] %vm562_vm1, %v9721_v2 }
  0x60   : > { %3441 = vst.msk [vmem:[#allocation3 + $0x238] sm:$0x1] %vm562_vm1, %v9721_v2 }
  0x61   : > { %3445 = vst.msk [vmem:[#allocation3] sm:$0xff] %vm488_vm0, %v9721_v2 }
  0x62   : > { %3448 = vst.msk [vmem:[#allocation3 + $0x18] sm:$0xff] %vm488_vm0, %v9721_v2 }
  0x63   : > { %3450 = vst.msk [vmem:[#allocation3 + $0x220] sm:$0xff] %vm488_vm0, %v9721_v2 }
  0x64   : > { %3453 = vst.msk [vmem:[#allocation3 + $0x238] sm:$0xff] %vm488_vm0, %v9721_v2 }
  0x65   : > { %519 = vst.msk [vmem:[#allocation2 + $0x228] sm:$0xff] %vm488_vm0, %v485_v12  ;;  %v484_v12 = vld [vmem:[%s7146_s12 + $0xe8] sm:$0xff] }
  0x66   : > { %520 = vst.msk [vmem:[#allocation2 + $0x230] sm:$0xff] %vm488_vm0, %v486_v13 }
  0x67   : > { %505 = vst.msk [vmem:[#allocation2 + $0x148] sm:$0xff] %vm488_vm0, %v471_v14 }
  0x68   : > { %506 = vst.msk [vmem:[#allocation2 + $0x150] sm:$0xff] %vm488_vm0, %v472_v15 }
  0x69   : > { %507 = vst.msk [vmem:[#allocation2 + $0x168] sm:$0xff] %vm488_vm0, %v473_v16  ;;  %v469_v16 = vld [vmem:[%s7146_s12 + $0x70] sm:$0xff] }
  0x6a   : > { %489 = vst.msk [vmem:[#allocation2 + $0x48] sm:$0xff] %vm488_vm0, %v455_v17  ;;  %v470_v17 = vld [vmem:[%s7146_s12 + $0x78] sm:$0xff] }
  0x6b   : > { %508 = vst.msk [vmem:[#allocation2 + $0x170] sm:$0xff] %vm488_vm0, %v474_v18 }
  0x6c   : > { %v674_v20 = vld [vmem:[#allocation2 + $0x228] sm:$0xff]  ;;  %490 = vst.msk [vmem:[#allocation2 + $0x50] sm:$0xff] %vm488_vm0, %v456_v19 }
  0x6d   : > { %6180 = vmatmul.msk.f32.vlgmr.msra.gmra.mxu3 %vm488_vm0, %v674_v20  ;;  %509 = vst.msk [vmem:[#allocation2 + $0x188] sm:$0xff] %vm488_vm0, %v475_v21  ;;  %v675_v25 = vld [vmem:[#allocation2 + $0x230] sm:$0xff] }
  0x6e   : > { %491 = vst.msk [vmem:[#allocation2 + $0x68] sm:$0xff] %vm488_vm0, %v457_v22 }
  0x6f   : > { %510 = vst.msk [vmem:[#allocation2 + $0x190] sm:$0xff] %vm488_vm0, %v476_v26  ;;  %v7196_v30 = vld [vmem:[#allocation2 + $0x14f] sm:$0xff] }
  0x70   : > { %492 = vst.msk [vmem:[#allocation2 + $0x70] sm:$0xff] %vm488_vm0, %v458_v27  ;;  %v7212_v35 = vld [vmem:[#allocation2 + $0x167] sm:$0xff] }
  0x71   : > { %v7179_v23 = vld [vmem:[#allocation2 + $0x48] sm:$0xff]  ;;  %511 = vst.msk [vmem:[#allocation2 + $0x1a8] sm:$0xff] %vm488_vm0, %v477_v31 }
  0x72   : > { %v7181_v24 = vld [vmem:[#allocation2 + $0x47] sm:$0xff]  ;;  %6150 = vmatmul.msk.f32.gmra.mxu0 %vm488_vm0, %v7179_v23  ;;  %493 = vst.msk [vmem:[#allocation2 + $0x88] sm:$0xff] %vm488_vm0, %v459_v32  ;;  %v7228_v40 = vld [vmem:[#allocation2 + $0x16f] sm:$0xff] }
  0x73   : > { %6186 = vmatmul.msk.f32.gmra.mxu1 %vm488_vm0, %v7181_v24  ;;  %v7191_v28 = vld [vmem:[#allocation2 + $0x50] sm:$0xff]  ;;  %512 = vst.msk [vmem:[#allocation2 + $0x1b0] sm:$0xff] %vm488_vm0, %v478_v36 }
  0x74   : > { %v7193_v29 = vld [vmem:[#allocation2 + $0x4f] sm:$0xff]  ;;  %494 = vst.msk [vmem:[#allocation2 + $0x90] sm:$0xff] %vm488_vm0, %v460_v37  ;;  %v7244_v45 = vld [vmem:[#allocation2 + $0x187] sm:$0xff] }
  0x75   : > { %6181 = vmatmul.msk.f32.gmra.mxu3 %vm488_vm0, %v675_v25  ;;  %v7207_v33 = vld [vmem:[#allocation2 + $0x68] sm:$0xff]  ;;  %513 = vst.msk [vmem:[#allocation2 + $0x1c8] sm:$0xff] %vm488_vm0, %v479_v41 }
  0x76   : > { %v7209_v34 = vld [vmem:[#allocation2 + $0x67] sm:$0xff]  ;;  %495 = vst.msk [vmem:[#allocation2 + $0xa8] sm:$0xff] %vm488_vm0, %v461_v42  ;;  %v7260_v50 = vld [vmem:[#allocation2 + $0x18f] sm:$0xff]  ;;  %v6255_v42 = vld [vmem:[%s9716_s3 + $0x18] sm:$0xff] }
  0x77   : > { %v7223_v38 = vld [vmem:[#allocation2 + $0x70] sm:$0xff]  ;;  %514 = vst.msk [vmem:[#allocation2 + $0x1d0] sm:$0xff] %vm488_vm0, %v480_v46  ;;  %1613 = vmatpush.msra.mxu3 %v6255_v42 }
  0x78   : > { %v7225_v39 = vld [vmem:[#allocation2 + $0x6f] sm:$0xff]  ;;  %496 = vst.msk [vmem:[#allocation2 + $0xb0] sm:$0xff] %vm488_vm0, %v462_v47  ;;  %v7276_v56 = vld [vmem:[#allocation2 + $0x1a7] sm:$0xff] }
  0x79   : > { %v7239_v43 = vld [vmem:[#allocation2 + $0x88] sm:$0xff]  ;;  %515 = vst.msk [vmem:[#allocation2 + $0x1e8] sm:$0xff] %vm488_vm0, %v481_v51 }
  0x7a   : > { %6151 = vmatmul.msk.f32.gmra.mxu0 %vm488_vm0, %v7191_v28  ;;  %v7241_v44 = vld [vmem:[#allocation2 + $0x87] sm:$0xff]  ;;  %497 = vst.msk [vmem:[#allocation2 + $0xc8] sm:$0xff] %vm488_vm0, %v463_v52  ;;  %v7293_v0 = vld [vmem:[#allocation2 + $0x1af] sm:$0xff] }
  0x7b   : > { %6187 = vmatmul.msk.f32.gmra.mxu1 %vm488_vm0, %v7193_v29  ;;  %v7255_v48 = vld [vmem:[#allocation2 + $0x90] sm:$0xff]  ;;  %500 = vst.msk [vmem:[#allocation2 + $0xf0] sm:$0xff] %vm488_vm0, %v466_v55 }
  0x7c   : > { %v7257_v49 = vld [vmem:[#allocation2 + $0x8f] sm:$0xff]  ;;  %516 = vst.msk [vmem:[#allocation2 + $0x1f0] sm:$0xff] %vm488_vm0, %v482_v57  ;;  %v7307_v7 = vld [vmem:[#allocation2 + $0x1c7] sm:$0xff] }
  0x7d   : > { %6203 = vmatmul.msk.f32.vlgmr.msrb.gmra.mxu3 %vm488_vm0, %v7196_v30  ;;  %v650_v53 = vld [vmem:[#allocation2 + $0xa8] sm:$0xff]  ;;  %498 = vst.msk [vmem:[#allocation2 + $0xd0] sm:$0xff] %vm488_vm0, %v464_v58 }
  0x7e   : > { %v7271_v54 = vld [vmem:[#allocation2 + $0xa7] sm:$0xff]  ;;  %501 = vst.msk [vmem:[#allocation2 + $0x108] sm:$0xff] %vm488_vm0, %v467_v62  ;;  %v7322_v18 = vld [vmem:[#allocation2 + $0x1cf] sm:$0xff] }
  0x7f   : > { %v651_v59 = vld [vmem:[#allocation2 + $0xb0] sm:$0xff]  ;;  %502 = vst.msk [vmem:[#allocation2 + $0x110] sm:$0xff] %vm488_vm0, %v468_v63  ;;  %v7382_v62 = vld [vmem:[#allocation2 + $0x227] sm:$0xff] }
  0x80   : > { %v7286_v60 = vld [vmem:[#allocation2 + $0xaf] sm:$0xff]  ;;  %517 = vst.msk [vmem:[#allocation2 + $0x208] sm:$0xff] %vm488_vm0, %v483_v1  ;;  %v7333_v22 = vld [vmem:[#allocation2 + $0x1e7] sm:$0xff] }
  0x81   : > { %v652_v4 = vld [vmem:[#allocation2 + $0xc8] sm:$0xff]  ;;  %499 = vst.msk [vmem:[#allocation2 + $0xe8] sm:$0xff] %vm488_vm0, %v465_v3 }
  0x82   : > { %6152 = vmatmul.msk.f32.gmra.mxu0 %vm488_vm0, %v7207_v33  ;;  %v1159_v61 = vld [vmem:[#allocation2 + $0xf1] sm:$0xff]  ;;  %v7304_v5 = vld [vmem:[#allocation2 + $0xc7] sm:$0xff]  ;;  %518 = vst.msk [vmem:[#allocation2 + $0x210] sm:$0xff] %vm488_vm0, %v484_v12 }
  0x83   : > { %6188 = vmatmul.msk.f32.gmra.mxu1 %vm488_vm0, %v7209_v34  ;;  %6234 = vmatmul.msk.f32.vlgmr.msra.gmra.mxu2 %vm488_vm0, %v1159_v61  ;;  %503 = vst.msk [vmem:[#allocation2 + $0x128] sm:$0xff] %vm488_vm0, %v469_v16  ;;  %v655_v25 = vld [vmem:[#allocation2 + $0xf0] sm:$0xff] }
  0x84   : > { %v653_v13 = vld [vmem:[#allocation2 + $0xd0] sm:$0xff]  ;;  %504 = vst.msk [vmem:[#allocation2 + $0x130] sm:$0xff] %vm488_vm0, %v470_v17 }
  0x85   : > { %6204 = vmatmul.msk.f32.gmra.mxu3 %vm488_vm0, %v7212_v35  ;;  %v7317_v14 = vld [vmem:[#allocation2 + $0xcf] sm:$0xff]  ;;  %v7353_v37 = vld [vmem:[#allocation2 + $0x107] sm:$0xff] }
  0x86   : > { %v1160_v6 = vld [vmem:[#allocation2 + $0x109] sm:$0xff]  ;;  %v1161_v15 = vld [vmem:[#allocation2 + $0x111] sm:$0xff] }
  0x87   : > { %v7345_v32 = vld [vmem:[#allocation2 + $0x1ef] sm:$0xff]  ;;  %v7360_v47 = vld [vmem:[#allocation2 + $0x207] sm:$0xff] }
  0x88   : > { %v654_v19 = vld [vmem:[#allocation2 + $0xe8] sm:$0xff]  ;;  %v657_v51 = vld [vmem:[#allocation2 + $0x110] sm:$0xff] }
  0x89   : > { %v7331_v20 = vld [vmem:[#allocation2 + $0xe7] sm:$0xff]  ;;  %v7341_v26 = vld [vmem:[#allocation2 + $0xef] sm:$0xff] }
  0x8a   : > { %6153 = vmatmul.msk.f32.gmra.mxu0 %vm488_vm0, %v7223_v38  ;;  %v656_v36 = vld [vmem:[#allocation2 + $0x108] sm:$0xff]  ;;  %v1175_v2 = vld [vmem:[#allocation2 + $0x1f1] sm:$0xff] }
  0x8b   : > { %6189 = vmatmul.msk.f32.gmra.mxu1 %vm488_vm0, %v7225_v39  ;;  %6235 = vmatmul.msk.f32.gmra.mxu2 %vm488_vm0, %v1160_v6  ;;  %v1162_v21 = vld [vmem:[#allocation2 + $0x129] sm:$0xff]  ;;  %v1163_v31 = vld [vmem:[#allocation2 + $0x131] sm:$0xff] }
  0x8c   : > { %v1164_v41 = vld [vmem:[#allocation2 + $0x149] sm:$0xff] }
  0x8d   : > { %6205 = vmatmul.msk.f32.gmra.mxu3 %vm488_vm0, %v7228_v40  ;;  %v7368_v52 = vld [vmem:[#allocation2 + $0x10f] sm:$0xff] }
  0x8e   : > { %v7370_v55 = vld [vmem:[#allocation2 + $0x20f] sm:$0xff] }
  0x8f   : > { %v658_v58 = vld [vmem:[#allocation2 + $0x128] sm:$0xff]  ;;  %v659_v1 = vld [vmem:[#allocation2 + $0x130] sm:$0xff] }
  0x90   : > { %v1166_v61 = vld [vmem:[#allocation2 + $0x169] sm:$0xff] }
  0x91   : > { %v7392_v3 = vld [vmem:[#allocation2 + $0x12f] sm:$0xff] }
  0x92   : > { %6154 = vmatmul.msk.f32.gmra.mxu0 %vm488_vm0, %v7239_v43  ;;  %v7343_v27 = vpop.f32.mrf.mxu0  ;;  %v7394_v6 = vld [vmem:[#allocation2 + $0x22f] sm:$0xff] }
  0x93   : > { %6190 = vmatmul.msk.f32.gmra.mxu1 %vm488_vm0, %v7241_v44  ;;  %6236 = vmatmul.msk.f32.gmra.mxu2 %vm488_vm0, %v1161_v15  ;;  %v7404_v15 = vld [vmem:[#allocation2 + $0x147] sm:$0xff] }
  0x94   : > { %v1168_v17 = vld [vmem:[#allocation2 + $0x189] sm:$0xff] }
  0x95   : > { %6206 = vmatmul.msk.f32.gmra.mxu3 %vm488_vm0, %v7244_v45 }
  0x9a   : > { %6155 = vmatmul.msk.f32.gmra.mxu0 %vm488_vm0, %v7255_v48  ;;  %v7358_v46 = vpop.f32.mrf.mxu0 }
  0x9b   : > { %6191 = vmatmul.msk.f32.gmra.mxu1 %vm488_vm0, %v7257_v49  ;;  %6237 = vmatmul.msk.f32.gmra.mxu2 %vm488_vm0, %v1162_v21  ;;  %v661_v21 = vld [vmem:[#allocation2 + $0x150] sm:$0xff] }
  0x9d   : > { %6207 = vmatmul.msk.f32.gmra.mxu3 %vm488_vm0, %v7260_v50 }
  0xa2   : > { %6156 = vmatmul.msk.f32.gmra.mxu0 %vm488_vm0, %v650_v53  ;;  %v1165_v53 = vld [vmem:[#allocation2 + $0x151] sm:$0xff]  ;;  %v7375_v57 = vpop.f32.mrf.mxu0 }
  0xa3   : > { %6192 = vmatmul.msk.f32.gmra.mxu1 %vm488_vm0, %v7271_v54  ;;  %6238 = vmatmul.msk.f32.gmra.mxu2 %vm488_vm0, %v1163_v31  ;;  %v1169_v31 = vld [vmem:[#allocation2 + $0x191] sm:$0xff] }
  0xa5   : > { %6208 = vmatmul.msk.f32.gmra.mxu3 %vm488_vm0, %v7276_v56 }
  0xaa   : > { %6157 = vmatmul.msk.f32.gmra.mxu0 %vm488_vm0, %v651_v59  ;;  %v7380_v59 = vld [vmem:[#allocation2 + $0x127] sm:$0xff]  ;;  %v7390_v63 = vpop.f32.mrf.mxu0 }
  0xab   : > { %6193 = vmatmul.msk.f32.gmra.mxu1 %vm488_vm0, %v7286_v60  ;;  %6239 = vmatmul.msk.f32.gmra.mxu2 %vm488_vm0, %v1164_v41  ;;  %v662_v41 = vld [vmem:[#allocation2 + $0x168] sm:$0xff] }
  0xad   : > { %6209 = vmatmul.msk.f32.gmra.mxu3 %vm488_vm0, %v7293_v0 }
  0xb2   : > { %6158 = vmatmul.msk.f32.gmra.mxu0 %vm488_vm0, %v652_v4  ;;  %v1167_v4 = vld [vmem:[#allocation2 + $0x171] sm:$0xff] }
  0xb3   : > { %6194 = vmatmul.msk.f32.gmra.mxu1 %vm488_vm0, %v7304_v5  ;;  %6240 = vmatmul.msk.f32.gmra.mxu2 %vm488_vm0, %v1165_v53  ;;  %v663_v53 = vld [vmem:[#allocation2 + $0x170] sm:$0xff] }
  0xb5   : > { %6210 = vmatmul.msk.f32.gmra.mxu3 %vm488_vm0, %v7307_v7 }
  0xba   : > { %6159 = vmatmul.msk.f32.gmra.mxu0 %vm488_vm0, %v653_v13  ;;  %v660_v13 = vld [vmem:[#allocation2 + $0x148] sm:$0xff] }
  0xbb   : > { %6195 = vmatmul.msk.f32.gmra.mxu1 %vm488_vm0, %v7317_v14  ;;  %6241 = vmatmul.msk.f32.gmra.mxu2 %vm488_vm0, %v1166_v61  ;;  %v1171_v61 = vld [vmem:[#allocation2 + $0x1b1] sm:$0xff] }
  0xbd   : > { %6211 = vmatmul.msk.f32.gmra.mxu3 %vm488_vm0, %v7322_v18 }
  0xc2   : > { %6160 = vmatmul.msk.f32.gmra.mxu0 %vm488_vm0, %v654_v19 }
  0xc3   : > { %6196 = vmatmul.msk.f32.gmra.mxu1 %vm488_vm0, %v7331_v20  ;;  %6242 = vmatmul.msk.f32.gmra.mxu2 %vm488_vm0, %v1167_v4 }
  0xc5   : > { %6212 = vmatmul.msk.f32.gmra.mxu3 %vm488_vm0, %v7333_v22 }
  0xca   : > { %6161 = vmatmul.msk.f32.gmra.mxu0 %vm488_vm0, %v655_v25 }
  0xcb   : > { %6197 = vmatmul.msk.f32.gmra.mxu1 %vm488_vm0, %v7341_v26  ;;  %6243 = vmatmul.msk.f32.gmra.mxu2 %vm488_vm0, %v1168_v17 }
  0xcd   : > { %6213 = vmatmul.msk.f32.gmra.mxu3 %vm488_vm0, %v7345_v32 }
  0xd2   : > { %6162 = vmatmul.msk.f32.gmra.mxu0 %vm488_vm0, %v656_v36 }
  0xd3   : > { %6198 = vmatmul.msk.f32.gmra.mxu1 %vm488_vm0, %v7353_v37  ;;  %6244 = vmatmul.msk.f32.gmra.mxu2 %vm488_vm0, %v1169_v31 }
  0xd5   : > { %6214 = vmatmul.msk.f32.gmra.mxu3 %vm488_vm0, %v7360_v47 }
  0xda   : > { %6163 = vmatmul.msk.f32.gmra.mxu0 %vm488_vm0, %v657_v51  ;;  %v1170_v51 = vld [vmem:[#allocation2 + $0x1a9] sm:$0xff] }
  0xdb   : > { %6199 = vmatmul.msk.f32.gmra.mxu1 %vm488_vm0, %v7368_v52  ;;  %6245 = vmatmul.msk.f32.gmra.mxu2 %vm488_vm0, %v1170_v51 }
  0xdd   : > { %6215 = vmatmul.msk.f32.gmra.mxu3 %vm488_vm0, %v7370_v55 }
  0xe2   : > { %6164 = vmatmul.msk.f32.gmra.mxu0 %vm488_vm0, %v658_v58 }
  0xe3   : > { %6200 = vmatmul.msk.f32.gmra.mxu1 %vm488_vm0, %v7380_v59  ;;  %6246 = vmatmul.msk.f32.gmra.mxu2 %vm488_vm0, %v1171_v61 }
  0xe5   : > { %6216 = vmatmul.msk.f32.gmra.mxu3 %vm488_vm0, %v7382_v62 }
  0xea   : > { %6165 = vmatmul.msk.f32.gmra.mxu0 %vm488_vm0, %v659_v1  ;;  %v664_v1 = vld [vmem:[#allocation2 + $0x188] sm:$0xff] }
  0xeb   : > { %6201 = vmatmul.msk.f32.gmra.mxu1 %vm488_vm0, %v7392_v3 }
  0xed   : > { %6217 = vmatmul.msk.f32.gmra.mxu3 %vm488_vm0, %v7394_v6 }
  0xef   : > { %v7402_v12 = vpop.f32.mrf.mxu0 }
  0xf0   : > { %v7406_v16 = vpop.f32.mrf.mxu3 }
  0xf1   : > { %9732 = vst [vmem:[#allocation4_spill] sm:$0xff] %v7406_v16 }
  0xf2   : > { %6166 = vmatmul.msk.f32.gmra.mxu0 %vm488_vm0, %v660_v13  ;;  %v1172_v13 = vld [vmem:[#allocation2 + $0x1c9] sm:$0xff] }
  0xf3   : > { %6202 = vmatmul.msk.f32.gmra.mxu1 %vm488_vm0, %v7404_v15  ;;  %6247 = vmatmul.msk.f32.gmra.mxu2 %vm488_vm0, %v1172_v13 }
  0xf5   : > { %6256 = vmatmul.msk.f32.vlgmr.msra.gmra.mxu3 %vm488_vm0, %v7105_v9 }
  0xf7   : > { %v7414_v19 = vpop.f32.mrf.mxu0 }
  0xf8   : > { %9733 = vst [vmem:[#allocation5_spill] sm:$0xff] %v7414_v19  ;;  %v7416_v25 = vpop.f32.mrf.mxu3 }
  0xf9   : > { %9734 = vst [vmem:[#allocation6_spill] sm:$0xff] %v7416_v25 }
  0xfa   : > { %6167 = vmatmul.msk.f32.gmra.mxu0 %vm488_vm0, %v661_v21  ;;  %v665_v21 = vld [vmem:[#allocation2 + $0x190] sm:$0xff] }
  0xfd   : > { %6257 = vmatmul.msk.f32.gmra.mxu3 %vm488_vm0, %v7133_v11 }
  0xff   : > { %v7422_v36 = vpop.f32.mrf.mxu0 }
 0x100   : > { %9735 = vst [vmem:[#allocation7_spill] sm:$0xff] %v7422_v36  ;;  %v7424_v42 = vpop.f32.mrf.mxu3  ;;  %v7611_v36 = vld [vmem:[#allocation2 + $0x89] sm:$0xff] }
 0x101   : > { %9736 = vst [vmem:[#allocation8_spill] sm:$0xff] %v7424_v42  ;;  %v1179_v42 = vld [vmem:[#allocation2 + $0x231] sm:$0xff] }
 0x102   : > { %6168 = vmatmul.msk.f32.gmra.mxu0 %vm488_vm0, %v662_v41  ;;  %v1173_v41 = vld [vmem:[#allocation2 + $0x1d1] sm:$0xff] }
 0x103   : > { %6248 = vmatmul.msk.f32.gmra.mxu2 %vm488_vm0, %v1173_v41 }
 0x105   : > { %6258 = vmatmul.msk.f32.gmra.mxu3 %vm488_vm0, %v7181_v24 }
 0x107   : > { %v7430_v9 = vpop.f32.mrf.mxu0 }
 0x108   : > { %9737 = vst [vmem:[#allocation9_spill] sm:$0xff] %v7430_v9  ;;  %v7432_v58 = vpop.f32.mrf.mxu3 }
 0x109   : > { %9738 = vst [vmem:[#allocation10_spill] sm:$0xff] %v7432_v58  ;;  %v1178_v58 = vld [vmem:[#allocation2 + $0x229] sm:$0xff] }
 0x10a   : > { %6169 = vmatmul.msk.f32.gmra.mxu0 %vm488_vm0, %v663_v53  ;;  %v666_v53 = vld [vmem:[#allocation2 + $0x1a8] sm:$0xff] }
 0x10d   : > { %6259 = vmatmul.msk.f32.gmra.mxu3 %vm488_vm0, %v7193_v29 }
 0x10f   : > { %v7438_v11 = vpop.f32.mrf.mxu0 }
 0x110   : > { %9739 = vst [vmem:[#allocation11_spill] sm:$0xff] %v7438_v11  ;;  %v7440_v4 = vpop.f32.mrf.mxu3 }
 0x111   : > { %9740 = vst [vmem:[#allocation12_spill] sm:$0xff] %v7440_v4  ;;  %v1177_v4 = vld [vmem:[#allocation2 + $0x211] sm:$0xff] }
 0x112   : > { %6170 = vmatmul.msk.f32.gmra.mxu0 %vm488_vm0, %v664_v1  ;;  %v1174_v1 = vld [vmem:[#allocation2 + $0x1e9] sm:$0xff] }
 0x113   : > { %6249 = vmatmul.msk.f32.gmra.mxu2 %vm488_vm0, %v1174_v1 }
 0x115   : > { %6260 = vmatmul.msk.f32.gmra.mxu3 %vm488_vm0, %v7209_v34 }
 0x117   : > { %v7446_v17 = vpop.f32.mrf.mxu0 }
 0x118   : > { %9741 = vst [vmem:[#allocation13_spill] sm:$0xff] %v7446_v17  ;;  %v7448_v31 = vpop.f32.mrf.mxu3  ;;  %v7571_v17 = vld [vmem:[#allocation2 + $0x51] sm:$0xff] }
 0x119   : > { %9742 = vst [vmem:[#allocation14_spill] sm:$0xff] %v7448_v31  ;;  %v1176_v31 = vld [vmem:[#allocation2 + $0x209] sm:$0xff] }
 0x11a   : > { %6171 = vmatmul.msk.f32.gmra.mxu0 %vm488_vm0, %v665_v21  ;;  %v667_v21 = vld [vmem:[#allocation2 + $0x1b0] sm:$0xff] }
 0x11b   : > { %6250 = vmatmul.msk.f32.gmra.mxu2 %vm488_vm0, %v1175_v2 }
 0x11d   : > { %6261 = vmatmul.msk.f32.gmra.mxu3 %vm488_vm0, %v7225_v39 }
 0x11f   : > { %v7454_v51 = vpop.f32.mrf.mxu0 }
 0x120   : > { %9743 = vst [vmem:[#allocation15_spill] sm:$0xff] %v7454_v51  ;;  %v7456_v61 = vpop.f32.mrf.mxu3 }
 0x121   : > { %9744 = vst [vmem:[#allocation16_spill] sm:$0xff] %v7456_v61 }
 0x122   : > { %6172 = vmatmul.msk.f32.gmra.mxu0 %vm488_vm0, %v666_v53  ;;  %v668_v53 = vld [vmem:[#allocation2 + $0x1c8] sm:$0xff] }
 0x123   : > { %6251 = vmatmul.msk.f32.gmra.mxu2 %vm488_vm0, %v1176_v31 }
 0x125   : > { %6262 = vmatmul.msk.f32.gmra.mxu3 %vm488_vm0, %v7241_v44 }
 0x127   : > { %v7462_v13 = vpop.f32.mrf.mxu0 }
 0x128   : > { %9745 = vst [vmem:[#allocation17_spill] sm:$0xff] %v7462_v13  ;;  %v7464_v41 = vpop.f32.mrf.mxu3 }
 0x129   : > { %9746 = vst [vmem:[#allocation18_spill] sm:$0xff] %v7464_v41 }
 0x12a   : > { %6173 = vmatmul.msk.f32.gmra.mxu0 %vm488_vm0, %v667_v21  ;;  %v669_v21 = vld [vmem:[#allocation2 + $0x1d0] sm:$0xff] }
 0x12b   : > { %6252 = vmatmul.msk.f32.gmra.mxu2 %vm488_vm0, %v1177_v4 }
 0x12d   : > { %6263 = vmatmul.msk.f32.gmra.mxu3 %vm488_vm0, %v7257_v49 }
 0x12f   : > { %v7470_v61 = vpop.f32.mrf.mxu0 }
 0x130   : > { %9747 = vst [vmem:[#allocation19_spill] sm:$0xff] %v7470_v61  ;;  %v7472_v1 = vpop.f32.mrf.mxu3  ;;  %v7559_v61 = vpop.f32.mrf.mxu2 }
 0x131   : > { %9748 = vst [vmem:[#allocation20_spill] sm:$0xff] %v7472_v1 }
 0x132   : > { %6174 = vmatmul.msk.f32.gmra.mxu0 %vm488_vm0, %v668_v53  ;;  %v670_v53 = vld [vmem:[#allocation2 + $0x1e8] sm:$0xff]  ;;  %9767 = vst [vmem:[#allocation39_spill] sm:$0xff] %v7559_v61 }
 0x133   : > { %6253 = vmatmul.msk.f32.gmra.mxu2 %vm488_vm0, %v1178_v58 }
 0x135   : > { %6264 = vmatmul.msk.f32.gmra.mxu3 %vm488_vm0, %v7271_v54 }
 0x137   : > { %v7478_v41 = vpop.f32.mrf.mxu0 }
 0x138   : > { %9749 = vst [vmem:[#allocation21_spill] sm:$0xff] %v7478_v41  ;;  %v7480_v2 = vpop.f32.mrf.mxu3  ;;  %v7557_v41 = vld [vmem:[#allocation2 + $0x49] sm:$0xff] }
 0x139   : > { %9750 = vst [vmem:[#allocation22_spill] sm:$0xff] %v7480_v2 }
 0x13a   : > { %6175 = vmatmul.msk.f32.gmra.mxu0 %vm488_vm0, %v669_v21  ;;  %v671_v21 = vld [vmem:[#allocation2 + $0x1f0] sm:$0xff] }
 0x13b   : > { %6254 = vmatmul.msk.f32.gmra.mxu2 %vm488_vm0, %v1179_v42  ;;  %v673_v42 = vld [vmem:[#allocation2 + $0x210] sm:$0xff] }
 0x13d   : > { %6265 = vmatmul.msk.f32.gmra.mxu3 %vm488_vm0, %v7286_v60 }
 0x13f   : > { %v7486_v1 = vpop.f32.mrf.mxu0 }
 0x140   : > { %9751 = vst [vmem:[#allocation23_spill] sm:$0xff] %v7486_v1  ;;  %v7488_v31 = vpop.f32.mrf.mxu3 }
 0x141   : > { %9752 = vst [vmem:[#allocation24_spill] sm:$0xff] %v7488_v31 }
 0x142   : > { %6176 = vmatmul.msk.f32.gmra.mxu0 %vm488_vm0, %v670_v53  ;;  %v672_v53 = vld [vmem:[#allocation2 + $0x208] sm:$0xff] }
 0x145   : > { %6266 = vmatmul.msk.f32.gmra.mxu3 %vm488_vm0, %v7304_v5 }
 0x147   : > { %v7494_v2 = vpop.f32.mrf.mxu0 }
 0x148   : > { %9753 = vst [vmem:[#allocation25_spill] sm:$0xff] %v7494_v2  ;;  %v7496_v4 = vpop.f32.mrf.mxu3 }
 0x149   : > { %9754 = vst [vmem:[#allocation26_spill] sm:$0xff] %v7496_v4  ;;  %v6292_v4 = vld [vmem:[%s9716_s3 + $0x20] sm:$0xff] }
 0x14a   : > { %6177 = vmatmul.msk.f32.gmra.mxu0 %vm488_vm0, %v671_v21 }
 0x14b   : > { %1920 = vmatpush.msra.mxu0 %v6292_v4 }
 0x14d   : > { %6267 = vmatmul.msk.f32.gmra.mxu3 %vm488_vm0, %v7317_v14 }
 0x14f   : > { %v7502_v31 = vpop.f32.mrf.mxu0 }
 0x150   : > { %9755 = vst [vmem:[#allocation27_spill] sm:$0xff] %v7502_v31  ;;  %v7504_v58 = vpop.f32.mrf.mxu3 }
 0x151   : > { %9756 = vst [vmem:[#allocation28_spill] sm:$0xff] %v7504_v58 }
 0x152   : > { %6178 = vmatmul.msk.f32.gmra.mxu0 %vm488_vm0, %v672_v53  ;;  %v1144_v53 = vld [vmem:[#allocation2 + $0x9] sm:$0xff] }
 0x155   : > { %6268 = vmatmul.msk.f32.gmra.mxu3 %vm488_vm0, %v7331_v20 }
 0x157   : > { %v7512_v21 = vpop.f32.mrf.mxu0 }
 0x158   : > { %9757 = vst [vmem:[#allocation29_spill] sm:$0xff] %v7512_v21  ;;  %v7514_v2 = vpop.f32.mrf.mxu3  ;;  %v1145_v21 = vld [vmem:[#allocation2 + $0x11] sm:$0xff] }
 0x159   : > { %9758 = vst [vmem:[#allocation30_spill] sm:$0xff] %v7514_v2  ;;  %v7535_v2 = vld [vmem:[#allocation2 + $0x29] sm:$0xff] }
 0x15a   : > { %6179 = vmatmul.msk.f32.gmra.mxu0 %vm488_vm0, %v673_v42 }
 0x15d   : > { %6269 = vmatmul.msk.f32.gmra.mxu3 %vm488_vm0, %v7341_v26 }
 0x15f   : > { %v7519_v58 = vpop.f32.mrf.mxu0 }
 0x160   : > { %9759 = vst [vmem:[#allocation31_spill] sm:$0xff] %v7519_v58  ;;  %v7521_v31 = vpop.f32.mrf.mxu3 }
 0x161   : > { %9760 = vst [vmem:[#allocation32_spill] sm:$0xff] %v7521_v31 }
 0x162   : > { %6219 = vmatmul.msk.f32.vlgmr.msrb.gmra.mxu0 %vm488_vm0, %v1144_v53 }
 0x165   : > { %6270 = vmatmul.msk.f32.gmra.mxu3 %vm488_vm0, %v7353_v37 }
 0x167   : > { %v7526_v4 = vpop.f32.mrf.mxu0 }
 0x168   : > { %9761 = vst [vmem:[#allocation33_spill] sm:$0xff] %v7526_v4  ;;  %v7528_v1 = vpop.f32.mrf.mxu3  ;;  %v7545_v4 = vld [vmem:[#allocation2 + $0x31] sm:$0xff] }
 0x169   : > { %9762 = vst [vmem:[#allocation34_spill] sm:$0xff] %v7528_v1  ;;  %v7597_v1 = vld [vmem:[#allocation2 + $0x71] sm:$0xff] }
 0x16a   : > { %6220 = vmatmul.msk.f32.gmra.mxu0 %vm488_vm0, %v1145_v21 }
 0x16d   : > { %6271 = vmatmul.msk.f32.gmra.mxu3 %vm488_vm0, %v7368_v52 }
 0x16f   : > { %v7533_v42 = vpop.f32.mrf.mxu0 }
 0x170   : > { %9763 = vst [vmem:[#allocation35_spill] sm:$0xff] %v7533_v42  ;;  %v7537_v31 = vpop.f32.mrf.mxu3  ;;  %v7551_v42 = vpop.f32.mrf.mxu1 }
 0x171   : > { %9764 = vst [vmem:[#allocation36_spill] sm:$0xff] %v7537_v31  ;;  %v7583_v31 = vld [vmem:[#allocation2 + $0x69] sm:$0xff] }
 0x172   : > { %6221 = vmatmul.msk.f32.gmra.mxu0 %vm488_vm0, %v7535_v2 }
 0x175   : > { %6272 = vmatmul.msk.f32.gmra.mxu3 %vm488_vm0, %v7380_v59 }
 0x177   : > { %v7543_v53 = vpop.f32.mrf.mxu0 }
 0x178   : > { %9765 = vst [vmem:[#allocation37_spill] sm:$0xff] %v7543_v53  ;;  %v7547_v21 = vpop.f32.mrf.mxu3  ;;  %v7567_v53 = vpop.f32.mrf.mxu1 }
 0x17a   : > { %6222 = vmatmul.msk.f32.gmra.mxu0 %vm488_vm0, %v7545_v4 }
 0x17d   : > { %6273 = vmatmul.msk.f32.gmra.mxu3 %vm488_vm0, %v7392_v3 }
 0x17f   : > { %v7555_v58 = vpop.f32.mrf.mxu0 }
 0x180   : > { %9766 = vst [vmem:[#allocation38_spill] sm:$0xff] %v7555_v58  ;;  %v7561_v13 = vpop.f32.mrf.mxu3  ;;  %v7575_v58 = vpop.f32.mrf.mxu2 }
 0x181   : > { %9769 = vst [vmem:[#allocation41_spill] sm:$0xff] %v7575_v58  ;;  %v7587_v9 = vpop.f32.mrf.mxu1 }
 0x182   : > { %6223 = vmatmul.msk.f32.gmra.mxu0 %vm488_vm0, %v7557_v41 }
 0x185   : > { %6274 = vmatmul.msk.f32.gmra.mxu3 %vm488_vm0, %v7404_v15 }
 0x187   : > { %v7569_v51 = vpop.f32.mrf.mxu0 }
 0x188   : > { %9768 = vst [vmem:[#allocation40_spill] sm:$0xff] %v7569_v51  ;;  %v7573_v11 = vpop.f32.mrf.mxu3  ;;  %v7591_v51 = vpop.f32.mrf.mxu2 }
 0x189   : > { %9771 = vst [vmem:[#allocation43_spill] sm:$0xff] %v7591_v51 }
 0x18a   : > { %6224 = vmatmul.msk.f32.gmra.mxu0 %vm488_vm0, %v7571_v17 }
 0x18d   : > { %6275 = vmatmul.msk.f32.gmra.mxu3 %vm488_vm0, %v7196_v30 }
 0x18f   : > { %v7581_v61 = vpop.f32.mrf.mxu0 }
 0x190   : > { %9770 = vst [vmem:[#allocation42_spill] sm:$0xff] %v7581_v61  ;;  %v7585_v25 = vpop.f32.mrf.mxu3  ;;  %v7603_v61 = vpop.f32.mrf.mxu1 }
 0x191   : > { %v7607_v16 = vpop.f32.mrf.mxu2 }
 0x192   : > { %6225 = vmatmul.msk.f32.gmra.mxu0 %vm488_vm0, %v7583_v31  ;;  %9774 = vst [vmem:[#allocation46_spill] sm:$0xff] %v7607_v16 }
 0x195   : > { %6276 = vmatmul.msk.f32.gmra.mxu3 %vm488_vm0, %v7212_v35 }
 0x197   : > { %v7595_v58 = vpop.f32.mrf.mxu0 }
 0x198   : > { %9772 = vst [vmem:[#allocation44_spill] sm:$0xff] %v7595_v58  ;;  %v7599_v30 = vpop.f32.mrf.mxu3  ;;  %v7617_v58 = vpop.f32.mrf.mxu1 }
 0x199   : > { %9773 = vst [vmem:[#allocation45_spill] sm:$0xff] %v7599_v30  ;;  %v7623_v30 = vld [vmem:[#allocation2 + $0x91] sm:$0xff] }
 0x19a   : > { %6226 = vmatmul.msk.f32.gmra.mxu0 %vm488_vm0, %v7597_v1  ;;  %9777 = vst [vmem:[#allocation49_spill] sm:$0xff] %v7617_v58  ;;  %v7637_v58 = vld [vmem:[#allocation2 + $0xa9] sm:$0xff] }
 0x19d   : > { %6277 = vmatmul.msk.f32.gmra.mxu3 %vm488_vm0, %v7228_v40  ;;  %v7625_v40 = vpop.f32.mrf.mxu2 }
 0x19e   : > { %9779 = vst [vmem:[#allocation51_spill] sm:$0xff] %v7625_v40 }
 0x19f   : > { %v7609_v51 = vpop.f32.mrf.mxu0 }
 0x1a0   : > { %9775 = vst [vmem:[#allocation47_spill] sm:$0xff] %v7609_v51  ;;  %v7613_v35 = vpop.f32.mrf.mxu3  ;;  %v7633_v51 = vpop.f32.mrf.mxu1 }
 0x1a1   : > { %9776 = vst [vmem:[#allocation48_spill] sm:$0xff] %v7613_v35 }
 0x1a2   : > { %6227 = vmatmul.msk.f32.gmra.mxu0 %vm488_vm0, %v7611_v36 }
 0x1a5   : > { %6278 = vmatmul.msk.f32.gmra.mxu3 %vm488_vm0, %v7244_v45  ;;  %v7644_v40 = vpop.f32.mrf.mxu2 }
 0x1a6   : > { %9782 = vst [vmem:[#allocation54_spill] sm:$0xff] %v7644_v40 }
 0x1a7   : > { %v7621_v19 = vpop.f32.mrf.mxu0 }
 0x1a8   : > { %9778 = vst [vmem:[#allocation50_spill] sm:$0xff] %v7621_v19  ;;  %v7627_v16 = vpop.f32.mrf.mxu3  ;;  %v6366_v19 = vld [vmem:[%s9716_s3 + $0x30] sm:$0xff]  ;;  %v7661_v40 = vpop.f32.mrf.mxu1 }
 0x1a9   : > { %2534 = vmatpush.msrb.mxu2 %v6366_v19  ;;  %v6329_v19 = vld [vmem:[%s9716_s3 + $0x28] sm:$0xff] }
 0x1aa   : > { %6228 = vmatmul.msk.f32.gmra.mxu0 %vm488_vm0, %v7623_v30  ;;  %6367 = vmatmul.msk.f32.vlgmr.msrb.gmra.mxu2 %vm488_vm0, %v7181_v24 }
 0x1ab   : > { %2227 = vmatpush.msrb.mxu1 %v6329_v19 }
 0x1ac   : > { %6330 = vmatmul.msk.f32.vlgmr.msrb.gmra.mxu1 %vm488_vm0, %v7535_v2 }
 0x1ad   : > { %6279 = vmatmul.msk.f32.gmra.mxu3 %vm488_vm0, %v7260_v50  ;;  %v7669_v24 = vpop.f32.mrf.mxu2 }
 0x1ae   : > { %9785 = vst [vmem:[#allocation57_spill] sm:$0xff] %v7669_v24  ;;  %v2684_v24 = vld [vmem:[#allocation2 + $0x88] sm:$0xff] }
 0x1af   : > { %v7635_v35 = vpop.f32.mrf.mxu0 }
 0x1b0   : > { %9780 = vst [vmem:[#allocation52_spill] sm:$0xff] %v7635_v35  ;;  %v7639_v45 = vpop.f32.mrf.mxu3  ;;  %v7654_v35 = vld [vmem:[#allocation2 + $0xb1] sm:$0xff]  ;;  %v7683_v2 = vpop.f32.mrf.mxu1 }
 0x1b1   : > { %9781 = vst [vmem:[#allocation53_spill] sm:$0xff] %v7639_v45 }
 0x1b2   : > { %6229 = vmatmul.msk.f32.gmra.mxu0 %vm488_vm0, %v7637_v58  ;;  %6368 = vmatmul.msk.f32.gmra.mxu2 %vm488_vm0, %v7193_v29  ;;  %v6403_v29 = vld [vmem:[%s9716_s3 + $0x38] sm:$0xff] }
 0x1b3   : > { %2841 = vmatpush.msrb.mxu3 %v6403_v29 }
 0x1b4   : > { %6331 = vmatmul.msk.f32.gmra.mxu1 %vm488_vm0, %v7545_v4 }
 0x1b5   : > { %6280 = vmatmul.msk.f32.gmra.mxu3 %vm488_vm0, %v7276_v56 }
 0x1b7   : > { %v7652_v50 = vpop.f32.mrf.mxu0 }
 0x1b8   : > { %9783 = vst [vmem:[#allocation55_spill] sm:$0xff] %v7652_v50  ;;  %v7656_v45 = vpop.f32.mrf.mxu3  ;;  %v7675_v50 = vld [vmem:[#allocation2 + $0xc9] sm:$0xff] }
 0x1b9   : > { %9784 = vst [vmem:[#allocation56_spill] sm:$0xff] %v7656_v45 }
 0x1ba   : > { %6230 = vmatmul.msk.f32.gmra.mxu0 %vm488_vm0, %v7654_v35  ;;  %6369 = vmatmul.msk.f32.gmra.mxu2 %vm488_vm0, %v7209_v34  ;;  %v7706_v34 = vpop.f32.mrf.mxu1 }
 0x1bc   : > { %6332 = vmatmul.msk.f32.gmra.mxu1 %vm488_vm0, %v7557_v41 }
 0x1bd   : > { %6281 = vmatmul.msk.f32.gmra.mxu3 %vm488_vm0, %v7293_v0  ;;  %v7692_v0 = vpop.f32.mrf.mxu2 }
 0x1be   : > { %9787 = vst [vmem:[#allocation59_spill] sm:$0xff] %v7692_v0 }
 0x1bf   : > { %v7673_v56 = vpop.f32.mrf.mxu0 }
 0x1c0   : > { %9786 = vst [vmem:[#allocation58_spill] sm:$0xff] %v7673_v56  ;;  %v7677_v45 = vpop.f32.mrf.mxu3  ;;  %v7696_v56 = vld [vmem:[#allocation2 + $0xd1] sm:$0xff] }
 0x1c2   : > { %6231 = vmatmul.msk.f32.gmra.mxu0 %vm488_vm0, %v7675_v50  ;;  %6370 = vmatmul.msk.f32.gmra.mxu2 %vm488_vm0, %v7225_v39  ;;  %v7729_v39 = vpop.f32.mrf.mxu1 }
 0x1c4   : > { %6333 = vmatmul.msk.f32.gmra.mxu1 %vm488_vm0, %v7571_v17 }
 0x1c5   : > { %6282 = vmatmul.msk.f32.gmra.mxu3 %vm488_vm0, %v7307_v7  ;;  %v6440_v7 = vld [vmem:[%s9716_s3 + $0x40] sm:$0xff]  ;;  %v7717_v0 = vpop.f32.mrf.mxu2 }
 0x1c6   : > { %3148 = vmatpush.msrb.mxu0 %v6440_v7  ;;  %9790 = vst [vmem:[#allocation62_spill] sm:$0xff] %v7717_v0 }
 0x1c7   : > { %v7694_v19 = vpop.f32.mrf.mxu0 }
 0x1c8   : > { %9788 = vst [vmem:[#allocation60_spill] sm:$0xff] %v7694_v19  ;;  %v7698_v4 = vpop.f32.mrf.mxu3  ;;  %v7715_v19 = vld [vmem:[#allocation2 + $0xe9] sm:$0xff] }
 0x1ca   : > { %6232 = vmatmul.msk.f32.gmra.mxu0 %vm488_vm0, %v7696_v56  ;;  %6371 = vmatmul.msk.f32.gmra.mxu2 %vm488_vm0, %v7241_v44  ;;  %v7749_v17 = vpop.f32.mrf.mxu1 }
 0x1cc   : > { %6334 = vmatmul.msk.f32.gmra.mxu1 %vm488_vm0, %v7583_v31 }
 0x1cd   : > { %6283 = vmatmul.msk.f32.gmra.mxu3 %vm488_vm0, %v7322_v18 }
 0x1cf   : > { %v7713_v29 = vpop.f32.mrf.mxu0 }
 0x1d0   : > { %9789 = vst [vmem:[#allocation61_spill] sm:$0xff] %v7713_v29  ;;  %v7719_v41 = vpop.f32.mrf.mxu3  ;;  %v7735_v29 = vpop.f32.mrf.mxu2 }
 0x1d1   : > { %9792 = vst [vmem:[#allocation64_spill] sm:$0xff] %v7735_v29 }
 0x1d2   : > { %6233 = vmatmul.msk.f32.gmra.mxu0 %vm488_vm0, %v7715_v19  ;;  %6372 = vmatmul.msk.f32.gmra.mxu2 %vm488_vm0, %v7257_v49 }
 0x1d4   : > { %6335 = vmatmul.msk.f32.gmra.mxu1 %vm488_vm0, %v7597_v1 }
 0x1d5   : > { %6284 = vmatmul.msk.f32.gmra.mxu3 %vm488_vm0, %v7333_v22 }
 0x1d7   : > { %v7731_v18 = vpop.f32.mrf.mxu0 }
 0x1d8   : > { %9791 = vst [vmem:[#allocation63_spill] sm:$0xff] %v7731_v18  ;;  %v7733_v7 = vpop.f32.mrf.mxu3  ;;  %v2680_v18 = vld [vmem:[#allocation2 + $0x48] sm:$0xff] }
 0x1da   : > { %6293 = vmatmul.msk.f32.vlgmr.msra.gmra.mxu0 %vm488_vm0, %v7103_v8  ;;  %6373 = vmatmul.msk.f32.gmra.mxu2 %vm488_vm0, %v7271_v54  ;;  %v7757_v8 = vpop.f32.mrf.mxu2 }
 0x1db   : > { %9794 = vst [vmem:[#allocation66_spill] sm:$0xff] %v7757_v8 }
 0x1dc   : > { %6336 = vmatmul.msk.f32.gmra.mxu1 %vm488_vm0, %v7611_v36 }
 0x1dd   : > { %6285 = vmatmul.msk.f32.gmra.mxu3 %vm488_vm0, %v7345_v32 }
 0x1df   : > { %v7745_v44 = vpop.f32.mrf.mxu0 }
 0x1e0   : > { %v7747_v22 = vpop.f32.mrf.mxu3 }
 0x1e1   : > { %9793 = vst [vmem:[#allocation65_spill] sm:$0xff] %v7747_v22 }
 0x1e2   : > { %6294 = vmatmul.msk.f32.gmra.mxu0 %vm488_vm0, %v7131_v10  ;;  %v7769_v10 = vpop.f32.mrf.mxu1  ;;  %6374 = vmatmul.msk.f32.gmra.mxu2 %vm488_vm0, %v7286_v60  ;;  %v7775_v54 = vpop.f32.mrf.mxu2 }
 0x1e3   : > { %9796 = vst [vmem:[#allocation68_spill] sm:$0xff] %v7775_v54  ;;  %v2682_v54 = vld [vmem:[#allocation2 + $0x68] sm:$0xff] }
 0x1e4   : > { %6337 = vmatmul.msk.f32.gmra.mxu1 %vm488_vm0, %v7623_v30  ;;  %v7813_v30 = vld [vmem:[#allocation2 + $0x247] sm:$0xff] }
 0x1e5   : > { %6286 = vmatmul.msk.f32.gmra.mxu3 %vm488_vm0, %v7360_v47 }
 0x1e7   : > { %v7761_v49 = vpop.f32.mrf.mxu0 }
 0x1e8   : > { %v7763_v32 = vpop.f32.mrf.mxu3 }
 0x1e9   : > { %9795 = vst [vmem:[#allocation67_spill] sm:$0xff] %v7763_v32  ;;  %v2390_v32 = vld [vmem:[#allocation2 + $0x14f] sm:$0xff] }
 0x1ea   : > { %6295 = vmatmul.msk.f32.gmra.mxu0 %vm488_vm0, %v7179_v23  ;;  %6375 = vmatmul.msk.f32.gmra.mxu2 %vm488_vm0, %v7304_v5  ;;  %v7787_v23 = vpop.f32.mrf.mxu1 }
 0x1ec   : > { %6338 = vmatmul.msk.f32.gmra.mxu1 %vm488_vm0, %v7637_v58  ;;  %v7829_v58 = vld [vmem:[#allocation2 + $0x24f] sm:$0xff] }
 0x1ed   : > { %6287 = vmatmul.msk.f32.gmra.mxu3 %vm488_vm0, %v7370_v55  ;;  %v7793_v55 = vpop.f32.mrf.mxu2 }
 0x1ee   : > { %9798 = vst [vmem:[#allocation70_spill] sm:$0xff] %v7793_v55  ;;  %v2681_v55 = vld [vmem:[#allocation2 + $0x50] sm:$0xff] }
 0x1ef   : > { %v7777_v47 = vpop.f32.mrf.mxu0 }
 0x1f0   : > { %v7779_v1 = vpop.f32.mrf.mxu3 }
 0x1f1   : > { %9797 = vst [vmem:[#allocation69_spill] sm:$0xff] %v7779_v1 }
 0x1f2   : > { %6296 = vmatmul.msk.f32.gmra.mxu0 %vm488_vm0, %v7191_v28  ;;  %6376 = vmatmul.msk.f32.gmra.mxu2 %vm488_vm0, %v7317_v14  ;;  %v7805_v28 = vpop.f32.mrf.mxu1 }
 0x1f4   : > { %6339 = vmatmul.msk.f32.gmra.mxu1 %vm488_vm0, %v7654_v35 }
 0x1f5   : > { %6288 = vmatmul.msk.f32.gmra.mxu3 %vm488_vm0, %v7382_v62  ;;  %v7811_v31 = vpop.f32.mrf.mxu2 }
 0x1f6   : > { %9801 = vst [vmem:[#allocation73_spill] sm:$0xff] %v7811_v31 }
 0x1f7   : > { %v7791_v60 = vpop.f32.mrf.mxu0 }
 0x1f8   : > { %v7795_v36 = vpop.f32.mrf.mxu3 }
 0x1f9   : > { %9799 = vst [vmem:[#allocation71_spill] sm:$0xff] %v7795_v36  ;;  %v7954_v36 = vld [vmem:[#allocation2 + $0x110] sm:$0xff] }
 0x1fa   : > { %6297 = vmatmul.msk.f32.gmra.mxu0 %vm488_vm0, %v7207_v33  ;;  %6377 = vmatmul.msk.f32.gmra.mxu2 %vm488_vm0, %v7331_v20 }
 0x1fc   : > { %6340 = vmatmul.msk.f32.gmra.mxu1 %vm488_vm0, %v7675_v50 }
 0x1fd   : > { %6289 = vmatmul.msk.f32.gmra.mxu3 %vm488_vm0, %v7394_v6  ;;  %v7827_v6 = vpop.f32.mrf.mxu1 }
 0x1fe   : > { %9803 = vst [vmem:[#allocation75_spill] sm:$0xff] %v7827_v6 }
 0x1ff   : > { %v7807_v5 = vpop.f32.mrf.mxu0 }
 0x200   : > { %v7809_v62 = vpop.f32.mrf.mxu3 }
 0x201   : > { %9800 = vst [vmem:[#allocation72_spill] sm:$0xff] %v7809_v62 }
 0x202   : > { %6298 = vmatmul.msk.f32.gmra.mxu0 %vm488_vm0, %v7223_v38  ;;  %6378 = vmatmul.msk.f32.gmra.mxu2 %vm488_vm0, %v7341_v26  ;;  %v7837_v38 = vpop.f32.mrf.mxu2 }
 0x203   : > { %9804 = vst [vmem:[#allocation76_spill] sm:$0xff] %v7837_v38  ;;  %v1767_v38 = vld [vmem:[#allocation2 + $0xa8] sm:$0xff] }
 0x204   : > { %6341 = vmatmul.msk.f32.gmra.mxu1 %vm488_vm0, %v7696_v56  ;;  %v1768_v56 = vld [vmem:[#allocation2 + $0xb0] sm:$0xff] }
 0x205   : > { %6290 = vmatmul.msk.f32.gmra.mxu3 %vm488_vm0, %v7813_v30 }
 0x207   : > { %v7823_v33 = vpop.f32.mrf.mxu0 }
 0x208   : > { %v7825_v14 = vpop.f32.mrf.mxu3 }
 0x209   : > { %9802 = vst [vmem:[#allocation74_spill] sm:$0xff] %v7825_v14  ;;  %v7928_v14 = vld [vmem:[#allocation2 + $0x109] sm:$0xff] }
 0x20a   : > { %6299 = vmatmul.msk.f32.gmra.mxu0 %vm488_vm0, %v7239_v43  ;;  %v7849_v43 = vpop.f32.mrf.mxu1  ;;  %6379 = vmatmul.msk.f32.gmra.mxu2 %vm488_vm0, %v7353_v37  ;;  %v7854_v26 = vpop.f32.mrf.mxu2 }
 0x20b   : > { %9806 = vst [vmem:[#allocation78_spill] sm:$0xff] %v7849_v43  ;;  %v7960_v43 = vld [vmem:[#allocation2 + $0x129] sm:$0xff] }
 0x20c   : > { %9807 = vst [vmem:[#allocation79_spill] sm:$0xff] %v7854_v26  ;;  %6342 = vmatmul.msk.f32.gmra.mxu1 %vm488_vm0, %v7715_v19 }
 0x20d   : > { %6291 = vmatmul.msk.f32.gmra.mxu3 %vm488_vm0, %v7829_v58 }
 0x20f   : > { %v7841_v20 = vpop.f32.mrf.mxu0 }
 0x210   : > { %v7843_v35 = vpop.f32.mrf.mxu3 }
 0x211   : > { %9805 = vst [vmem:[#allocation77_spill] sm:$0xff] %v7843_v35  ;;  %v7924_v35 = vld [vmem:[#allocation2 + $0xf0] sm:$0xff] }
 0x212   : > { %6300 = vmatmul.msk.f32.gmra.mxu0 %vm488_vm0, %v7255_v48  ;;  %6380 = vmatmul.msk.f32.gmra.mxu2 %vm488_vm0, %v7368_v52  ;;  %v7865_v48 = vpop.f32.mrf.mxu1 }
 0x213   : > { %9809 = vst [vmem:[#allocation81_spill] sm:$0xff] %v7865_v48  ;;  %v1037_v48 = vadd.f32 %v7551_v42, %v7343_v27 }
 0x215   : > { %6404 = vmatmul.msk.f32.vlgmr.msrb.gmra.mxu3 %vm488_vm0, %v2680_v18  ;;  %v7870_v18 = vpop.f32.mrf.mxu2  ;;  %v1415_v6 = vadd.f32 %v7745_v44, %v1037_v48  ;;  %v7976_v48 = vld [vmem:[#allocation2 + $0x131] sm:$0xff] }
 0x216   : > { %9810 = vst [vmem:[#allocation82_spill] sm:$0xff] %v7870_v18  ;;  %v2683_v18 = vld [vmem:[#allocation2 + $0x70] sm:$0xff] }
 0x217   : > { %v7856_v50 = vpop.f32.mrf.mxu0  ;;  %v1723_v27 = vadd.f32 %v7547_v21, %v1415_v6  ;;  %v2391_v21 = vld [vmem:[#allocation2 + $0x167] sm:$0xff] }
 0x218   : > { %v7858_v31 = vpop.f32.mrf.mxu3 }
 0x219   : > { %9808 = vst [vmem:[#allocation80_spill] sm:$0xff] %v7858_v31  ;;  %v2685_v31 = vld [vmem:[#allocation2 + $0x90] sm:$0xff] }
 0x21a   : > { %6301 = vmatmul.msk.f32.gmra.mxu0 %vm488_vm0, %v1767_v38  ;;  %6381 = vmatmul.msk.f32.gmra.mxu2 %vm488_vm0, %v7380_v59  ;;  %v7878_v52 = vpop.f32.mrf.mxu1 }
 0x21b   : > { %9812 = vst [vmem:[#allocation84_spill] sm:$0xff] %v7878_v52 }
 0x21d   : > { %6405 = vmatmul.msk.f32.gmra.mxu3 %vm488_vm0, %v2681_v55  ;;  %v1769_v55 = vld [vmem:[#allocation2 + $0xc8] sm:$0xff]  ;;  %v7884_v29 = vpop.f32.mrf.mxu2 }
 0x21e   : > { %9814 = vst [vmem:[#allocation86_spill] sm:$0xff] %v7884_v29 }
 0x21f   : > { %v7868_v37 = vpop.f32.mrf.mxu0 }
 0x220   : > { %v7872_v26 = vpop.f32.mrf.mxu3 }
 0x221   : > { %9811 = vst [vmem:[#allocation83_spill] sm:$0xff] %v7872_v26 }
 0x222   : > { %6302 = vmatmul.msk.f32.gmra.mxu0 %vm488_vm0, %v1768_v56  ;;  %6382 = vmatmul.msk.f32.gmra.mxu2 %vm488_vm0, %v7392_v3  ;;  %v7896_v26 = vpop.f32.mrf.mxu1 }
 0x223   : > { %9816 = vst [vmem:[#allocation88_spill] sm:$0xff] %v7896_v26 }
 0x225   : > { %6406 = vmatmul.msk.f32.gmra.mxu3 %vm488_vm0, %v2682_v54  ;;  %v7892_v54 = vld [vmem:[#allocation2 + $0xd0] sm:$0xff]  ;;  %v7902_v29 = vpop.f32.mrf.mxu2 }
 0x226   : > { %9817 = vst [vmem:[#allocation89_spill] sm:$0xff] %v7902_v29 }
 0x227   : > { %v7880_v19 = vpop.f32.mrf.mxu0 }
 0x228   : > { %v7882_v8 = vpop.f32.mrf.mxu3 }
 0x229   : > { %9813 = vst [vmem:[#allocation85_spill] sm:$0xff] %v7882_v8 }
 0x22a   : > { %6303 = vmatmul.msk.f32.gmra.mxu0 %vm488_vm0, %v1769_v55  ;;  %6383 = vmatmul.msk.f32.gmra.mxu2 %vm488_vm0, %v7404_v15  ;;  %v7917_v15 = vpop.f32.mrf.mxu1 }
 0x22b   : > { %9819 = vst [vmem:[#allocation91_spill] sm:$0xff] %v7917_v15  ;;  %v7939_v15 = vld [vmem:[#allocation2 + $0x108] sm:$0xff] }
 0x22d   : > { %6407 = vmatmul.msk.f32.gmra.mxu3 %vm488_vm0, %v2683_v18  ;;  %v7907_v18 = vld [vmem:[#allocation2 + $0xe8] sm:$0xff] }
 0x22f   : > { %v7890_v59 = vpop.f32.mrf.mxu0 }
 0x230   : > { %v7894_v0 = vpop.f32.mrf.mxu3 }
 0x231   : > { %9815 = vst [vmem:[#allocation87_spill] sm:$0xff] %v7894_v0  ;;  %v7911_v0 = vld [vmem:[#allocation2 + $0xf1] sm:$0xff] }
 0x232   : > { %6304 = vmatmul.msk.f32.gmra.mxu0 %vm488_vm0, %v7892_v54  ;;  %6343 = vmatmul.msk.f32.gmra.mxu1 %vm488_vm0, %v7911_v0  ;;  %v7934_v26 = vpop.f32.mrf.mxu1 }
 0x233   : > { %9821 = vst [vmem:[#allocation93_spill] sm:$0xff] %v7934_v26  ;;  %6384 = vmatmul.msk.f32.gmra.mxu2 %vm488_vm0, %v2390_v32  ;;  %v3486_v32 = vld [vmem:[%s9718_s5] sm:$0xff] }
 0x234   : > { %3841 = vmatpush.msra.mxu2 %v3486_v32  ;;  %v7998_v32 = vld [vmem:[#allocation2 + $0x149] sm:$0xff] }
 0x235   : > { %6408 = vmatmul.msk.f32.gmra.mxu3 %vm488_vm0, %v2684_v24  ;;  %v7920_v24 = vpop.f32.mrf.mxu2 }
 0x237   : > { %v7905_v3 = vpop.f32.mrf.mxu0 }
 0x238   : > { %v7909_v8 = vpop.f32.mrf.mxu3 }
 0x239   : > { %9818 = vst [vmem:[#allocation90_spill] sm:$0xff] %v7909_v8 }
 0x23a   : > { %6305 = vmatmul.msk.f32.gmra.mxu0 %vm488_vm0, %v7907_v18  ;;  %6344 = vmatmul.msk.f32.gmra.mxu1 %vm488_vm0, %v7928_v14  ;;  %v2229_v26 = vpop.f32.mrf.mxu1 }
 0x23b   : > { %6385 = vmatmul.msk.f32.gmra.mxu2 %vm488_vm0, %v2391_v21 }
 0x23d   : > { %6409 = vmatmul.msk.f32.gmra.mxu3 %vm488_vm0, %v2685_v31  ;;  %v7941_v62 = vpop.f32.mrf.mxu2 }
 0x23f   : > { %v7922_v29 = vpop.f32.mrf.mxu0 }
 0x240   : > { %v7926_v8 = vpop.f32.mrf.mxu3 }
 0x241   : > { %9820 = vst [vmem:[#allocation92_spill] sm:$0xff] %v7926_v8  ;;  %v7945_v8 = vld [vmem:[#allocation2 + $0x111] sm:$0xff] }
 0x242   : > { %6306 = vmatmul.msk.f32.gmra.mxu0 %vm488_vm0, %v7924_v35  ;;  %6345 = vmatmul.msk.f32.gmra.mxu1 %vm488_vm0, %v7945_v8 }
 0x245   : > { %6410 = vmatmul.msk.f32.gmra.mxu3 %vm488_vm0, %v1767_v38 }
 0x247   : > { %v7937_v31 = vpop.f32.mrf.mxu0 }
 0x248   : > { %9822 = vst [vmem:[#allocation94_spill] sm:$0xff] %v7937_v31  ;;  %v7943_v52 = vpop.f32.mrf.mxu3 }
 0x249   : > { %9823 = vst [vmem:[#allocation95_spill] sm:$0xff] %v7943_v52  ;;  %v2536_v52 = vpop.f32.mrf.mxu2 }
 0x24a   : > { %6307 = vmatmul.msk.f32.gmra.mxu0 %vm488_vm0, %v7939_v15  ;;  %6346 = vmatmul.msk.f32.gmra.mxu1 %vm488_vm0, %v7960_v43 }
 0x24d   : > { %6411 = vmatmul.msk.f32.gmra.mxu3 %vm488_vm0, %v1768_v56  ;;  %v2232_v56 = vpop.f32.mrf.mxu1 }
 0x24f   : > { %v7952_v38 = vpop.f32.mrf.mxu0 }
 0x250   : > { %9824 = vst [vmem:[#allocation96_spill] sm:$0xff] %v7952_v38  ;;  %v7958_v1 = vpop.f32.mrf.mxu3  ;;  %v1040_v38 = vadd.f32 %v7567_v53, %v7358_v46 }
 0x251   : > { %9825 = vst [vmem:[#allocation97_spill] sm:$0xff] %v7958_v1  ;;  %v7970_v1 = vld [vmem:[#allocation2 + $0x128] sm:$0xff]  ;;  %v2539_v44 = vpop.f32.mrf.mxu2 }
 0x252   : > { %6308 = vmatmul.msk.f32.gmra.mxu0 %vm488_vm0, %v7954_v36  ;;  %6347 = vmatmul.msk.f32.gmra.mxu1 %vm488_vm0, %v7976_v48  ;;  %v1416_v6 = vadd.f32 %v7761_v49, %v1040_v38  ;;  %v1043_v49 = vadd.f32 %v7587_v9, %v7375_v57 }
 0x255   : > { %6412 = vmatmul.msk.f32.gmra.mxu3 %vm488_vm0, %v1769_v55  ;;  %v2235_v53 = vpop.f32.mrf.mxu1 }
 0x257   : > { %v1922_v42 = vpop.f32.mrf.mxu0 }
 0x258   : > { %v7974_v22 = vpop.f32.mrf.mxu3  ;;  %v2030_v31 = vadd.f32 %v1922_v42, %v1723_v27  ;;  %v1724_v27 = vadd.f32 %v7561_v13, %v1416_v6  ;;  %v2392_v13 = vld [vmem:[#allocation2 + $0x16f] sm:$0xff] }
 0x259   : > { %9826 = vst [vmem:[#allocation98_spill] sm:$0xff] %v7974_v22  ;;  %v7992_v22 = vld [vmem:[#allocation2 + $0x130] sm:$0xff]  ;;  %v2542_v38 = vpop.f32.mrf.mxu2  ;;  %6386 = vmatmul.msk.f32.gmra.mxu2 %vm488_vm0, %v2392_v13 }
 0x25a   : > { %v2337_v55 = vadd.f32 %v2229_v26, %v2030_v31  ;;  %6309 = vmatmul.msk.f32.gmra.mxu0 %vm488_vm0, %v7970_v1  ;;  %6348 = vmatmul.msk.f32.gmra.mxu1 %vm488_vm0, %v7998_v32 }
 0x25c   : > { %v7987_v46 = vadd.f32 %v2536_v52, %v2337_v55  ;;  %v6477_v52 = vld [vmem:[%s9718_s5 + $0x8] sm:$0xff] }
 0x25d   : > { %6413 = vmatmul.msk.f32.gmra.mxu3 %vm488_vm0, %v7892_v54  ;;  %v1417_v54 = vadd.f32 %v7777_v47, %v1043_v49  ;;  %3632 = vmatpush.msra.mxu1 %v6477_v52  ;;  %v2238_v9 = vpop.f32.mrf.mxu1  ;;  %v1046_v47 = vadd.f32 %v7603_v61, %v7390_v63 }
 0x25f   : > { %v1925_v42 = vpop.f32.mrf.mxu0  ;;  %v1725_v6 = vadd.f32 %v7573_v11, %v1417_v54  ;;  %v8033_v54 = vld [vmem:[#allocation2 + $0x150] sm:$0xff] }
 0x260   : > { %v7996_v26 = vpop.f32.mrf.mxu3  ;;  %v2031_v31 = vadd.f32 %v1925_v42, %v1724_v27  ;;  %v8014_v27 = vld [vmem:[#allocation2 + $0x148] sm:$0xff] }
 0x261   : > { %9827 = vst [vmem:[#allocation99_spill] sm:$0xff] %v7996_v26  ;;  %v2545_v49 = vpop.f32.mrf.mxu2 }
 0x262   : > { %v2338_v21 = vadd.f32 %v2232_v56, %v2031_v31  ;;  %6310 = vmatmul.msk.f32.gmra.mxu0 %vm488_vm0, %v7992_v22  ;;  %v8020_v31 = vld [vmem:[#allocation2 + $0x151] sm:$0xff] }
 0x263   : > { %6349 = vmatmul.msk.f32.gmra.mxu1 %vm488_vm0, %v8020_v31 }
 0x264   : > { %v8009_v57 = vadd.f32 %v2539_v44, %v2338_v21  ;;  %v2393_v44 = vld [vmem:[#allocation2 + $0x187] sm:$0xff] }
 0x265   : > { %6414 = vmatmul.msk.f32.gmra.mxu3 %vm488_vm0, %v7907_v18  ;;  %v1418_v18 = vadd.f32 %v7791_v60, %v1046_v47  ;;  %6387 = vmatmul.msk.f32.gmra.mxu2 %vm488_vm0, %v2393_v44  ;;  %v2241_v63 = vpop.f32.mrf.mxu1  ;;  %v9829_v21 = vld [vmem:[#allocation49_spill] sm:$0xff] }
 0x266   : > { %v1049_v60 = vadd.f32 %v9829_v21, %v7402_v12  ;;  %v8039_v47 = vld [vmem:[#allocation2 + $0x169] sm:$0xff] }
 0x267   : > { %v1928_v55 = vpop.f32.mrf.mxu0  ;;  %v1726_v61 = vadd.f32 %v7585_v25, %v1418_v18  ;;  %v9831_v44 = vld [vmem:[#allocation45_spill] sm:$0xff] }
 0x268   : > { %v8018_v56 = vpop.f32.mrf.mxu3  ;;  %v2032_v42 = vadd.f32 %v1928_v55, %v1725_v6 }
 0x269   : > { %9828 = vst [vmem:[#allocation100_spill] sm:$0xff] %v8018_v56  ;;  %v2548_v55 = vpop.f32.mrf.mxu2 }
 0x26a   : > { %v2339_v52 = vadd.f32 %v2235_v53, %v2032_v42  ;;  %6311 = vmatmul.msk.f32.gmra.mxu0 %vm488_vm0, %v8014_v27 }
 0x26b   : > { %6350 = vmatmul.msk.f32.gmra.mxu1 %vm488_vm0, %v8039_v47 }
 0x26c   : > { %v8028_v11 = vadd.f32 %v2542_v38, %v2339_v52  ;;  %v2394_v38 = vld [vmem:[#allocation2 + $0x18f] sm:$0xff] }
 0x26d   : > { %6415 = vmatmul.msk.f32.gmra.mxu3 %vm488_vm0, %v7924_v35  ;;  %v1419_v35 = vadd.f32 %v7807_v5, %v1049_v60  ;;  %6388 = vmatmul.msk.f32.gmra.mxu2 %vm488_vm0, %v2394_v38  ;;  %v2244_v12 = vpop.f32.mrf.mxu1 }
 0x26f   : > { %v1931_v13 = vpop.f32.mrf.mxu0  ;;  %v1727_v18 = vadd.f32 %v9831_v44, %v1419_v35 }
 0x270   : > { %v8037_v53 = vpop.f32.mrf.mxu3  ;;  %v2033_v6 = vadd.f32 %v1931_v13, %v1726_v61  ;;  %v8052_v61 = vld [vmem:[#allocation2 + $0x168] sm:$0xff] }
 0x271   : > { %9830 = vst [vmem:[#allocation49_spill] sm:$0xff] %v8037_v53  ;;  %v9832_v13 = vld [vmem:[#allocation5_spill] sm:$0xff]  ;;  %v2551_v60 = vpop.f32.mrf.mxu2 }
 0x272   : > { %v2340_v42 = vadd.f32 %v2238_v9, %v2033_v6  ;;  %6312 = vmatmul.msk.f32.gmra.mxu0 %vm488_vm0, %v8033_v54  ;;  %v1052_v5 = vadd.f32 %v7633_v51, %v9832_v13  ;;  %v8058_v6 = vld [vmem:[#allocation2 + $0x171] sm:$0xff]  ;;  %v2714_v53 = vld [vmem:[#allocation2 + $0x268] sm:$0xff] }
 0x273   : > { %6351 = vmatmul.msk.f32.gmra.mxu1 %vm488_vm0, %v8058_v6  ;;  %v9835_v13 = vld [vmem:[#allocation7_spill] sm:$0xff] }
 0x274   : > { %v8047_v25 = vadd.f32 %v2545_v49, %v2340_v42  ;;  %v2395_v49 = vld [vmem:[#allocation2 + $0x1a7] sm:$0xff] }
 0x275   : > { %6416 = vmatmul.msk.f32.gmra.mxu3 %vm488_vm0, %v7939_v15  ;;  %v1420_v15 = vadd.f32 %v7823_v33, %v1052_v5  ;;  %6389 = vmatmul.msk.f32.gmra.mxu2 %vm488_vm0, %v2395_v49  ;;  %v2247_v51 = vpop.f32.mrf.mxu1  ;;  %v9834_v42 = vld [vmem:[#allocation48_spill] sm:$0xff]  ;;  %v1055_v33 = vadd.f32 %v7661_v40, %v9835_v13 }
 0x277   : > { %v1934_v52 = vpop.f32.mrf.mxu0  ;;  %v1728_v44 = vadd.f32 %v9834_v42, %v1420_v15  ;;  %v9837_v15 = vld [vmem:[#allocation4_spill] sm:$0xff] }
 0x278   : > { %v8056_v9 = vpop.f32.mrf.mxu3  ;;  %v2034_v21 = vadd.f32 %v1934_v52, %v1727_v18  ;;  %v8071_v52 = vld [vmem:[#allocation2 + $0x170] sm:$0xff] }
 0x279   : > { %9833 = vst [vmem:[#allocation45_spill] sm:$0xff] %v8056_v9  ;;  %v8077_v9 = vld [vmem:[#allocation2 + $0x189] sm:$0xff] }
 0x27a   : > { %v2341_v38 = vadd.f32 %v2241_v63, %v2034_v21  ;;  %6313 = vmatmul.msk.f32.gmra.mxu0 %vm488_vm0, %v8052_v61  ;;  %v2554_v21 = vpop.f32.mrf.mxu2 }
 0x27b   : > { %6352 = vmatmul.msk.f32.gmra.mxu1 %vm488_vm0, %v8077_v9 }
 0x27c   : > { %v8066_v35 = vadd.f32 %v2548_v55, %v2341_v38  ;;  %v2396_v55 = vld [vmem:[#allocation2 + $0x1af] sm:$0xff] }
 0x27d   : > { %6417 = vmatmul.msk.f32.gmra.mxu3 %vm488_vm0, %v7954_v36  ;;  %v1421_v36 = vadd.f32 %v7841_v20, %v1055_v33  ;;  %v9838_v38 = vld [vmem:[#allocation34_spill] sm:$0xff]  ;;  %6390 = vmatmul.msk.f32.gmra.mxu2 %vm488_vm0, %v2396_v55  ;;  %v8093_v20 = vld [vmem:[#allocation2 + $0x188] sm:$0xff] }
 0x27e   : > { %v1139_v42 = vadd.f32 %v9838_v38, %v9837_v15  ;;  %v9839_v33 = vld [vmem:[#allocation9_spill] sm:$0xff]  ;;  %v8097_v38 = vld [vmem:[#allocation2 + $0x191] sm:$0xff] }
 0x27f   : > { %v1937_v18 = vpop.f32.mrf.mxu0 }
 0x280   : > { %v8075_v63 = vpop.f32.mrf.mxu3  ;;  %v2035_v5 = vadd.f32 %v1937_v18, %v1728_v44  ;;  %v1729_v44 = vadd.f32 %v7627_v16, %v1421_v36  ;;  %v1449_v18 = vadd.f32 %v7920_v24, %v1139_v42  ;;  %v2397_v16 = vld [vmem:[#allocation2 + $0x1c7] sm:$0xff]  ;;  %v9841_v36 = vld [vmem:[#allocation6_spill] sm:$0xff] }
 0x281   : > { %9836 = vst [vmem:[#allocation5_spill] sm:$0xff] %v8075_v63 }
 0x282   : > { %v2342_v49 = vadd.f32 %v2244_v12, %v2035_v5  ;;  %6314 = vmatmul.msk.f32.gmra.mxu0 %vm488_vm0, %v8071_v52  ;;  %v2250_v12 = vpop.f32.mrf.mxu1  ;;  %v1058_v5 = vadd.f32 %v7683_v2, %v9839_v33  ;;  %v2557_v55 = vpop.f32.mrf.mxu2 }
 0x283   : > { %6353 = vmatmul.msk.f32.gmra.mxu1 %vm488_vm0, %v8097_v38 }
 0x284   : > { %v8087_v40 = vadd.f32 %v2551_v60, %v2342_v49  ;;  %v9842_v49 = vld [vmem:[#allocation36_spill] sm:$0xff] }
 0x285   : > { %6418 = vmatmul.msk.f32.gmra.mxu3 %vm488_vm0, %v7970_v1  ;;  %v1422_v1 = vadd.f32 %v7856_v50, %v1058_v5  ;;  %v1142_v2 = vadd.f32 %v9842_v49, %v9841_v36  ;;  %6391 = vmatmul.msk.f32.gmra.mxu2 %vm488_vm0, %v2397_v16  ;;  %v8115_v50 = vld [vmem:[#allocation2 + $0x190] sm:$0xff]  ;;  %v9846_v49 = vld [vmem:[#allocation56_spill] sm:$0xff] }
 0x286   : > { %v8119_v36 = vld [vmem:[#allocation2 + $0x1a9] sm:$0xff] }
 0x287   : > { %v1940_v13 = vpop.f32.mrf.mxu0 }
 0x288   : > { %v1717_v63 = vpop.f32.mrf.mxu3  ;;  %v2036_v15 = vadd.f32 %v1940_v13, %v1729_v44 }
 0x289   : > { %v8099_v60 = vadd.f32 %v1717_v63, %v1449_v18  ;;  %v9843_v63 = vld [vmem:[#allocation53_spill] sm:$0xff]  ;;  %v1450_v18 = vadd.f32 %v7941_v62, %v1142_v2 }
 0x28a   : > { %v2343_v24 = vadd.f32 %v2247_v51, %v2036_v15  ;;  %6315 = vmatmul.msk.f32.gmra.mxu0 %vm488_vm0, %v8093_v20  ;;  %v1730_v44 = vadd.f32 %v9843_v63, %v1422_v1  ;;  %v9844_v51 = vld [vmem:[#allocation11_spill] sm:$0xff] }
 0x28b   : > { %9840 = vst [vmem:[#allocation48_spill] sm:$0xff] %v8099_v60  ;;  %v1061_v33 = vadd.f32 %v7706_v34, %v9844_v51  ;;  %6354 = vmatmul.msk.f32.gmra.mxu1 %vm488_vm0, %v8119_v36  ;;  %v8138_v51 = vld [vmem:[#allocation2 + $0x1b1] sm:$0xff] }
 0x28c   : > { %v8109_v42 = vadd.f32 %v2554_v21, %v2343_v24  ;;  %v2253_v21 = vpop.f32.mrf.mxu1  ;;  %v2560_v24 = vpop.f32.mrf.mxu2 }
 0x28d   : > { %6419 = vmatmul.msk.f32.gmra.mxu3 %vm488_vm0, %v7992_v22  ;;  %v2398_v22 = vld [vmem:[#allocation2 + $0x1cf] sm:$0xff]  ;;  %v1423_v1 = vadd.f32 %v7868_v37, %v1061_v33 }
 0x28e   : > { %6392 = vmatmul.msk.f32.gmra.mxu2 %vm488_vm0, %v2398_v22 }
 0x28f   : > { %v1943_v13 = vpop.f32.mrf.mxu0  ;;  %v1731_v2 = vadd.f32 %v9846_v49, %v1423_v1  ;;  %v9848_v49 = vld [vmem:[#allocation15_spill] sm:$0xff] }
 0x290   : > { %v1720_v5 = vpop.f32.mrf.mxu3  ;;  %v2037_v15 = vadd.f32 %v1943_v13, %v1730_v44  ;;  %v8134_v44 = vld [vmem:[#allocation2 + $0x1a8] sm:$0xff] }
 0x291   : > { %v8121_v16 = vadd.f32 %v1720_v5, %v1450_v18  ;;  %v9847_v18 = vld [vmem:[#allocation13_spill] sm:$0xff] }
 0x292   : > { %v2344_v62 = vadd.f32 %v2250_v12, %v2037_v15  ;;  %6316 = vmatmul.msk.f32.gmra.mxu0 %vm488_vm0, %v8115_v50  ;;  %v1064_v37 = vadd.f32 %v7729_v39, %v9847_v18 }
 0x293   : > { %9845 = vst [vmem:[#allocation7_spill] sm:$0xff] %v8121_v16  ;;  %6355 = vmatmul.msk.f32.gmra.mxu1 %vm488_vm0, %v8138_v51  ;;  %v2990_v16 = vld [vmem:[#allocation2 + $0x71] sm:$0xff] }
 0x294   : > { %v8129_v34 = vadd.f32 %v2557_v55, %v2344_v62  ;;  %v2399_v55 = vld [vmem:[#allocation2 + $0x1e7] sm:$0xff]  ;;  %v2256_v15 = vpop.f32.mrf.mxu1  ;;  %v8154_v62 = vld [vmem:[#allocation2 + $0x1b0] sm:$0xff] }
 0x295   : > { %6420 = vmatmul.msk.f32.gmra.mxu3 %vm488_vm0, %v8014_v27  ;;  %v1424_v27 = vadd.f32 %v7880_v19, %v1064_v37  ;;  %v1067_v19 = vadd.f32 %v7749_v17, %v9848_v49 }
 0x296   : > { %6393 = vmatmul.msk.f32.gmra.mxu2 %vm488_vm0, %v2399_v55 }
 0x297   : > { %v1946_v63 = vpop.f32.mrf.mxu0  ;;  %v1732_v22 = vadd.f32 %v7677_v45, %v1424_v27  ;;  %v9849_v27 = vld [vmem:[#allocation17_spill] sm:$0xff] }
 0x298   : > { %v2843_v12 = vpop.f32.mrf.mxu3  ;;  %v2038_v13 = vadd.f32 %v1946_v63, %v1731_v2  ;;  %v8158_v63 = vld [vmem:[#allocation2 + $0x1c9] sm:$0xff] }
 0x299   : > { %v8141_v33 = vadd.f32 %v2843_v12, %v7987_v46  ;;  %v2563_v46 = vpop.f32.mrf.mxu2 }
 0x29a   : > { %v2345_v5 = vadd.f32 %v2253_v21, %v2038_v13  ;;  %6317 = vmatmul.msk.f32.gmra.mxu0 %vm488_vm0, %v8134_v44  ;;  %v8174_v13 = vld [vmem:[#allocation2 + $0x1c8] sm:$0xff] }
 0x29b   : > { %6356 = vmatmul.msk.f32.gmra.mxu1 %vm488_vm0, %v8158_v63 }
 0x29c   : > { %v8149_v39 = vadd.f32 %v2560_v24, %v2345_v5  ;;  %v1425_v24 = vadd.f32 %v7890_v59, %v1067_v19  ;;  %v2259_v37 = vpop.f32.mrf.mxu1  ;;  %v1070_v59 = vadd.f32 %v7769_v10, %v9849_v27 }
 0x29d   : > { %6421 = vmatmul.msk.f32.gmra.mxu3 %vm488_vm0, %v8033_v54  ;;  %v2400_v54 = vld [vmem:[#allocation2 + $0x1ef] sm:$0xff] }
 0x29e   : > { %6394 = vmatmul.msk.f32.gmra.mxu2 %vm488_vm0, %v2400_v54 }
 0x29f   : > { %v1949_v1 = vpop.f32.mrf.mxu0 }
 0x2a0   : > { %v2846_v21 = vpop.f32.mrf.mxu3  ;;  %v2039_v2 = vadd.f32 %v1949_v1, %v1732_v22  ;;  %v8178_v22 = vld [vmem:[#allocation2 + $0x1d1] sm:$0xff] }
 0x2a1   : > { %v8161_v18 = vadd.f32 %v2846_v21, %v8009_v57  ;;  %v1733_v57 = vadd.f32 %v7698_v4, %v1425_v24  ;;  %v2566_v55 = vpop.f32.mrf.mxu2  ;;  %v1426_v4 = vadd.f32 %v7905_v3, %v1070_v59  ;;  %v1786_v21 = vld [vmem:[#allocation2 + $0x1d0] sm:$0xff]  ;;  %v2403_v59 = vld [vmem:[#allocation2 + $0x227] sm:$0xff] }
 0x2a2   : > { %v2346_v45 = vadd.f32 %v2256_v15, %v2039_v2  ;;  %6318 = vmatmul.msk.f32.gmra.mxu0 %vm488_vm0, %v8154_v62  ;;  %v8194_v24 = vld [vmem:[#allocation2 + $0x1e9] sm:$0xff] }
 0x2a3   : > { %6357 = vmatmul.msk.f32.gmra.mxu1 %vm488_vm0, %v8178_v22 }
 0x2a4   : > { %v8169_v17 = vadd.f32 %v2563_v46, %v2346_v45  ;;  %v2262_v19 = vpop.f32.mrf.mxu1 }
 0x2a5   : > { %6422 = vmatmul.msk.f32.gmra.mxu3 %vm488_vm0, %v8052_v61  ;;  %v2401_v61 = vld [vmem:[#allocation2 + $0x207] sm:$0xff] }
 0x2a6   : > { %6395 = vmatmul.msk.f32.gmra.mxu2 %vm488_vm0, %v2401_v61  ;;  %v8222_v61 = vld [vmem:[#allocation2 + $0x209] sm:$0xff] }
 0x2a7   : > { %v1952_v12 = vpop.f32.mrf.mxu0 }
 0x2a8   : > { %v2849_v5 = vpop.f32.mrf.mxu3  ;;  %v2040_v15 = vadd.f32 %v1952_v12, %v1733_v57  ;;  %v1787_v12 = vld [vmem:[#allocation2 + $0x1e8] sm:$0xff] }
 0x2a9   : > { %v8181_v46 = vadd.f32 %v2849_v5, %v8028_v11  ;;  %v1734_v11 = vadd.f32 %v7719_v41, %v1426_v4  ;;  %v2569_v45 = vpop.f32.mrf.mxu2  ;;  %v1788_v5 = vld [vmem:[#allocation2 + $0x1f0] sm:$0xff] }
 0x2aa   : > { %v2347_v1 = vadd.f32 %v2259_v37, %v2040_v15  ;;  %6319 = vmatmul.msk.f32.gmra.mxu0 %vm488_vm0, %v8174_v13  ;;  %v2402_v37 = vld [vmem:[#allocation2 + $0x20f] sm:$0xff] }
 0x2ab   : > { %6358 = vmatmul.msk.f32.gmra.mxu1 %vm488_vm0, %v8194_v24  ;;  %v2404_v4 = vld [vmem:[#allocation2 + $0x22f] sm:$0xff] }
 0x2ac   : > { %v8189_v10 = vadd.f32 %v2566_v55, %v2347_v1  ;;  %v8209_v55 = vld [vmem:[#allocation2 + $0x1f1] sm:$0xff]  ;;  %v1789_v1 = vld [vmem:[#allocation2 + $0x208] sm:$0xff] }
 0x2ad   : > { %6423 = vmatmul.msk.f32.gmra.mxu3 %vm488_vm0, %v8071_v52 }
 0x2ae   : > { %6396 = vmatmul.msk.f32.gmra.mxu2 %vm488_vm0, %v2402_v37  ;;  %v8263_v37 = vld [vmem:[#allocation2 + $0x231] sm:$0xff] }
 0x2af   : > { %v1955_v49 = vpop.f32.mrf.mxu0 }
 0x2b0   : > { %v2852_v2 = vpop.f32.mrf.mxu3  ;;  %v2041_v54 = vadd.f32 %v1955_v49, %v1734_v11  ;;  %v8235_v49 = vld [vmem:[#allocation2 + $0x211] sm:$0xff] }
 0x2b1   : > { %v8197_v3 = vadd.f32 %v2852_v2, %v8047_v25 }
 0x2b2   : > { %v2348_v57 = vadd.f32 %v2262_v19, %v2041_v54  ;;  %6320 = vmatmul.msk.f32.gmra.mxu0 %vm488_vm0, %v1786_v21  ;;  %v1790_v19 = vld [vmem:[#allocation2 + $0x210] sm:$0xff] }
 0x2b3   : > { %6359 = vmatmul.msk.f32.gmra.mxu1 %vm488_vm0, %v8209_v55  ;;  %v8249_v54 = vld [vmem:[#allocation2 + $0x229] sm:$0xff] }
 0x2b4   : > { %v8203_v41 = vadd.f32 %v2569_v45, %v2348_v57  ;;  %v2407_v57 = vld [vmem:[#allocation2 + $0x267] sm:$0xff] }
 0x2b5   : > { %6424 = vmatmul.msk.f32.gmra.mxu3 %vm488_vm0, %v8093_v20 }
 0x2b6   : > { %6397 = vmatmul.msk.f32.gmra.mxu2 %vm488_vm0, %v2403_v59  ;;  %v8275_v59 = vld [vmem:[#allocation2 + $0x249] sm:$0xff] }
 0x2b7   : > { %v8207_v52 = vpop.f32.mrf.mxu0  ;;  %9851 = vst [vmem:[#allocation34_spill] sm:$0xff] %v8275_v59 }
 0x2b8   : > { %v2855_v25 = vpop.f32.mrf.mxu3 }
 0x2b9   : > { %v8212_v27 = vadd.f32 %v2855_v25, %v8066_v35 }
 0x2ba   : > { %6321 = vmatmul.msk.f32.gmra.mxu0 %vm488_vm0, %v1787_v12 }
 0x2bb   : > { %6360 = vmatmul.msk.f32.gmra.mxu1 %vm488_vm0, %v8222_v61 }
 0x2bd   : > { %6425 = vmatmul.msk.f32.gmra.mxu3 %vm488_vm0, %v8115_v50 }
 0x2be   : > { %6398 = vmatmul.msk.f32.gmra.mxu2 %vm488_vm0, %v2404_v4  ;;  %v1793_v4 = vld [vmem:[#allocation2 + $0x248] sm:$0xff] }
 0x2bf   : > { %v8220_v20 = vpop.f32.mrf.mxu0 }
 0x2c0   : > { %v2858_v15 = vpop.f32.mrf.mxu3 }
 0x2c1   : > { %v8225_v35 = vadd.f32 %v2858_v15, %v8087_v40 }
 0x2c2   : > { %6322 = vmatmul.msk.f32.gmra.mxu0 %vm488_vm0, %v1788_v5 }
 0x2c3   : > { %6361 = vmatmul.msk.f32.gmra.mxu1 %vm488_vm0, %v8235_v49 }
 0x2c5   : > { %6426 = vmatmul.msk.f32.gmra.mxu3 %vm488_vm0, %v8134_v44 }
 0x2c6   : > { %6399 = vmatmul.msk.f32.gmra.mxu2 %vm488_vm0, %v7813_v30 }
 0x2c7   : > { %v8233_v50 = vpop.f32.mrf.mxu0 }
 0x2c8   : > { %v2861_v11 = vpop.f32.mrf.mxu3 }
 0x2c9   : > { %v8238_v40 = vadd.f32 %v2861_v11, %v8109_v42 }
 0x2ca   : > { %6323 = vmatmul.msk.f32.gmra.mxu0 %vm488_vm0, %v1789_v1 }
 0x2cb   : > { %6362 = vmatmul.msk.f32.gmra.mxu1 %vm488_vm0, %v8249_v54 }
 0x2cd   : > { %6427 = vmatmul.msk.f32.gmra.mxu3 %vm488_vm0, %v8154_v62  ;;  %v1791_v62 = vld [vmem:[#allocation2 + $0x228] sm:$0xff] }
 0x2ce   : > { %6400 = vmatmul.msk.f32.gmra.mxu2 %vm488_vm0, %v7829_v58 }
 0x2cf   : > { %v8247_v44 = vpop.f32.mrf.mxu0 }
 0x2d0   : > { %v2864_v2 = vpop.f32.mrf.mxu3 }
 0x2d1   : > { %v8252_v42 = vadd.f32 %v2864_v2, %v8129_v34  ;;  %v8287_v2 = vld [vmem:[#allocation2 + $0x251] sm:$0xff] }
 0x2d2   : > { %6324 = vmatmul.msk.f32.gmra.mxu0 %vm488_vm0, %v1790_v19  ;;  %9853 = vst [vmem:[#allocation6_spill] sm:$0xff] %v8287_v2 }
 0x2d3   : > { %6363 = vmatmul.msk.f32.gmra.mxu1 %vm488_vm0, %v8263_v37 }
 0x2d5   : > { %6428 = vmatmul.msk.f32.gmra.mxu3 %vm488_vm0, %v8174_v13  ;;  %v1792_v13 = vld [vmem:[#allocation2 + $0x230] sm:$0xff] }
 0x2d6   : > { %6401 = vmatmul.msk.f32.gmra.mxu2 %vm488_vm0, %v2407_v57  ;;  %v1794_v57 = vld [vmem:[#allocation2 + $0x250] sm:$0xff] }
 0x2d7   : > { %v8261_v30 = vpop.f32.mrf.mxu0 }
 0x2d8   : > { %v2867_v45 = vpop.f32.mrf.mxu3 }
 0x2d9   : > { %v8266_v34 = vadd.f32 %v2867_v45, %v8149_v39  ;;  %v2408_v39 = vld [vmem:[#allocation2 + $0x26f] sm:$0xff] }
 0x2da   : > { %6325 = vmatmul.msk.f32.gmra.mxu0 %vm488_vm0, %v1791_v62 }
 0x2db   : > { %6364 = vmatmul.msk.f32.gmra.mxu1 %vm488_vm0, %v8275_v59 }
 0x2dd   : > { %6429 = vmatmul.msk.f32.gmra.mxu3 %vm488_vm0, %v1786_v21 }
 0x2de   : > { %6402 = vmatmul.msk.f32.gmra.mxu2 %vm488_vm0, %v2408_v39  ;;  %v2987_v39 = vld [vmem:[#allocation2 + $0x49] sm:$0xff] }
 0x2df   : > { %v8273_v58 = vpop.f32.mrf.mxu0 }
 0x2e0   : > { %9850 = vst [vmem:[#allocation4_spill] sm:$0xff] %v8273_v58  ;;  %v2870_v25 = vpop.f32.mrf.mxu3 }
 0x2e1   : > { %v8278_v15 = vadd.f32 %v2870_v25, %v8169_v17 }
 0x2e2   : > { %6326 = vmatmul.msk.f32.gmra.mxu0 %vm488_vm0, %v1792_v13 }
 0x2e3   : > { %6365 = vmatmul.msk.f32.gmra.mxu1 %vm488_vm0, %v8287_v2 }
 0x2e5   : > { %6430 = vmatmul.msk.f32.gmra.mxu3 %vm488_vm0, %v1787_v12 }
 0x2e7   : > { %v8285_v21 = vpop.f32.mrf.mxu0 }
 0x2e8   : > { %9852 = vst [vmem:[#allocation9_spill] sm:$0xff] %v8285_v21  ;;  %v2873_v11 = vpop.f32.mrf.mxu3 }
 0x2e9   : > { %v8290_v45 = vadd.f32 %v2873_v11, %v8189_v10 }
 0x2ea   : > { %6327 = vmatmul.msk.f32.gmra.mxu0 %vm488_vm0, %v1793_v4 }
 0x2ed   : > { %6431 = vmatmul.msk.f32.gmra.mxu3 %vm488_vm0, %v1788_v5  ;;  %v2988_v5 = vld [vmem:[#allocation2 + $0x51] sm:$0xff] }
 0x2ef   : > { %v8296_v17 = vpop.f32.mrf.mxu0 }
 0x2f0   : > { %9854 = vst [vmem:[#allocation36_spill] sm:$0xff] %v8296_v17  ;;  %v2876_v12 = vpop.f32.mrf.mxu3 }
 0x2f1   : > { %v8299_v25 = vadd.f32 %v2876_v12, %v8203_v41  ;;  %v2989_v12 = vld [vmem:[#allocation2 + $0x69] sm:$0xff] }
 0x2f2   : > { %6328 = vmatmul.msk.f32.gmra.mxu0 %vm488_vm0, %v1794_v57 }
 0x2f5   : > { %6432 = vmatmul.msk.f32.gmra.mxu3 %vm488_vm0, %v1789_v1 }
 0x2f7   : > { %v8303_v10 = vpop.f32.mrf.mxu0 }
 0x2f8   : > { %9855 = vst [vmem:[#allocation53_spill] sm:$0xff] %v8303_v10 }
 0x2fa   : > { %6441 = vmatmul.msk.f32.vlgmr.msrb.gmra.mxu0 %vm488_vm0, %v2987_v39 }
 0x2fd   : > { %6433 = vmatmul.msk.f32.gmra.mxu3 %vm488_vm0, %v1790_v19  ;;  %v8319_v19 = vpop.f32.mrf.mxu1 }
 0x2ff   : > { %v8307_v11 = vpop.f32.mrf.mxu0 }
 0x300   : > { %9856 = vst [vmem:[#allocation11_spill] sm:$0xff] %v8307_v11 }
 0x302   : > { %6442 = vmatmul.msk.f32.gmra.mxu0 %vm488_vm0, %v2988_v5  ;;  %v2991_v5 = vld [vmem:[#allocation2 + $0x89] sm:$0xff] }
 0x305   : > { %6434 = vmatmul.msk.f32.gmra.mxu3 %vm488_vm0, %v1791_v62  ;;  %v8324_v62 = vpop.f32.mrf.mxu2  ;;  %v8329_v60 = vpop.f32.mrf.mxu1 }
 0x307   : > { %v8311_v41 = vpop.f32.mrf.mxu0 }
 0x308   : > { %9857 = vst [vmem:[#allocation56_spill] sm:$0xff] %v8311_v41  ;;  %v2995_v41 = vld [vmem:[#allocation2 + $0xc9] sm:$0xff] }
 0x30a   : > { %6443 = vmatmul.msk.f32.gmra.mxu0 %vm488_vm0, %v2989_v12 }
 0x30d   : > { %6435 = vmatmul.msk.f32.gmra.mxu3 %vm488_vm0, %v1792_v13  ;;  %v2992_v13 = vld [vmem:[#allocation2 + $0x91] sm:$0xff]  ;;  %v8339_v26 = vpop.f32.mrf.mxu1 }
 0x30f   : > { %v8315_v1 = vpop.f32.mrf.mxu0 }
 0x310   : > { %9858 = vst [vmem:[#allocation13_spill] sm:$0xff] %v8315_v1 }
 0x312   : > { %6444 = vmatmul.msk.f32.gmra.mxu0 %vm488_vm0, %v2990_v16  ;;  %v8332_v16 = vpop.f32.mrf.mxu3 }
 0x315   : > { %6436 = vmatmul.msk.f32.gmra.mxu3 %vm488_vm0, %v1793_v4  ;;  %v8335_v4 = vpop.f32.mrf.mxu2 }
 0x317   : > { %v8321_v39 = vpop.f32.mrf.mxu0 }
 0x318   : > { %9859 = vst [vmem:[#allocation15_spill] sm:$0xff] %v8321_v39 }
 0x31a   : > { %6445 = vmatmul.msk.f32.gmra.mxu0 %vm488_vm0, %v2991_v5  ;;  %v2993_v5 = vld [vmem:[#allocation2 + $0xa9] sm:$0xff] }
 0x31d   : > { %6437 = vmatmul.msk.f32.gmra.mxu3 %vm488_vm0, %v1794_v57  ;;  %v2715_v57 = vld [vmem:[#allocation2 + $0x270] sm:$0xff]  ;;  %v8347_v1 = vpop.f32.mrf.mxu2 }
 0x31f   : > { %v8327_v12 = vpop.f32.mrf.mxu0 }
 0x320   : > { %9860 = vst [vmem:[#allocation17_spill] sm:$0xff] %v8327_v12  ;;  %v8343_v12 = vpop.f32.mrf.mxu3 }
 0x322   : > { %6446 = vmatmul.msk.f32.gmra.mxu0 %vm488_vm0, %v2992_v13  ;;  %v2994_v13 = vld [vmem:[#allocation2 + $0xb1] sm:$0xff] }
 0x325   : > { %6438 = vmatmul.msk.f32.gmra.mxu3 %vm488_vm0, %v2714_v53  ;;  %v8350_v53 = vpop.f32.mrf.mxu1  ;;  %v8356_v10 = vpop.f32.mrf.mxu2 }
 0x327   : > { %v8337_v56 = vpop.f32.mrf.mxu0 }
 0x328   : > { %9861 = vst [vmem:[#allocation101_spill] sm:$0xff] %v8337_v56  ;;  %v8354_v11 = vpop.f32.mrf.mxu3 }
 0x32a   : > { %6447 = vmatmul.msk.f32.gmra.mxu0 %vm488_vm0, %v2993_v5 }
 0x32d   : > { %6439 = vmatmul.msk.f32.gmra.mxu3 %vm488_vm0, %v2715_v57  ;;  %v8359_v5 = vpop.f32.mrf.mxu1 }
 0x32f   : > { %v8345_v39 = vpop.f32.mrf.mxu0 }
 0x330   : > { %9862 = vst [vmem:[#allocation102_spill] sm:$0xff] %v8345_v39  ;;  %v2996_v39 = vld [vmem:[#allocation2 + $0xd1] sm:$0xff]  ;;  %v8364_v17 = vpop.f32.mrf.mxu3 }
 0x332   : > { %6448 = vmatmul.msk.f32.gmra.mxu0 %vm488_vm0, %v2994_v13  ;;  %v8366_v13 = vpop.f32.mrf.mxu2 }
 0x335   : > { %v8370_v21 = vpop.f32.mrf.mxu1 }
 0x336   : > { %9866 = vst [vmem:[#allocation106_spill] sm:$0xff] %v8370_v21 }
 0x337   : > { %v8352_v56 = vpop.f32.mrf.mxu0 }
 0x338   : > { %9863 = vst [vmem:[#allocation103_spill] sm:$0xff] %v8352_v56  ;;  %v2997_v56 = vld [vmem:[#allocation2 + $0xe9] sm:$0xff]  ;;  %v8373_v59 = vpop.f32.mrf.mxu3 }
 0x339   : > { %9867 = vst [vmem:[#allocation107_spill] sm:$0xff] %v8373_v59 }
 0x33a   : > { %6449 = vmatmul.msk.f32.gmra.mxu0 %vm488_vm0, %v2995_v41  ;;  %v8375_v41 = vpop.f32.mrf.mxu2 }
 0x33b   : > { %9868 = vst [vmem:[#allocation108_spill] sm:$0xff] %v8375_v41 }
 0x33f   : > { %v8361_v57 = vpop.f32.mrf.mxu0 }
 0x340   : > { %9864 = vst [vmem:[#allocation104_spill] sm:$0xff] %v8361_v57  ;;  %v8382_v57 = vpop.f32.mrf.mxu1 }
 0x341   : > { %9870 = vst [vmem:[#allocation110_spill] sm:$0xff] %v8382_v57 }
 0x342   : > { %6450 = vmatmul.msk.f32.gmra.mxu0 %vm488_vm0, %v2996_v39  ;;  %v6542_v39 = vld [vmem:[%s9718_s5 + $0x10] sm:$0xff] }
 0x343   : > { %4084 = vmatpush.msra.mxu3 %v6542_v39 }
 0x347   : > { %v8368_v2 = vpop.f32.mrf.mxu0 }
 0x348   : > { %9865 = vst [vmem:[#allocation105_spill] sm:$0xff] %v8368_v2  ;;  %v8386_v2 = vpop.f32.mrf.mxu3 }
 0x34a   : > { %6451 = vmatmul.msk.f32.gmra.mxu0 %vm488_vm0, %v2997_v56  ;;  %v8390_v56 = vpop.f32.mrf.mxu2 }
 0x34f   : > { %v8377_v58 = vpop.f32.mrf.mxu0 }
 0x350   : > { %9869 = vst [vmem:[#allocation109_spill] sm:$0xff] %v8377_v58  ;;  %v8394_v58 = vpop.f32.mrf.mxu1  ;;  %v8398_v59 = vpop.f32.mrf.mxu3 }
 0x351   : > { %9872 = vst [vmem:[#allocation112_spill] sm:$0xff] %v8394_v58 }
 0x352   : > { %6452 = vmatmul.msk.f32.gmra.mxu0 %vm488_vm0, %v7911_v0  ;;  %v8400_v57 = vpop.f32.mrf.mxu2 }
 0x353   : > { %9874 = vst [vmem:[#allocation114_spill] sm:$0xff] %v8400_v57 }
 0x357   : > { %v8388_v21 = vpop.f32.mrf.mxu0 }
 0x358   : > { %9871 = vst [vmem:[#allocation111_spill] sm:$0xff] %v8388_v21  ;;  %v8404_v0 = vpop.f32.mrf.mxu1  ;;  %v8410_v21 = vpop.f32.mrf.mxu3 }
 0x359   : > { %9875 = vst [vmem:[#allocation115_spill] sm:$0xff] %v8404_v0 }
 0x35a   : > { %6453 = vmatmul.msk.f32.gmra.mxu0 %vm488_vm0, %v7928_v14  ;;  %9877 = vst [vmem:[#allocation117_spill] sm:$0xff] %v8410_v21  ;;  %v8412_v14 = vpop.f32.mrf.mxu2 }
 0x35b   : > { %9878 = vst [vmem:[#allocation118_spill] sm:$0xff] %v8412_v14  ;;  %v9884_v14 = vmov 0.0  }
 0x35f   : > { %v8396_v41 = vpop.f32.mrf.mxu0 }
 0x360   : > { %9873 = vst [vmem:[#allocation113_spill] sm:$0xff] %v8396_v41  ;;  %v8416_v41 = vpop.f32.mrf.mxu1  ;;  %v8420_v57 = vpop.f32.mrf.mxu3 }
 0x361   : > { %9880 = vst [vmem:[#allocation120_spill] sm:$0xff] %v8416_v41 }
 0x362   : > { %6454 = vmatmul.msk.f32.gmra.mxu0 %vm488_vm0, %v7945_v8  ;;  %9881 = vst [vmem:[#allocation121_spill] sm:$0xff] %v8420_v57  ;;  %v8422_v8 = vpop.f32.mrf.mxu2 }
 0x363   : > { %9882 = vst [vmem:[#allocation122_spill] sm:$0xff] %v8422_v8 }
 0x367   : > { %v8406_v39 = vpop.f32.mrf.mxu0 }
 0x368   : > { %9876 = vst [vmem:[#allocation116_spill] sm:$0xff] %v8406_v39  ;;  %v8427_v39 = vld [vmem:[%s9717_s4] ss:$0 sm:$0xff]  ;;  %v8433_v41 = vpop.f32.mrf.mxu1  ;;  %v8439_v57 = vpop.f32.mrf.mxu3 }
 0x369   : > { %9883 = vst [vmem:[#allocation123_spill] sm:$0xff] %v8433_v41 }
 0x36a   : > { %6455 = vmatmul.msk.f32.gmra.mxu0 %vm488_vm0, %v7960_v43 }
 0x36f   : > { %v8414_v58 = vpop.f32.mrf.mxu0 }
 0x370   : > { %9879 = vst [vmem:[#allocation119_spill] sm:$0xff] %v8414_v58  ;;  %v6608_v58 = vld [vmem:[%s9718_s5 + $0x20] sm:$0xff] }
 0x371   : > { %4635 = vmatpush.msrb.mxu2 %v6608_v58  ;;  %v8452_v58 = vpop.f32.mrf.mxu1 }
 0x372   : > { %6456 = vmatmul.msk.f32.gmra.mxu0 %vm488_vm0, %v7976_v48  ;;  %9885 = vst [vmem:[#allocation124_spill] sm:$0xff] %v8452_v58 }
 0x377   : > { %v3150_v43 = vpop.f32.mrf.mxu0 }
 0x378   : > { %v3258_v0 = vadd.f32 %v3150_v43, %v8141_v33  ;;  %v8443_v43 = vpop.f32.mrf.mxu2 }
 0x37a   : > { %v3298_v48 = vadd.f32 %v8427_v39, %v3258_v0  ;;  %6457 = vmatmul.msk.f32.gmra.mxu0 %vm488_vm0, %v7998_v32  ;;  %v6575_v0 = vld [vmem:[%s9718_s5 + $0x18] sm:$0xff] }
 0x37b   : > { %4360 = vmatpush.msrb.mxu1 %v6575_v0 }
 0x37c   : > { %v3334_v8 = vmax.f32 %v3298_v48, 0.0 }
 0x37e   : > { %3370 = vst.msk [vmem:[#allocation3 + $0x8] sm:$0xff] %vm488_vm0, %v3334_v8 }
 0x37f   : > { %3446 = vst.msk [vmem:[#allocation3 + $0x8] sm:$0xff] %vm488_vm0, %v9884_v14  ;;  %v3153_v33 = vpop.f32.mrf.mxu0 }
 0x380   : > { %v3259_v21 = vadd.f32 %v3153_v33, %v8161_v18  ;;  %v8460_v33 = vpop.f32.mrf.mxu3 }
 0x382   : > { %v3299_v32 = vadd.f32 %v8427_v39, %v3259_v21  ;;  %6458 = vmatmul.msk.f32.gmra.mxu0 %vm488_vm0, %v8020_v31  ;;  %v8462_v31 = vpop.f32.mrf.mxu2 }
 0x383   : > { %9886 = vst [vmem:[#allocation125_spill] sm:$0xff] %v8462_v31 }
 0x384   : > { %v3335_v8 = vmax.f32 %v3299_v32, 0.0 }
 0x386   : > { %3371 = vst.msk [vmem:[#allocation3 + $0x10] sm:$0xff] %vm488_vm0, %v3335_v8  ;;  %v3487_v48 = vld [vmem:[#allocation3 + $0x8] sm:$0xff]  ;;  %v8467_v8 = vpop.f32.mrf.mxu1 }
 0x387   : > { %v3454_v41 = vld [vmem:[#allocation3 + $0x7] sm:$0xff]  ;;  %3447 = vst.msk [vmem:[#allocation3 + $0x10] sm:$0xff] %vm488_vm0, %v9884_v14  ;;  %v3156_v18 = vpop.f32.mrf.mxu0  ;;  %6478 = vmatmul.msk.f32.vlgmr.msra.gmra.mxu1 %vm488_vm0, %v3487_v48 }
 0x388   : > { %6510 = vmatmul.msk.f32.vlgmr.msra.gmra.mxu2 %vm488_vm0, %v3454_v41  ;;  %v3260_v21 = vadd.f32 %v3156_v18, %v8181_v46  ;;  %9887 = vst [vmem:[#allocation126_spill] sm:$0xff] %v8467_v8 }
 0x38a   : > { %v3300_v0 = vadd.f32 %v8427_v39, %v3260_v21  ;;  %6459 = vmatmul.msk.f32.gmra.mxu0 %vm488_vm0, %v8039_v47  ;;  %v8477_v47 = vpop.f32.mrf.mxu3  ;;  %v8479_v21 = vpop.f32.mrf.mxu2 }
 0x38c   : > { %v3336_v32 = vmax.f32 %v3300_v0, 0.0 }
 0x38e   : > { %3372 = vst.msk [vmem:[#allocation3 + $0x28] sm:$0xff] %vm488_vm0, %v3336_v32  ;;  %v3488_v14 = vld [vmem:[#allocation3 + $0x10] sm:$0xff] }
 0x38f   : > { %v3455_v48 = vld [vmem:[#allocation3 + $0xf] sm:$0xff]  ;;  %v3159_v41 = vpop.f32.mrf.mxu0  ;;  %6479 = vmatmul.msk.f32.gmra.mxu1 %vm488_vm0, %v3488_v14 }
 0x390   : > { %v3939_v58 = vld [vmem:[#allocation3 + $0x9] sm:$0xff]  ;;  %6511 = vmatmul.msk.f32.gmra.mxu2 %vm488_vm0, %v3455_v48  ;;  %v3261_v46 = vadd.f32 %v3159_v41, %v8197_v3  ;;  %v3940_v31 = vld [vmem:[#allocation3 + $0x11] sm:$0xff]  ;;  %v8484_v3 = vpop.f32.mrf.mxu1 }
 0x391   : > { %6543 = vmatmul.msk.f32.vlgmr.msra.gmra.mxu3 %vm488_vm0, %v3939_v58 }
 0x392   : > { %v3301_v18 = vadd.f32 %v8427_v39, %v3261_v46  ;;  %6460 = vmatmul.msk.f32.gmra.mxu0 %vm488_vm0, %v8058_v6  ;;  %v8491_v41 = vpop.f32.mrf.mxu3 }
 0x394   : > { %v3337_v0 = vmax.f32 %v3301_v18, 0.0 }
 0x395   : > { %v3489_v32 = vld [vmem:[#allocation3 + $0x28] sm:$0xff] }
 0x396   : > { %v3456_v8 = vld [vmem:[#allocation3 + $0x27] sm:$0xff]  ;;  %3373 = vst.msk [vmem:[#allocation3 + $0x30] sm:$0xff] %vm488_vm0, %v3337_v0 }
 0x397   : > { %v3162_v14 = vpop.f32.mrf.mxu0  ;;  %6480 = vmatmul.msk.f32.gmra.mxu1 %vm488_vm0, %v3489_v32  ;;  %v8493_v32 = vpop.f32.mrf.mxu2 }
 0x398   : > { %6512 = vmatmul.msk.f32.gmra.mxu2 %vm488_vm0, %v3456_v8  ;;  %v3262_v58 = vadd.f32 %v3162_v14, %v8212_v27 }
 0x399   : > { %6544 = vmatmul.msk.f32.gmra.mxu3 %vm488_vm0, %v3940_v31 }
 0x39a   : > { %v3302_v6 = vadd.f32 %v8427_v39, %v3262_v58  ;;  %6461 = vmatmul.msk.f32.gmra.mxu0 %vm488_vm0, %v8077_v9  ;;  %v8500_v9 = vpop.f32.mrf.mxu1 }
 0x39b   : > { %9888 = vst [vmem:[#allocation127_spill] sm:$0xff] %v8500_v9 }
 0x39c   : > { %v3338_v48 = vmax.f32 %v3302_v6, 0.0 }
 0x39d   : > { %v3490_v46 = vld [vmem:[#allocation3 + $0x30] sm:$0xff] }
 0x39e   : > { %v3457_v18 = vld [vmem:[#allocation3 + $0x2f] sm:$0xff]  ;;  %3374 = vst.msk [vmem:[#allocation3 + $0x48] sm:$0xff] %vm488_vm0, %v3338_v48  ;;  %v8508_v48 = vpop.f32.mrf.mxu3 }
 0x39f   : > { %v3941_v0 = vld [vmem:[#allocation3 + $0x29] sm:$0xff]  ;;  %v3165_v8 = vpop.f32.mrf.mxu0  ;;  %6481 = vmatmul.msk.f32.gmra.mxu1 %vm488_vm0, %v3490_v46 }
 0x3a0   : > { %6513 = vmatmul.msk.f32.gmra.mxu2 %vm488_vm0, %v3457_v18  ;;  %v3263_v27 = vadd.f32 %v3165_v8, %v8225_v35  ;;  %v3942_v35 = vld [vmem:[#allocation3 + $0x31] sm:$0xff]  ;;  %v8513_v18 = vpop.f32.mrf.mxu2 }
 0x3a1   : > { %6545 = vmatmul.msk.f32.gmra.mxu3 %vm488_vm0, %v3941_v0 }
 0x3a2   : > { %v3303_v31 = vadd.f32 %v8427_v39, %v3263_v27  ;;  %6462 = vmatmul.msk.f32.gmra.mxu0 %vm488_vm0, %v8097_v38  ;;  %v8520_v8 = vpop.f32.mrf.mxu1 }
 0x3a3   : > { %9889 = vst [vmem:[#allocation128_spill] sm:$0xff] %v8520_v8 }
 0x3a4   : > { %v3339_v14 = vmax.f32 %v3303_v31, 0.0 }
 0x3a5   : > { %v3491_v58 = vld [vmem:[#allocation3 + $0x48] sm:$0xff] }
 0x3a6   : > { %v8505_v6 = vld [vmem:[#allocation3 + $0x47] sm:$0xff]  ;;  %3375 = vst.msk [vmem:[#allocation3 + $0x50] sm:$0xff] %vm488_vm0, %v3339_v14 }
 0x3a7   : > { %v3168_v46 = vpop.f32.mrf.mxu0  ;;  %6482 = vmatmul.msk.f32.gmra.mxu1 %vm488_vm0, %v3491_v58 }
 0x3a8   : > { %6514 = vmatmul.msk.f32.gmra.mxu2 %vm488_vm0, %v8505_v6  ;;  %v3264_v0 = vadd.f32 %v3168_v46, %v8238_v40  ;;  %v8532_v46 = vpop.f32.mrf.mxu2 }
 0x3a9   : > { %6546 = vmatmul.msk.f32.gmra.mxu3 %vm488_vm0, %v3942_v35  ;;  %9890 = vst [vmem:[#allocation129_spill] sm:$0xff] %v8532_v46 }
 0x3aa   : > { %v3304_v38 = vadd.f32 %v8427_v39, %v3264_v0  ;;  %6463 = vmatmul.msk.f32.gmra.mxu0 %vm488_vm0, %v8119_v36  ;;  %v8530_v36 = vpop.f32.mrf.mxu3 }
 0x3ac   : > { %v3340_v27 = vmax.f32 %v3304_v38, 0.0 }
 0x3ad   : > { %v3492_v31 = vld [vmem:[#allocation3 + $0x50] sm:$0xff] }
 0x3ae   : > { %v8522_v14 = vld [vmem:[#allocation3 + $0x4f] sm:$0xff]  ;;  %3376 = vst.msk [vmem:[#allocation3 + $0x68] sm:$0xff] %vm488_vm0, %v3340_v27 }
 0x3af   : > { %v3943_v58 = vld [vmem:[#allocation3 + $0x49] sm:$0xff]  ;;  %v3171_v9 = vpop.f32.mrf.mxu0  ;;  %6483 = vmatmul.msk.f32.gmra.mxu1 %vm488_vm0, %v3492_v31  ;;  %v8539_v31 = vpop.f32.mrf.mxu1 }
 0x3b0   : > { %6515 = vmatmul.msk.f32.gmra.mxu2 %vm488_vm0, %v8522_v14  ;;  %v3265_v40 = vadd.f32 %v3171_v9, %v8252_v42  ;;  %9891 = vst [vmem:[#allocation130_spill] sm:$0xff] %v8539_v31  ;;  %v3944_v9 = vld [vmem:[#allocation3 + $0x51] sm:$0xff] }
 0x3b1   : > { %6547 = vmatmul.msk.f32.gmra.mxu3 %vm488_vm0, %v3943_v58 }
 0x3b2   : > { %v3305_v35 = vadd.f32 %v8427_v39, %v3265_v40  ;;  %6464 = vmatmul.msk.f32.gmra.mxu0 %vm488_vm0, %v8138_v51  ;;  %v8550_v40 = vpop.f32.mrf.mxu3 }
 0x3b3   : > { %9892 = vst [vmem:[#allocation131_spill] sm:$0xff] %v8550_v40 }
 0x3b4   : > { %v3341_v0 = vmax.f32 %v3305_v35, 0.0  ;;  %v8552_v35 = vpop.f32.mrf.mxu2 }
 0x3b5   : > { %v3493_v38 = vld [vmem:[#allocation3 + $0x68] sm:$0xff]  ;;  %9893 = vst [vmem:[#allocation132_spill] sm:$0xff] %v8552_v35 }
 0x3b6   : > { %v8537_v27 = vld [vmem:[#allocation3 + $0x67] sm:$0xff]  ;;  %3377 = vst.msk [vmem:[#allocation3 + $0x70] sm:$0xff] %vm488_vm0, %v3341_v0 }
 0x3b7   : > { %v3174_v42 = vpop.f32.mrf.mxu0  ;;  %6484 = vmatmul.msk.f32.gmra.mxu1 %vm488_vm0, %v3493_v38 }
 0x3b8   : > { %6516 = vmatmul.msk.f32.gmra.mxu2 %vm488_vm0, %v8537_v27  ;;  %v3266_v58 = vadd.f32 %v3174_v42, %v8266_v34  ;;  %v8560_v34 = vpop.f32.mrf.mxu1 }
 0x3b9   : > { %6548 = vmatmul.msk.f32.gmra.mxu3 %vm488_vm0, %v3944_v9  ;;  %9894 = vst [vmem:[#allocation133_spill] sm:$0xff] %v8560_v34  ;;  %v9895_v9 = vld [vmem:[#allocation19_spill] sm:$0xff] }
 0x3ba   : > { %v3306_v51 = vadd.f32 %v8427_v39, %v3266_v58  ;;  %6465 = vmatmul.msk.f32.gmra.mxu0 %vm488_vm0, %v8158_v63  ;;  %v1073_v58 = vadd.f32 %v7787_v23, %v9895_v9 }
 0x3bc   : > { %v3342_v0 = vmax.f32 %v3306_v51, 0.0  ;;  %v1427_v34 = vadd.f32 %v7922_v29, %v1073_v58  ;;  %v8574_v40 = vpop.f32.mrf.mxu2 }
 0x3bd   : > { %v3494_v31 = vld [vmem:[#allocation3 + $0x70] sm:$0xff] }
 0x3be   : > { %v8554_v38 = vld [vmem:[#allocation3 + $0x6f] sm:$0xff]  ;;  %3378 = vst.msk [vmem:[#allocation3 + $0x88] sm:$0xff] %vm488_vm0, %v3342_v0  ;;  %v8569_v0 = vpop.f32.mrf.mxu3 }
 0x3bf   : > { %v3945_v46 = vld [vmem:[#allocation3 + $0x69] sm:$0xff]  ;;  %v3177_v8 = vpop.f32.mrf.mxu0  ;;  %6485 = vmatmul.msk.f32.gmra.mxu1 %vm488_vm0, %v3494_v31 }
 0x3c0   : > { %6517 = vmatmul.msk.f32.gmra.mxu2 %vm488_vm0, %v8554_v38  ;;  %v3267_v63 = vadd.f32 %v3177_v8, %v8278_v15  ;;  %v1735_v8 = vadd.f32 %v7733_v7, %v1427_v34 }
 0x3c1   : > { %6549 = vmatmul.msk.f32.gmra.mxu3 %vm488_vm0, %v3945_v46  ;;  %v8583_v46 = vpop.f32.mrf.mxu1 }
 0x3c2   : > { %v3307_v42 = vadd.f32 %v8427_v39, %v3267_v63  ;;  %6466 = vmatmul.msk.f32.gmra.mxu0 %vm488_vm0, %v8178_v22  ;;  %v3946_v22 = vld [vmem:[#allocation3 + $0x71] sm:$0xff]  ;;  %v9896_v63 = vld [vmem:[#allocation21_spill] sm:$0xff]  ;;  %v2042_v9 = vadd.f32 %v8207_v52, %v1735_v8 }
 0x3c4   : > { %v3343_v51 = vmax.f32 %v3307_v42, 0.0  ;;  %v1076_v42 = vadd.f32 %v7805_v28, %v9896_v63  ;;  %v2349_v28 = vadd.f32 %v8319_v19, %v2042_v9  ;;  %v9899_v63 = vld [vmem:[#allocation23_spill] sm:$0xff] }
 0x3c5   : > { %v3495_v31 = vld [vmem:[#allocation3 + $0x88] sm:$0xff] }
 0x3c6   : > { %v8571_v35 = vld [vmem:[#allocation3 + $0x87] sm:$0xff]  ;;  %3379 = vst.msk [vmem:[#allocation3 + $0x90] sm:$0xff] %vm488_vm0, %v3343_v51  ;;  %v8595_v7 = vpop.f32.mrf.mxu3 }
 0x3c7   : > { %v3180_v15 = vpop.f32.mrf.mxu0  ;;  %6486 = vmatmul.msk.f32.gmra.mxu1 %vm488_vm0, %v3495_v31 }
 0x3c8   : > { %6518 = vmatmul.msk.f32.gmra.mxu2 %vm488_vm0, %v8571_v35  ;;  %v3268_v23 = vadd.f32 %v3180_v15, %v8290_v45  ;;  %v9897_v15 = vld [vmem:[#allocation94_spill] sm:$0xff] }
 0x3c9   : > { %6550 = vmatmul.msk.f32.gmra.mxu3 %vm488_vm0, %v3946_v22  ;;  %v1428_v22 = vadd.f32 %v9897_v15, %v1076_v42  ;;  %v9900_v42 = vld [vmem:[#allocation75_spill] sm:$0xff]  ;;  %v8613_v9 = vpop.f32.mrf.mxu1 }
 0x3ca   : > { %v3308_v29 = vadd.f32 %v8427_v39, %v3268_v23  ;;  %6467 = vmatmul.msk.f32.gmra.mxu0 %vm488_vm0, %v8194_v24  ;;  %v8601_v24 = vpop.f32.mrf.mxu2  ;;  %v9898_v23 = vld [vmem:[#allocation65_spill] sm:$0xff] }
 0x3cb   : > { %v1736_v8 = vadd.f32 %v9898_v23, %v1428_v22 }
 0x3cc   : > { %v3344_v58 = vmax.f32 %v3308_v29, 0.0 }
 0x3cd   : > { %v3496_v51 = vld [vmem:[#allocation3 + $0x90] sm:$0xff]  ;;  %v2043_v19 = vadd.f32 %v8220_v20, %v1736_v8  ;;  %v9902_v8 = vld [vmem:[#allocation67_spill] sm:$0xff] }
 0x3ce   : > { %v8591_v31 = vld [vmem:[#allocation3 + $0x8f] sm:$0xff]  ;;  %3380 = vst.msk [vmem:[#allocation3 + $0xa8] sm:$0xff] %vm488_vm0, %v3344_v58  ;;  %v1079_v58 = vadd.f32 %v9900_v42, %v9899_v63  ;;  %v8625_v23 = vpop.f32.mrf.mxu3 }
 0x3cf   : > { %v3947_v45 = vld [vmem:[#allocation3 + $0x89] sm:$0xff]  ;;  %v3183_v34 = vpop.f32.mrf.mxu0  ;;  %6487 = vmatmul.msk.f32.gmra.mxu1 %vm488_vm0, %v3496_v51  ;;  %v2656_v51 = vadd.f32 %v8324_v62, %v2349_v28  ;;  %v3948_v62 = vld [vmem:[#allocation3 + $0x91] sm:$0xff]  ;;  %v2350_v20 = vadd.f32 %v8329_v60, %v2043_v19 }
 0x3d0   : > { %6519 = vmatmul.msk.f32.gmra.mxu2 %vm488_vm0, %v8591_v31  ;;  %v3269_v52 = vadd.f32 %v3183_v34, %v8299_v25  ;;  %v9903_v42 = vld [vmem:[#allocation25_spill] sm:$0xff] }
 0x3d1   : > { %6551 = vmatmul.msk.f32.gmra.mxu3 %vm488_vm0, %v3947_v45  ;;  %v9901_v45 = vld [vmem:[#allocation96_spill] sm:$0xff] }
 0x3d2   : > { %v3309_v29 = vadd.f32 %v8427_v39, %v3269_v52  ;;  %6468 = vmatmul.msk.f32.gmra.mxu0 %vm488_vm0, %v8209_v55  ;;  %v1429_v22 = vadd.f32 %v9901_v45, %v1079_v58  ;;  %v2963_v52 = vadd.f32 %v8332_v16, %v2656_v51  ;;  %v8628_v63 = vpop.f32.mrf.mxu2  ;;  %v9904_v58 = vld [vmem:[#allocation78_spill] sm:$0xff] }
 0x3d3   : > { %v1082_v51 = vadd.f32 %v9904_v58, %v9903_v42  ;;  %v9908_v42 = vld [vmem:[#allocation81_spill] sm:$0xff] }
 0x3d4   : > { %v3345_v15 = vmax.f32 %v3309_v29, 0.0  ;;  %v1737_v29 = vadd.f32 %v9902_v8, %v1429_v22 }
 0x3d5   : > { %v3497_v25 = vld [vmem:[#allocation3 + $0xa8] sm:$0xff] }
 0x3d6   : > { %v8615_v34 = vld [vmem:[#allocation3 + $0xa7] sm:$0xff]  ;;  %3381 = vst.msk [vmem:[#allocation3 + $0xb0] sm:$0xff] %vm488_vm0, %v3345_v15  ;;  %v2657_v15 = vadd.f32 %v8335_v4, %v2350_v20  ;;  %v2044_v60 = vadd.f32 %v8233_v50, %v1737_v29  ;;  %v8653_v29 = vpop.f32.mrf.mxu3 }
 0x3d7   : > { %v3186_v55 = vpop.f32.mrf.mxu0  ;;  %6488 = vmatmul.msk.f32.gmra.mxu1 %vm488_vm0, %v3497_v25 }
 0x3d8   : > { %6520 = vmatmul.msk.f32.gmra.mxu2 %vm488_vm0, %v8615_v34  ;;  %v3270_v28 = vadd.f32 %v3186_v55, %v2963_v52  ;;  %v2964_v22 = vadd.f32 %v8343_v12, %v2657_v15  ;;  %v8640_v55 = vpop.f32.mrf.mxu1  ;;  %v2351_v50 = vadd.f32 %v8339_v26, %v2044_v60 }
 0x3d9   : > { %6552 = vmatmul.msk.f32.gmra.mxu3 %vm488_vm0, %v3948_v62 }
 0x3da   : > { %v3310_v16 = vadd.f32 %v8427_v39, %v3270_v28  ;;  %6469 = vmatmul.msk.f32.gmra.mxu0 %vm488_vm0, %v8222_v61  ;;  %v9905_v61 = vld [vmem:[#allocation39_spill] sm:$0xff]  ;;  %v9906_v28 = vld [vmem:[#allocation69_spill] sm:$0xff]  ;;  %v2658_v15 = vadd.f32 %v8347_v1, %v2351_v50  ;;  %v8659_v26 = vpop.f32.mrf.mxu2 }
 0x3db   : > { %v1430_v4 = vadd.f32 %v9905_v61, %v1082_v51  ;;  %v9909_v1 = vld [vmem:[#allocation41_spill] sm:$0xff]  ;;  %v9910_v50 = vld [vmem:[#allocation71_spill] sm:$0xff] }
 0x3dc   : > { %v3346_v19 = vmax.f32 %v3310_v16, 0.0  ;;  %v9907_v16 = vld [vmem:[#allocation27_spill] sm:$0xff] }
 0x3dd   : > { %v3498_v25 = vld [vmem:[#allocation3 + $0xb0] sm:$0xff]  ;;  %v1738_v8 = vadd.f32 %v9906_v28, %v1430_v4  ;;  %v1085_v58 = vadd.f32 %v9908_v42, %v9907_v16  ;;  %v9911_v28 = vld [vmem:[#allocation29_spill] sm:$0xff] }
 0x3de   : > { %v8637_v45 = vld [vmem:[#allocation3 + $0xaf] sm:$0xff]  ;;  %3382 = vst.msk [vmem:[#allocation3 + $0xc8] sm:$0xff] %vm488_vm0, %v3346_v19 }
 0x3df   : > { %v3949_v52 = vld [vmem:[#allocation3 + $0xa9] sm:$0xff]  ;;  %v3189_v62 = vpop.f32.mrf.mxu0  ;;  %6489 = vmatmul.msk.f32.gmra.mxu1 %vm488_vm0, %v3498_v25  ;;  %v2045_v51 = vadd.f32 %v8247_v44, %v1738_v8  ;;  %v9912_v8 = vld [vmem:[#allocation84_spill] sm:$0xff] }
 0x3e0   : > { %6521 = vmatmul.msk.f32.gmra.mxu2 %vm488_vm0, %v8637_v45  ;;  %v3271_v20 = vadd.f32 %v3189_v62, %v2964_v22  ;;  %v3950_v22 = vld [vmem:[#allocation3 + $0xb1] sm:$0xff]  ;;  %v1431_v62 = vadd.f32 %v9909_v1, %v1085_v58  ;;  %v8670_v61 = vpop.f32.mrf.mxu1  ;;  %v8681_v58 = vpop.f32.mrf.mxu3  ;;  %v9914_v1 = vld [vmem:[#allocation72_spill] sm:$0xff] }
 0x3e1   : > { %6553 = vmatmul.msk.f32.gmra.mxu3 %vm488_vm0, %v3949_v52  ;;  %v2965_v52 = vadd.f32 %v8354_v11, %v2658_v15  ;;  %v2352_v44 = vadd.f32 %v8350_v53, %v2045_v51 }
 0x3e2   : > { %v3311_v12 = vadd.f32 %v8427_v39, %v3271_v20  ;;  %6470 = vmatmul.msk.f32.gmra.mxu0 %vm488_vm0, %v8235_v49  ;;  %v1739_v11 = vadd.f32 %v9910_v50, %v1431_v62  ;;  %v9917_v50 = vld [vmem:[#allocation88_spill] sm:$0xff] }
 0x3e3   : > { %v2659_v16 = vadd.f32 %v8356_v10, %v2352_v44 }
 0x3e4   : > { %v3347_v60 = vmax.f32 %v3311_v12, 0.0  ;;  %v1088_v12 = vadd.f32 %v9912_v8, %v9911_v28  ;;  %v2046_v42 = vadd.f32 %v8261_v30, %v1739_v11  ;;  %v9913_v30 = vld [vmem:[#allocation43_spill] sm:$0xff]  ;;  %v9918_v28 = vld [vmem:[#allocation4_spill] sm:$0xff] }
 0x3e5   : > { %v3499_v19 = vld [vmem:[#allocation3 + $0xc8] sm:$0xff] }
 0x3e6   : > { %v8661_v25 = vld [vmem:[#allocation3 + $0xc7] sm:$0xff]  ;;  %3383 = vst.msk [vmem:[#allocation3 + $0xd0] sm:$0xff] %vm488_vm0, %v3347_v60  ;;  %v1432_v10 = vadd.f32 %v9913_v30, %v1088_v12 }
 0x3e7   : > { %v3192_v49 = vpop.f32.mrf.mxu0  ;;  %6490 = vmatmul.msk.f32.gmra.mxu1 %vm488_vm0, %v3499_v19  ;;  %v2966_v19 = vadd.f32 %v8364_v17, %v2659_v16 }
 0x3e8   : > { %6522 = vmatmul.msk.f32.gmra.mxu2 %vm488_vm0, %v8661_v25  ;;  %v3272_v4 = vadd.f32 %v3192_v49, %v2965_v52  ;;  %v8686_v52 = vpop.f32.mrf.mxu2  ;;  %v2353_v49 = vadd.f32 %v8359_v5, %v2046_v42  ;;  %v1740_v62 = vadd.f32 %v9914_v1, %v1432_v10  ;;  %v8696_v17 = vpop.f32.mrf.mxu1  ;;  %v9919_v42 = vld [vmem:[#allocation107_spill] sm:$0xff] }
 0x3e9   : > { %6554 = vmatmul.msk.f32.gmra.mxu3 %vm488_vm0, %v3950_v22  ;;  %9915 = vst [vmem:[#allocation19_spill] sm:$0xff] %v8696_v17 }
 0x3ea   : > { %v3312_v20 = vadd.f32 %v8427_v39, %v3272_v4  ;;  %6471 = vmatmul.msk.f32.gmra.mxu0 %vm488_vm0, %v8249_v54  ;;  %v9916_v4 = vld [vmem:[#allocation31_spill] sm:$0xff]  ;;  %v2047_v8 = vadd.f32 %v9918_v28, %v1740_v62  ;;  %v9927_v28 = vld [vmem:[#allocation108_spill] sm:$0xff] }
 0x3eb   : > { %v1091_v11 = vadd.f32 %v9917_v50, %v9916_v4  ;;  %v9925_v4 = vld [vmem:[#allocation33_spill] sm:$0xff]  ;;  %v9926_v50 = vld [vmem:[#allocation91_spill] sm:$0xff] }
 0x3ec   : > { %v3348_v53 = vmax.f32 %v3312_v20, 0.0  ;;  %v2660_v20 = vadd.f32 %v8366_v13, %v2353_v49  ;;  %v9920_v13 = vld [vmem:[#allocation46_spill] sm:$0xff] }
 0x3ed   : > { %v3500_v15 = vld [vmem:[#allocation3 + $0xd0] sm:$0xff] }
 0x3ee   : > { %v8683_v51 = vld [vmem:[#allocation3 + $0xcf] sm:$0xff]  ;;  %3384 = vst.msk [vmem:[#allocation3 + $0xe8] sm:$0xff] %vm488_vm0, %v3348_v53  ;;  %v2967_v53 = vadd.f32 %v9919_v42, %v2660_v20  ;;  %v1094_v20 = vadd.f32 %v9926_v50, %v9925_v4 }
 0x3ef   : > { %v3951_v60 = vld [vmem:[#allocation3 + $0xc9] sm:$0xff]  ;;  %v3195_v54 = vpop.f32.mrf.mxu0  ;;  %6491 = vmatmul.msk.f32.gmra.mxu1 %vm488_vm0, %v3500_v15  ;;  %v8709_v15 = vpop.f32.mrf.mxu3 }
 0x3f0   : > { %6523 = vmatmul.msk.f32.gmra.mxu2 %vm488_vm0, %v8683_v51  ;;  %v3273_v22 = vadd.f32 %v3195_v54, %v2966_v19  ;;  %v1433_v19 = vadd.f32 %v9920_v13, %v1091_v11  ;;  %v9921_v54 = vld [vmem:[#allocation106_spill] sm:$0xff]  ;;  %v8716_v10 = vpop.f32.mrf.mxu2  ;;  %v9928_v11 = vld [vmem:[#allocation9_spill] sm:$0xff] }
 0x3f1   : > { %6555 = vmatmul.msk.f32.gmra.mxu3 %vm488_vm0, %v3951_v60  ;;  %v2354_v30 = vadd.f32 %v9921_v54, %v2047_v8  ;;  %9922 = vst [vmem:[#allocation21_spill] sm:$0xff] %v8716_v10  ;;  %v8727_v8 = vpop.f32.mrf.mxu1 }
 0x3f2   : > { %v3313_v44 = vadd.f32 %v8427_v39, %v3273_v22  ;;  %6472 = vmatmul.msk.f32.gmra.mxu0 %vm488_vm0, %v8263_v37  ;;  %v3952_v37 = vld [vmem:[#allocation3 + $0xd1] sm:$0xff]  ;;  %9929 = vst [vmem:[#allocation94_spill] sm:$0xff] %v8727_v8 }
 0x3f3   : > { %v9923_v22 = vld [vmem:[#allocation74_spill] sm:$0xff] }
 0x3f4   : > { %v3349_v5 = vmax.f32 %v3313_v44, 0.0  ;;  %v1741_v1 = vadd.f32 %v9923_v22, %v1433_v19  ;;  %v9924_v44 = vld [vmem:[#allocation34_spill] sm:$0xff] }
 0x3f5   : > { %v3501_v12 = vld [vmem:[#allocation3 + $0xe8] sm:$0xff]  ;;  %v6674_v19 = vld [vmem:[%s9718_s5 + $0x30] sm:$0xff] }
 0x3f6   : > { %v8705_v16 = vld [vmem:[#allocation3 + $0xe7] sm:$0xff]  ;;  %3385 = vst.msk [vmem:[#allocation3 + $0xf0] sm:$0xff] %vm488_vm0, %v3349_v5  ;;  %v2661_v5 = vadd.f32 %v9927_v28, %v2354_v30  ;;  %v9930_v30 = vld [vmem:[#allocation51_spill] sm:$0xff]  ;;  %v9931_v22 = vld [vmem:[#allocation110_spill] sm:$0xff]  ;;  %5186 = vmatpush.msra.mxu0 %v6674_v19 }
 0x3f7   : > { %v3198_v60 = vpop.f32.mrf.mxu0  ;;  %6492 = vmatmul.msk.f32.gmra.mxu1 %vm488_vm0, %v3501_v12  ;;  %v2048_v12 = vadd.f32 %v9928_v11, %v1741_v1  ;;  %v9936_v11 = vld [vmem:[#allocation35_spill] sm:$0xff] }
 0x3f8   : > { %6524 = vmatmul.msk.f32.gmra.mxu2 %vm488_vm0, %v8705_v16  ;;  %v3274_v49 = vadd.f32 %v3198_v60, %v2967_v53  ;;  %v2968_v13 = vadd.f32 %v8386_v2, %v2661_v5  ;;  %v8742_v2 = vpop.f32.mrf.mxu3  ;;  %v8745_v50 = vpop.f32.mrf.mxu2  ;;  %v9935_v5 = vld [vmem:[#allocation6_spill] sm:$0xff] }
 0x3f9   : > { %6556 = vmatmul.msk.f32.gmra.mxu3 %vm488_vm0, %v3952_v37  ;;  %v2355_v1 = vadd.f32 %v9931_v22, %v2048_v12  ;;  %9932 = vst [vmem:[#allocation65_spill] sm:$0xff] %v8742_v2  ;;  %v9945_v2 = vld [vmem:[#allocation114_spill] sm:$0xff] }
 0x3fa   : > { %v3314_v62 = vadd.f32 %v8427_v39, %v3274_v49  ;;  %6473 = vmatmul.msk.f32.gmra.mxu0 %vm488_vm0, %v9924_v44  ;;  %v1434_v49 = vadd.f32 %v9930_v30, %v1094_v20  ;;  %v9933_v44 = vld [vmem:[#allocation77_spill] sm:$0xff]  ;;  %9934 = vst [vmem:[#allocation23_spill] sm:$0xff] %v8745_v50  ;;  %v9944_v50 = vld [vmem:[#allocation8_spill] sm:$0xff] }
 0x3fb   : > { %v2662_v12 = vadd.f32 %v8390_v56, %v2355_v1  ;;  %v9939_v56 = vld [vmem:[#allocation54_spill] sm:$0xff] }
 0x3fc   : > { %v3350_v42 = vmax.f32 %v3314_v62, 0.0  ;;  %v1742_v4 = vadd.f32 %v9933_v44, %v1434_v49  ;;  %v3021_v44 = vld [vmem:[#allocation2 + $0x269] sm:$0xff] }
 0x3fd   : > { %v3502_v53 = vld [vmem:[#allocation3 + $0xf0] sm:$0xff]  ;;  %v2969_v49 = vadd.f32 %v8398_v59, %v2662_v12 }
 0x3fe   : > { %v8729_v60 = vld [vmem:[#allocation3 + $0xef] sm:$0xff]  ;;  %3386 = vst.msk [vmem:[#allocation3 + $0x108] sm:$0xff] %vm488_vm0, %v3350_v42 }
 0x3ff   : > { %v3953_v37 = vld [vmem:[#allocation3 + $0xe9] sm:$0xff]  ;;  %v3201_v54 = vpop.f32.mrf.mxu0  ;;  %6493 = vmatmul.msk.f32.gmra.mxu1 %vm488_vm0, %v3502_v53  ;;  %v9938_v53 = vld [vmem:[#allocation36_spill] sm:$0xff] }
 0x400   : > { %6525 = vmatmul.msk.f32.gmra.mxu2 %vm488_vm0, %v8729_v60  ;;  %v3275_v62 = vadd.f32 %v3201_v54, %v2968_v13  ;;  %v9937_v42 = vld [vmem:[#allocation93_spill] sm:$0xff]  ;;  %v2049_v13 = vadd.f32 %v9938_v53, %v1742_v4  ;;  %v9940_v4 = vld [vmem:[#allocation112_spill] sm:$0xff]  ;;  %v8767_v53 = vpop.f32.mrf.mxu3 }
 0x401   : > { %6557 = vmatmul.msk.f32.gmra.mxu3 %vm488_vm0, %v3953_v37  ;;  %v1097_v20 = vadd.f32 %v9937_v42, %v9936_v11  ;;  %v9941_v11 = vld [vmem:[#allocation80_spill] sm:$0xff]  ;;  %9942 = vst [vmem:[#allocation75_spill] sm:$0xff] %v8767_v53 }
 0x402   : > { %v3315_v28 = vadd.f32 %v8427_v39, %v3275_v62  ;;  %6474 = vmatmul.msk.f32.gmra.mxu0 %vm488_vm0, %v9935_v5  ;;  %v3954_v62 = vld [vmem:[#allocation3 + $0xf1] sm:$0xff] }
 0x403   : > { %v1435_v1 = vadd.f32 %v9939_v56, %v1097_v20  ;;  %v9946_v56 = vld [vmem:[#allocation53_spill] sm:$0xff] }
 0x404   : > { %v3351_v37 = vmax.f32 %v3315_v28, 0.0  ;;  %v3634_v19 = vpop.f32.mrf.mxu1  ;;  %v2356_v28 = vadd.f32 %v9940_v4, %v2049_v13 }
 0x405   : > { %v3503_v54 = vld [vmem:[#allocation3 + $0x108] sm:$0xff]  ;;  %v1743_v42 = vadd.f32 %v9941_v11, %v1435_v1 }
 0x406   : > { %v8754_v30 = vld [vmem:[#allocation3 + $0x107] sm:$0xff]  ;;  %3387 = vst.msk [vmem:[#allocation3 + $0x110] sm:$0xff] %vm488_vm0, %v3351_v37  ;;  %v2663_v20 = vadd.f32 %v9945_v2, %v2356_v28  ;;  %v9950_v28 = vld [vmem:[#allocation115_spill] sm:$0xff] }
 0x407   : > { %v3204_v22 = vpop.f32.mrf.mxu0  ;;  %6494 = vmatmul.msk.f32.gmra.mxu1 %vm488_vm0, %v3503_v54  ;;  %v9943_v54 = vld [vmem:[#allocation37_spill] sm:$0xff]  ;;  %v2050_v13 = vadd.f32 %v9946_v56, %v1743_v42 }
 0x408   : > { %6526 = vmatmul.msk.f32.gmra.mxu2 %vm488_vm0, %v8754_v30  ;;  %v3276_v5 = vadd.f32 %v3204_v22, %v2969_v49  ;;  %v1100_v8 = vadd.f32 %v9944_v50, %v9943_v54  ;;  %v3022_v50 = vld [vmem:[#allocation2 + $0x271] sm:$0xff]  ;;  %v9949_v2 = vld [vmem:[#allocation57_spill] sm:$0xff] }
 0x409   : > { %6558 = vmatmul.msk.f32.gmra.mxu3 %vm488_vm0, %v3954_v62  ;;  %v2357_v42 = vadd.f32 %v9950_v28, %v2050_v13  ;;  %v9957_v28 = vld [vmem:[#allocation121_spill] sm:$0xff] }
 0x40a   : > { %v3316_v59 = vadd.f32 %v8427_v39, %v3276_v5  ;;  %6475 = vmatmul.msk.f32.gmra.mxu0 %vm488_vm0, %v3021_v44  ;;  %v9948_v5 = vld [vmem:[#allocation117_spill] sm:$0xff] }
 0x40b   : > { %v3843_v12 = vpop.f32.mrf.mxu2  ;;  %v2970_v11 = vadd.f32 %v9948_v5, %v2663_v20 }
 0x40c   : > { %v3844_v37 = vadd.f32 %v3843_v12, %v3634_v19  ;;  %v3352_v49 = vmax.f32 %v3316_v59, 0.0  ;;  %v3637_v22 = vpop.f32.mrf.mxu1  ;;  %v1436_v19 = vadd.f32 %v9949_v2, %v1100_v8  ;;  %v9951_v12 = vld [vmem:[#allocation83_spill] sm:$0xff] }
 0x40d   : > { %v3504_v62 = vld [vmem:[#allocation3 + $0x110] sm:$0xff]  ;;  %v9955_v8 = vld [vmem:[#allocation11_spill] sm:$0xff] }
 0x40e   : > { %v8773_v4 = vld [vmem:[#allocation3 + $0x10f] sm:$0xff]  ;;  %3388 = vst.msk [vmem:[#allocation3 + $0x128] sm:$0xff] %vm488_vm0, %v3352_v49  ;;  %v1744_v54 = vadd.f32 %v9951_v12, %v1436_v19 }
 0x40f   : > { %9947 = vst [vmem:[#allocation96_spill] sm:$0xff] %v8773_v4  ;;  %v3955_v1 = vld [vmem:[#allocation3 + $0x109] sm:$0xff]  ;;  %v3207_v44 = vpop.f32.mrf.mxu0  ;;  %6495 = vmatmul.msk.f32.gmra.mxu1 %vm488_vm0, %v3504_v62 }
 0x410   : > { %6527 = vmatmul.msk.f32.gmra.mxu2 %vm488_vm0, %v8773_v4  ;;  %v3277_v59 = vadd.f32 %v3207_v44, %v2970_v11  ;;  %v9952_v49 = vld [vmem:[#allocation38_spill] sm:$0xff]  ;;  %v2051_v2 = vadd.f32 %v9955_v8, %v1744_v54 }
 0x411   : > { %6559 = vmatmul.msk.f32.gmra.mxu3 %vm488_vm0, %v3955_v1  ;;  %v9953_v62 = vld [vmem:[#allocation10_spill] sm:$0xff] }
 0x412   : > { %v3317_v20 = vadd.f32 %v8427_v39, %v3277_v59  ;;  %6476 = vmatmul.msk.f32.gmra.mxu0 %vm488_vm0, %v3022_v50  ;;  %v1103_v5 = vadd.f32 %v9953_v62, %v9952_v49  ;;  %v9954_v4 = vld [vmem:[#allocation118_spill] sm:$0xff]  ;;  %v9961_v49 = vld [vmem:[#allocation40_spill] sm:$0xff] }
 0x413   : > { %v3846_v56 = vpop.f32.mrf.mxu2  ;;  %v2664_v17 = vadd.f32 %v9954_v4, %v2357_v42  ;;  %v9959_v4 = vld [vmem:[#allocation120_spill] sm:$0xff] }
 0x414   : > { %v3847_v53 = vadd.f32 %v3846_v56, %v3637_v22  ;;  %v4086_v10 = vpop.f32.mrf.mxu3  ;;  %v3353_v13 = vmax.f32 %v3317_v20, 0.0  ;;  %v3640_v1 = vpop.f32.mrf.mxu1  ;;  %v8802_v22 = vld [vmem:[#allocation3 + $0x111] sm:$0xff]  ;;  %v2358_v42 = vadd.f32 %v9959_v4, %v2051_v2  ;;  %v9962_v62 = vld [vmem:[#allocation12_spill] sm:$0xff] }
 0x415   : > { %v8790_v11 = vadd.f32 %v4086_v10, %v3844_v37  ;;  %v8792_v44 = vld [vmem:[#allocation3 + $0x128] sm:$0xff]  ;;  %v2971_v50 = vadd.f32 %v9957_v28, %v2664_v17  ;;  %v9958_v10 = vld [vmem:[#allocation59_spill] sm:$0xff]  ;;  %v1106_v8 = vadd.f32 %v9962_v62, %v9961_v49  ;;  %v9964_v2 = vld [vmem:[#allocation56_spill] sm:$0xff] }
 0x416   : > { %v8794_v19 = vld [vmem:[#allocation3 + $0x127] sm:$0xff]  ;;  %3389 = vst.msk [vmem:[#allocation3 + $0x130] sm:$0xff] %vm488_vm0, %v3353_v13  ;;  %v1437_v37 = vadd.f32 %v9958_v10, %v1103_v5  ;;  %v9963_v5 = vld [vmem:[#allocation122_spill] sm:$0xff]  ;;  %v9968_v49 = vld [vmem:[#allocation87_spill] sm:$0xff] }
 0x417   : > { %9956 = vst [vmem:[#allocation67_spill] sm:$0xff] %v8790_v11  ;;  %v3210_v59 = vpop.f32.mrf.mxu0  ;;  %6496 = vmatmul.msk.f32.gmra.mxu1 %vm488_vm0, %v8792_v44  ;;  %v9960_v17 = vld [vmem:[#allocation85_spill] sm:$0xff]  ;;  %v2665_v10 = vadd.f32 %v9963_v5, %v2358_v42  ;;  %v9969_v5 = vld [vmem:[#allocation42_spill] sm:$0xff] }
 0x418   : > { %6528 = vmatmul.msk.f32.gmra.mxu2 %vm488_vm0, %v8794_v19  ;;  %v3278_v12 = vadd.f32 %v3210_v59, %v2971_v50  ;;  %v1745_v54 = vadd.f32 %v9960_v17, %v1437_v37 }
 0x419   : > { %6560 = vmatmul.msk.f32.gmra.mxu3 %vm488_vm0, %v8802_v22 }
 0x41a   : > { %v3318_v20 = vadd.f32 %v8427_v39, %v3278_v12  ;;  %6675 = vmatmul.msk.f32.vlgmr.msra.gmra.mxu0 %vm488_vm0, %v8505_v6  ;;  %v2052_v50 = vadd.f32 %v9964_v2, %v1745_v54  ;;  %v2972_v6 = vadd.f32 %v8439_v57, %v2665_v10  ;;  %v9967_v54 = vld [vmem:[#allocation123_spill] sm:$0xff]  ;;  %v9970_v10 = vld [vmem:[#allocation14_spill] sm:$0xff] }
 0x41b   : > { %v3849_v56 = vpop.f32.mrf.mxu2  ;;  %v1109_v2 = vadd.f32 %v9970_v10, %v9969_v5  ;;  %v9977_v10 = vld [vmem:[#allocation44_spill] sm:$0xff] }
 0x41c   : > { %v3850_v13 = vadd.f32 %v3849_v56, %v3640_v1  ;;  %v4089_v28 = vpop.f32.mrf.mxu3  ;;  %v3354_v59 = vmax.f32 %v3318_v20, 0.0  ;;  %v3643_v11 = vpop.f32.mrf.mxu1  ;;  %v2359_v20 = vadd.f32 %v9967_v54, %v2052_v50  ;;  %v9971_v50 = vld [vmem:[#allocation13_spill] sm:$0xff] }
 0x41d   : > { %v8816_v4 = vadd.f32 %v4089_v28, %v3847_v53  ;;  %v8818_v37 = vld [vmem:[#allocation3 + $0x130] sm:$0xff] }
 0x41e   : > { %v8820_v12 = vld [vmem:[#allocation3 + $0x12f] sm:$0xff]  ;;  %3390 = vst.msk [vmem:[#allocation3 + $0x148] sm:$0xff] %vm488_vm0, %v3354_v59 }
 0x41f   : > { %9965 = vst [vmem:[#allocation25_spill] sm:$0xff] %v8816_v4  ;;  %v8822_v17 = vld [vmem:[#allocation3 + $0x129] sm:$0xff]  ;;  %v3213_v1 = vpop.f32.mrf.mxu0  ;;  %6497 = vmatmul.msk.f32.gmra.mxu1 %vm488_vm0, %v8818_v37 }
 0x420   : > { %6529 = vmatmul.msk.f32.gmra.mxu2 %vm488_vm0, %v8820_v12  ;;  %v9966_v53 = vld [vmem:[#allocation62_spill] sm:$0xff]  ;;  %v3279_v56 = vadd.f32 %v3213_v1, %v2972_v6 }
 0x421   : > { %v1438_v42 = vadd.f32 %v9966_v53, %v1106_v8  ;;  %6561 = vmatmul.msk.f32.gmra.mxu3 %vm488_vm0, %v8822_v17  ;;  %v2666_v8 = vadd.f32 %v8443_v43, %v2359_v20  ;;  %v8854_v43 = vld [vmem:[#allocation3 + $0x131] sm:$0xff] }
 0x422   : > { %v3319_v57 = vadd.f32 %v8427_v39, %v3279_v56  ;;  %6676 = vmatmul.msk.f32.gmra.mxu0 %vm488_vm0, %v8522_v14  ;;  %9973 = vst [vmem:[#allocation39_spill] sm:$0xff] %v8854_v43 }
 0x423   : > { %v1746_v62 = vadd.f32 %v9968_v49, %v1438_v42  ;;  %v3852_v28 = vpop.f32.mrf.mxu2  ;;  %v2973_v49 = vadd.f32 %v8460_v33, %v2666_v8  ;;  %v9976_v33 = vld [vmem:[#allocation90_spill] sm:$0xff]  ;;  %v9978_v8 = vld [vmem:[#allocation16_spill] sm:$0xff] }
 0x424   : > { %v3853_v59 = vadd.f32 %v3852_v28, %v3643_v11  ;;  %v4092_v4 = vpop.f32.mrf.mxu3  ;;  %v3355_v1 = vmax.f32 %v3319_v57, 0.0  ;;  %v3646_v54 = vpop.f32.mrf.mxu1  ;;  %v9974_v11 = vld [vmem:[#allocation64_spill] sm:$0xff] }
 0x425   : > { %v2053_v6 = vadd.f32 %v9971_v50, %v1746_v62  ;;  %v8842_v53 = vadd.f32 %v4092_v4, %v3850_v13  ;;  %v8844_v42 = vld [vmem:[#allocation3 + $0x148] sm:$0xff]  ;;  %v1439_v13 = vadd.f32 %v9974_v11, %v1109_v2  ;;  %v9975_v4 = vld [vmem:[#allocation124_spill] sm:$0xff]  ;;  %v1112_v50 = vadd.f32 %v9978_v8, %v9977_v10 }
 0x426   : > { %v8846_v56 = vld [vmem:[#allocation3 + $0x147] sm:$0xff]  ;;  %3391 = vst.msk [vmem:[#allocation3 + $0x150] sm:$0xff] %vm488_vm0, %v3355_v1 }
 0x427   : > { %9972 = vst [vmem:[#allocation78_spill] sm:$0xff] %v8842_v53  ;;  %v3216_v14 = vpop.f32.mrf.mxu0  ;;  %6498 = vmatmul.msk.f32.gmra.mxu1 %vm488_vm0, %v8844_v42  ;;  %v2360_v20 = vadd.f32 %v9975_v4, %v2053_v6  ;;  %v1747_v57 = vadd.f32 %v9976_v33, %v1439_v13  ;;  %v9979_v2 = vld [vmem:[#allocation125_spill] sm:$0xff]  ;;  %v9980_v6 = vld [vmem:[#allocation15_spill] sm:$0xff] }
 0x428   : > { %6530 = vmatmul.msk.f32.gmra.mxu2 %vm488_vm0, %v8846_v56  ;;  %v3280_v62 = vadd.f32 %v3216_v14, %v2973_v49 }
 0x429   : > { %6562 = vmatmul.msk.f32.gmra.mxu3 %vm488_vm0, %v8854_v43  ;;  %v2667_v11 = vadd.f32 %v9979_v2, %v2360_v20  ;;  %v2054_v49 = vadd.f32 %v9980_v6, %v1747_v57  ;;  %v9983_v20 = vld [vmem:[#allocation126_spill] sm:$0xff]  ;;  %v9985_v2 = vld [vmem:[#allocation47_spill] sm:$0xff] }
 0x42a   : > { %v3320_v28 = vadd.f32 %v8427_v39, %v3280_v62  ;;  %6677 = vmatmul.msk.f32.gmra.mxu0 %vm488_vm0, %v8537_v27 }
 0x42b   : > { %v3855_v5 = vpop.f32.mrf.mxu2  ;;  %v2974_v27 = vadd.f32 %v8477_v47, %v2667_v11  ;;  %v2361_v57 = vadd.f32 %v9983_v20, %v2054_v49  ;;  %v9986_v11 = vld [vmem:[#allocation18_spill] sm:$0xff]  ;;  %v9987_v49 = vld [vmem:[#allocation17_spill] sm:$0xff] }
 0x42c   : > { %v3856_v1 = vadd.f32 %v3855_v5, %v3646_v54  ;;  %v4095_v53 = vpop.f32.mrf.mxu3  ;;  %v3356_v14 = vmax.f32 %v3320_v28, 0.0  ;;  %v3649_v43 = vpop.f32.mrf.mxu1  ;;  %v9984_v5 = vld [vmem:[#allocation92_spill] sm:$0xff]  ;;  %v1115_v6 = vadd.f32 %v9986_v11, %v9985_v2  ;;  %v9990_v2 = vld [vmem:[#allocation50_spill] sm:$0xff] }
 0x42d   : > { %v8868_v4 = vadd.f32 %v4095_v53, %v3853_v59  ;;  %v8870_v13 = vld [vmem:[#allocation3 + $0x150] sm:$0xff]  ;;  %v9991_v11 = vld [vmem:[#allocation20_spill] sm:$0xff] }
 0x42e   : > { %v8872_v62 = vld [vmem:[#allocation3 + $0x14f] sm:$0xff]  ;;  %3392 = vst.msk [vmem:[#allocation3 + $0x168] sm:$0xff] %vm488_vm0, %v3356_v14 }
 0x42f   : > { %9981 = vst [vmem:[#allocation69_spill] sm:$0xff] %v8868_v4  ;;  %v8874_v33 = vld [vmem:[#allocation3 + $0x149] sm:$0xff]  ;;  %v3219_v54 = vpop.f32.mrf.mxu0  ;;  %6499 = vmatmul.msk.f32.gmra.mxu1 %vm488_vm0, %v8870_v13 }
 0x430   : > { %6531 = vmatmul.msk.f32.gmra.mxu2 %vm488_vm0, %v8872_v62  ;;  %v9982_v59 = vld [vmem:[#allocation66_spill] sm:$0xff]  ;;  %v3281_v28 = vadd.f32 %v3219_v54, %v2974_v27 }
 0x431   : > { %v1440_v53 = vadd.f32 %v9982_v59, %v1112_v50  ;;  %6563 = vmatmul.msk.f32.gmra.mxu3 %vm488_vm0, %v8874_v33  ;;  %v2668_v50 = vadd.f32 %v8479_v21, %v2361_v57  ;;  %v8906_v21 = vld [vmem:[#allocation3 + $0x151] sm:$0xff] }
 0x432   : > { %v3321_v47 = vadd.f32 %v8427_v39, %v3281_v28  ;;  %6678 = vmatmul.msk.f32.gmra.mxu0 %vm488_vm0, %v8554_v38 }
 0x433   : > { %v1748_v10 = vadd.f32 %v9984_v5, %v1440_v53  ;;  %v3858_v8 = vpop.f32.mrf.mxu2  ;;  %v2975_v5 = vadd.f32 %v8491_v41, %v2668_v50  ;;  %v9989_v41 = vld [vmem:[#allocation95_spill] sm:$0xff]  ;;  %v1118_v50 = vadd.f32 %v9991_v11, %v9990_v2 }
 0x434   : > { %v3859_v14 = vadd.f32 %v3858_v8, %v3649_v43  ;;  %v4098_v4 = vpop.f32.mrf.mxu3  ;;  %v3357_v54 = vmax.f32 %v3321_v47, 0.0  ;;  %v3652_v20 = vpop.f32.mrf.mxu1  ;;  %v9988_v43 = vld [vmem:[#allocation68_spill] sm:$0xff] }
 0x435   : > { %v2055_v27 = vadd.f32 %v9987_v49, %v1748_v10  ;;  %v8894_v59 = vadd.f32 %v4098_v4, %v3856_v1  ;;  %v8896_v53 = vld [vmem:[#allocation3 + $0x168] sm:$0xff]  ;;  %v1441_v1 = vadd.f32 %v9988_v43, %v1115_v6 }
 0x436   : > { %v8898_v28 = vld [vmem:[#allocation3 + $0x167] sm:$0xff]  ;;  %3393 = vst.msk [vmem:[#allocation3 + $0x170] sm:$0xff] %vm488_vm0, %v3357_v54 }
 0x437   : > { %v3222_v38 = vpop.f32.mrf.mxu0  ;;  %6500 = vmatmul.msk.f32.gmra.mxu1 %vm488_vm0, %v8896_v53  ;;  %v2362_v4 = vadd.f32 %v8484_v3, %v2055_v27  ;;  %v1749_v10 = vadd.f32 %v9989_v41, %v1441_v1  ;;  %v9992_v3 = vld [vmem:[#allocation101_spill] sm:$0xff] }
 0x438   : > { %6532 = vmatmul.msk.f32.gmra.mxu2 %vm488_vm0, %v8898_v28  ;;  %v3282_v57 = vadd.f32 %v3222_v38, %v2975_v5 }
 0x439   : > { %6564 = vmatmul.msk.f32.gmra.mxu3 %vm488_vm0, %v8906_v21  ;;  %v2669_v6 = vadd.f32 %v8493_v32, %v2362_v4  ;;  %v2056_v27 = vadd.f32 %v9992_v3, %v1749_v10  ;;  %v9994_v32 = vld [vmem:[#allocation70_spill] sm:$0xff]  ;;  %v9995_v4 = vld [vmem:[#allocation127_spill] sm:$0xff] }
 0x43a   : > { %v3322_v47 = vadd.f32 %v8427_v39, %v3282_v57  ;;  %6679 = vmatmul.msk.f32.gmra.mxu0 %vm488_vm0, %v8571_v35 }
 0x43b   : > { %v3861_v8 = vpop.f32.mrf.mxu2  ;;  %v2976_v35 = vadd.f32 %v8508_v48, %v2669_v6  ;;  %v2363_v10 = vadd.f32 %v9995_v4, %v2056_v27  ;;  %v9998_v6 = vld [vmem:[#allocation22_spill] sm:$0xff] }
 0x43c   : > { %v3862_v49 = vadd.f32 %v3861_v8, %v3652_v20  ;;  %v4101_v54 = vpop.f32.mrf.mxu3  ;;  %v3358_v5 = vmax.f32 %v3322_v47, 0.0  ;;  %v3655_v43 = vpop.f32.mrf.mxu1  ;;  %v9996_v8 = vld [vmem:[#allocation97_spill] sm:$0xff]  ;;  %v9999_v27 = vld [vmem:[#allocation102_spill] sm:$0xff] }
 0x43d   : > { %v8920_v38 = vadd.f32 %v4101_v54, %v3859_v14  ;;  %v8922_v1 = vld [vmem:[#allocation3 + $0x170] sm:$0xff]  ;;  %v1442_v14 = vadd.f32 %v9994_v32, %v1118_v50  ;;  %v9997_v54 = vld [vmem:[#allocation52_spill] sm:$0xff]  ;;  %v2670_v50 = vadd.f32 %v8513_v18, %v2363_v10 }
 0x43e   : > { %v8924_v57 = vld [vmem:[#allocation3 + $0x16f] sm:$0xff]  ;;  %3394 = vst.msk [vmem:[#allocation3 + $0x188] sm:$0xff] %vm488_vm0, %v3358_v5  ;;  %v1121_v3 = vadd.f32 %v9998_v6, %v9997_v54  ;;  %v10006_v6 = vld [vmem:[#allocation55_spill] sm:$0xff] }
 0x43f   : > { %9993 = vst [vmem:[#allocation27_spill] sm:$0xff] %v8920_v38  ;;  %v8926_v41 = vld [vmem:[#allocation3 + $0x169] sm:$0xff]  ;;  %v3225_v20 = vpop.f32.mrf.mxu0  ;;  %6501 = vmatmul.msk.f32.gmra.mxu1 %vm488_vm0, %v8922_v1  ;;  %v1750_v2 = vadd.f32 %v9996_v8, %v1442_v14  ;;  %v8958_v18 = vld [vmem:[#allocation3 + $0x171] sm:$0xff] }
 0x440   : > { %6533 = vmatmul.msk.f32.gmra.mxu2 %vm488_vm0, %v8924_v57  ;;  %v3283_v47 = vadd.f32 %v3225_v20, %v2976_v35  ;;  %10002 = vst [vmem:[#allocation71_spill] sm:$0xff] %v8958_v18 }
 0x441   : > { %6565 = vmatmul.msk.f32.gmra.mxu3 %vm488_vm0, %v8926_v41  ;;  %v2057_v35 = vadd.f32 %v9999_v27, %v1750_v2 }
 0x442   : > { %v3323_v48 = vadd.f32 %v8427_v39, %v3283_v47  ;;  %6680 = vmatmul.msk.f32.gmra.mxu0 %vm488_vm0, %v8591_v31  ;;  %v2977_v47 = vadd.f32 %v8530_v36, %v2670_v50  ;;  %v10005_v36 = vld [vmem:[#allocation98_spill] sm:$0xff] }
 0x443   : > { %v3864_v11 = vpop.f32.mrf.mxu2 }
 0x444   : > { %v3865_v5 = vadd.f32 %v3864_v11, %v3655_v43  ;;  %v4104_v38 = vpop.f32.mrf.mxu3  ;;  %v3359_v20 = vmax.f32 %v3323_v48, 0.0  ;;  %v3658_v4 = vpop.f32.mrf.mxu1  ;;  %v10004_v43 = vld [vmem:[#allocation128_spill] sm:$0xff] }
 0x445   : > { %v8946_v32 = vadd.f32 %v4104_v38, %v3862_v49  ;;  %v8948_v14 = vld [vmem:[#allocation3 + $0x188] sm:$0xff]  ;;  %v2364_v10 = vadd.f32 %v10004_v43, %v2057_v35  ;;  %v8968_v48 = vld [vmem:[%s9717_s4] ss:$0 sm:$0xff] }
 0x446   : > { %10001 = vst [vmem:[#allocation41_spill] sm:$0xff] %v8948_v14  ;;  %v8950_v39 = vld [vmem:[#allocation3 + $0x187] sm:$0xff] }
 0x447   : > { %10000 = vst [vmem:[#allocation81_spill] sm:$0xff] %v8946_v32  ;;  %v3228_v31 = vpop.f32.mrf.mxu0  ;;  %6502 = vmatmul.msk.f32.gmra.mxu1 %vm488_vm0, %v8948_v14  ;;  %v10003_v49 = vld [vmem:[#allocation73_spill] sm:$0xff] }
 0x448   : > { %3395 = vst.msk [vmem:[#allocation3 + $0x190] sm:$0xff] %vm488_vm0, %v3359_v20  ;;  %6534 = vmatmul.msk.f32.gmra.mxu2 %vm488_vm0, %v8950_v39  ;;  %v1443_v38 = vadd.f32 %v10003_v49, %v1121_v3  ;;  %v3284_v8 = vadd.f32 %v3228_v31, %v2977_v47  ;;  %v10007_v3 = vld [vmem:[#allocation24_spill] sm:$0xff]  ;;  %v10008_v20 = vld [vmem:[#allocation129_spill] sm:$0xff]  ;;  %v10009_v31 = vld [vmem:[#allocation103_spill] sm:$0xff] }
 0x449   : > { %6566 = vmatmul.msk.f32.gmra.mxu3 %vm488_vm0, %v8958_v18  ;;  %v1124_v50 = vadd.f32 %v10007_v3, %v10006_v6  ;;  %v2671_v47 = vadd.f32 %v10008_v20, %v2364_v10  ;;  %v10015_v6 = vld [vmem:[#allocation99_spill] sm:$0xff] }
 0x44a   : > { %v1751_v2 = vadd.f32 %v10005_v36, %v1443_v38  ;;  %v3324_v11 = vadd.f32 %v8968_v48, %v3284_v8  ;;  %6681 = vmatmul.msk.f32.gmra.mxu0 %vm488_vm0, %v8615_v34  ;;  %v10012_v34 = vld [vmem:[#allocation131_spill] sm:$0xff] }
 0x44b   : > { %v3867_v54 = vpop.f32.mrf.mxu2  ;;  %v2978_v14 = vadd.f32 %v10012_v34, %v2671_v47  ;;  %v10016_v47 = vld [vmem:[#allocation58_spill] sm:$0xff] }
 0x44c   : > { %v3868_v27 = vadd.f32 %v3867_v54, %v3658_v4  ;;  %v4107_v35 = vpop.f32.mrf.mxu3  ;;  %v2058_v49 = vadd.f32 %v10009_v31, %v1751_v2  ;;  %v3360_v38 = vmax.f32 %v3324_v11, 0.0  ;;  %v3661_v36 = vpop.f32.mrf.mxu1  ;;  %v10014_v2 = vld [vmem:[#allocation130_spill] sm:$0xff] }
 0x44d   : > { %v8977_v43 = vadd.f32 %v4107_v35, %v3865_v5  ;;  %v10013_v5 = vld [vmem:[#allocation76_spill] sm:$0xff]  ;;  %v10017_v31 = vld [vmem:[#allocation26_spill] sm:$0xff] }
 0x44e   : > { %3396 = vst.msk [vmem:[#allocation3 + $0x1a8] sm:$0xff] %vm488_vm0, %v3360_v38  ;;  %v1444_v10 = vadd.f32 %v10013_v5, %v1124_v50  ;;  %v2365_v11 = vadd.f32 %v10014_v2, %v2058_v49  ;;  %v1127_v38 = vadd.f32 %v10017_v31, %v10016_v47  ;;  %v10018_v50 = vld [vmem:[#allocation132_spill] sm:$0xff] }
 0x44f   : > { %10010 = vst [vmem:[#allocation29_spill] sm:$0xff] %v8977_v43  ;;  %v8979_v32 = vld [vmem:[#allocation3 + $0x190] sm:$0xff]  ;;  %v3231_v4 = vpop.f32.mrf.mxu0  ;;  %v10019_v49 = vld [vmem:[#allocation104_spill] sm:$0xff] }
 0x450   : > { %v8981_v8 = vld [vmem:[#allocation3 + $0x18f] sm:$0xff]  ;;  %6503 = vmatmul.msk.f32.gmra.mxu1 %vm488_vm0, %v8979_v32  ;;  %v3285_v54 = vadd.f32 %v3231_v4, %v2978_v14  ;;  %v1752_v3 = vadd.f32 %v10015_v6, %v1444_v10  ;;  %v2672_v5 = vadd.f32 %v10018_v50, %v2365_v11  ;;  %v10024_v50 = vld [vmem:[#allocation60_spill] sm:$0xff] }
 0x451   : > { %v8983_v18 = vld [vmem:[#allocation3 + $0x189] sm:$0xff]  ;;  %6535 = vmatmul.msk.f32.gmra.mxu2 %vm488_vm0, %v8981_v8 }
 0x452   : > { %10011 = vst [vmem:[#allocation84_spill] sm:$0xff] %v8983_v18  ;;  %6567 = vmatmul.msk.f32.gmra.mxu3 %vm488_vm0, %v8983_v18  ;;  %v3325_v35 = vadd.f32 %v8968_v48, %v3285_v54  ;;  %6682 = vmatmul.msk.f32.gmra.mxu0 %vm488_vm0, %v8637_v45  ;;  %v2059_v14 = vadd.f32 %v10019_v49, %v1752_v3  ;;  %v10022_v11 = vld [vmem:[#allocation133_spill] sm:$0xff] }
 0x453   : > { %v3870_v20 = vpop.f32.mrf.mxu2  ;;  %v2979_v6 = vadd.f32 %v8569_v0, %v2672_v5  ;;  %v10023_v0 = vld [vmem:[#allocation100_spill] sm:$0xff] }
 0x454   : > { %v3871_v34 = vadd.f32 %v3870_v20, %v3661_v36  ;;  %v4110_v43 = vpop.f32.mrf.mxu3  ;;  %v3361_v4 = vmax.f32 %v3325_v35, 0.0  ;;  %v3664_v18 = vpop.f32.mrf.mxu1  ;;  %v9015_v36 = vld [vmem:[#allocation3 + $0x191] sm:$0xff]  ;;  %v2366_v3 = vadd.f32 %v10022_v11, %v2059_v14  ;;  %v10025_v5 = vld [vmem:[#allocation28_spill] sm:$0xff]  ;;  %v10026_v14 = vld [vmem:[#allocation105_spill] sm:$0xff] }
 0x455   : > { %v9003_v2 = vadd.f32 %v4110_v43, %v3868_v27  ;;  %v9005_v10 = vld [vmem:[#allocation3 + $0x1a8] sm:$0xff]  ;;  %v10021_v27 = vld [vmem:[#allocation79_spill] sm:$0xff]  ;;  %v1130_v49 = vadd.f32 %v10025_v5, %v10024_v50  ;;  %v10030_v5 = vld [vmem:[#allocation30_spill] sm:$0xff] }
 0x456   : > { %v9007_v54 = vld [vmem:[#allocation3 + $0x1a7] sm:$0xff]  ;;  %3397 = vst.msk [vmem:[#allocation3 + $0x1b0] sm:$0xff] %vm488_vm0, %v3361_v4  ;;  %v1445_v43 = vadd.f32 %v10021_v27, %v1127_v38  ;;  %v2673_v38 = vadd.f32 %v8574_v40, %v2366_v3  ;;  %v10027_v40 = vld [vmem:[#allocation82_spill] sm:$0xff] }
 0x457   : > { %10020 = vst [vmem:[#allocation43_spill] sm:$0xff] %v9003_v2  ;;  %v3234_v45 = vpop.f32.mrf.mxu0  ;;  %v10029_v50 = vld [vmem:[#allocation61_spill] sm:$0xff] }
 0x458   : > { %6504 = vmatmul.msk.f32.gmra.mxu1 %vm488_vm0, %v9005_v10  ;;  %v3286_v35 = vadd.f32 %v3234_v45, %v2979_v6  ;;  %v1753_v20 = vadd.f32 %v10023_v0, %v1445_v43 }
 0x459   : > { %6536 = vmatmul.msk.f32.gmra.mxu2 %vm488_vm0, %v9007_v54 }
 0x45a   : > { %6568 = vmatmul.msk.f32.gmra.mxu3 %vm488_vm0, %v9015_v36  ;;  %v3326_v47 = vadd.f32 %v8968_v48, %v3286_v35  ;;  %6683 = vmatmul.msk.f32.gmra.mxu0 %vm488_vm0, %v8661_v25  ;;  %v2060_v6 = vadd.f32 %v10026_v14, %v1753_v20  ;;  %v2980_v25 = vadd.f32 %v8595_v7, %v2673_v38  ;;  %v10028_v20 = vld [vmem:[#allocation49_spill] sm:$0xff] }
 0x45b   : > { %v3873_v31 = vpop.f32.mrf.mxu2  ;;  %v1133_v38 = vadd.f32 %v10030_v5, %v10029_v50 }
 0x45c   : > { %v3874_v4 = vadd.f32 %v3873_v31, %v3664_v18  ;;  %v4113_v2 = vpop.f32.mrf.mxu3  ;;  %v3362_v45 = vmax.f32 %v3326_v47, 0.0  ;;  %v3667_v11 = vpop.f32.mrf.mxu1 }
 0x45d   : > { %v9029_v27 = vadd.f32 %v4113_v2, %v3871_v34  ;;  %v9031_v43 = vld [vmem:[#allocation3 + $0x1b0] sm:$0xff]  ;;  %v1446_v34 = vadd.f32 %v10027_v40, %v1130_v49  ;;  %v2367_v2 = vadd.f32 %v8583_v46, %v2060_v6  ;;  %v10031_v46 = vld [vmem:[#allocation109_spill] sm:$0xff] }
 0x45e   : > { %v9033_v35 = vld [vmem:[#allocation3 + $0x1af] sm:$0xff]  ;;  %3398 = vst.msk [vmem:[#allocation3 + $0x1c8] sm:$0xff] %vm488_vm0, %v3362_v45 }
 0x45f   : > { %v9035_v0 = vld [vmem:[#allocation3 + $0x1a9] sm:$0xff]  ;;  %v3237_v18 = vpop.f32.mrf.mxu0  ;;  %v1754_v47 = vadd.f32 %v10028_v20, %v1446_v34  ;;  %v2674_v49 = vadd.f32 %v8601_v24, %v2367_v2  ;;  %v9070_v24 = vld [vmem:[#allocation3 + $0x1b1] sm:$0xff] }
 0x460   : > { %6505 = vmatmul.msk.f32.gmra.mxu1 %vm488_vm0, %v9031_v43  ;;  %v3287_v3 = vadd.f32 %v3237_v18, %v2980_v25 }
 0x461   : > { %6537 = vmatmul.msk.f32.gmra.mxu2 %vm488_vm0, %v9033_v35  ;;  %v2061_v6 = vadd.f32 %v10031_v46, %v1754_v47  ;;  %v2981_v20 = vadd.f32 %v8625_v23, %v2674_v49  ;;  %v10035_v49 = vld [vmem:[#allocation32_spill] sm:$0xff] }
 0x462   : > { %6569 = vmatmul.msk.f32.gmra.mxu3 %vm488_vm0, %v9035_v0  ;;  %v3327_v7 = vadd.f32 %v8968_v48, %v3287_v3  ;;  %6684 = vmatmul.msk.f32.gmra.mxu0 %vm488_vm0, %v8683_v51  ;;  %v6641_v51 = vld [vmem:[%s9718_s5 + $0x28] sm:$0xff] }
 0x463   : > { %v3876_v31 = vpop.f32.mrf.mxu2  ;;  %v2368_v47 = vadd.f32 %v8613_v9, %v2061_v6  ;;  %4910 = vmatpush.msrb.mxu3 %v6641_v51  ;;  %v10036_v6 = vld [vmem:[#allocation111_spill] sm:$0xff] }
 0x464   : > { %v3877_v14 = vadd.f32 %v3876_v31, %v3667_v11  ;;  %v4116_v45 = vpop.f32.mrf.mxu3  ;;  %v3363_v25 = vmax.f32 %v3327_v7, 0.0  ;;  %v3670_v40 = vpop.f32.mrf.mxu1  ;;  %v10033_v7 = vld [vmem:[#allocation45_spill] sm:$0xff] }
 0x465   : > { %v9055_v18 = vadd.f32 %v4116_v45, %v3874_v4  ;;  %v9057_v34 = vld [vmem:[#allocation3 + $0x1c8] sm:$0xff]  ;;  %v10032_v4 = vld [vmem:[#allocation86_spill] sm:$0xff]  ;;  %v10034_v45 = vld [vmem:[#allocation63_spill] sm:$0xff]  ;;  %v2675_v9 = vadd.f32 %v8628_v63, %v2368_v47 }
 0x466   : > { %v9059_v3 = vld [vmem:[#allocation3 + $0x1c7] sm:$0xff]  ;;  %3399 = vst.msk [vmem:[#allocation3 + $0x1d0] sm:$0xff] %vm488_vm0, %v3363_v25  ;;  %v1447_v2 = vadd.f32 %v10032_v4, %v1133_v38  ;;  %v1136_v46 = vadd.f32 %v10035_v49, %v10034_v45 }
 0x467   : > { %v3240_v11 = vpop.f32.mrf.mxu0  ;;  %v6740_v63 = vld [vmem:[%s9718_s5 + $0x40] sm:$0xff]  ;;  %v10037_v47 = vld [vmem:[#allocation89_spill] sm:$0xff] }
 0x468   : > { %6506 = vmatmul.msk.f32.gmra.mxu1 %vm488_vm0, %v9057_v34  ;;  %v3288_v23 = vadd.f32 %v3240_v11, %v2981_v20  ;;  %v1755_v31 = vadd.f32 %v10033_v7, %v1447_v2  ;;  %5736 = vmatpush.msra.mxu2 %v6740_v63 }
 0x469   : > { %6538 = vmatmul.msk.f32.gmra.mxu2 %vm488_vm0, %v9059_v3 }
 0x46a   : > { %6570 = vmatmul.msk.f32.gmra.mxu3 %vm488_vm0, %v9070_v24  ;;  %v3328_v50 = vadd.f32 %v8968_v48, %v3288_v23  ;;  %6685 = vmatmul.msk.f32.gmra.mxu0 %vm488_vm0, %v8705_v16  ;;  %v2062_v20 = vadd.f32 %v10036_v6, %v1755_v31  ;;  %v2982_v16 = vadd.f32 %v8653_v29, %v2675_v9 }
 0x46b   : > { %v3879_v5 = vpop.f32.mrf.mxu2  ;;  %v1448_v31 = vadd.f32 %v10037_v47, %v1136_v46 }
 0x46c   : > { %v3880_v25 = vadd.f32 %v3879_v5, %v3670_v40  ;;  %v4119_v38 = vpop.f32.mrf.mxu3  ;;  %v3364_v11 = vmax.f32 %v3328_v50, 0.0  ;;  %v3673_v51 = vpop.f32.mrf.mxu1  ;;  %v2369_v29 = vadd.f32 %v8640_v55, %v2062_v20  ;;  %v10038_v5 = vld [vmem:[#allocation5_spill] sm:$0xff] }
 0x46d   : > { %v9084_v4 = vadd.f32 %v4119_v38, %v3877_v14  ;;  %v9086_v2 = vld [vmem:[#allocation3 + $0x1d0] sm:$0xff]  ;;  %v6707_v14 = vld [vmem:[%s9718_s5 + $0x38] sm:$0xff]  ;;  %v1756_v45 = vadd.f32 %v10038_v5, %v1448_v31 }
 0x46e   : > { %v9088_v23 = vld [vmem:[#allocation3 + $0x1cf] sm:$0xff]  ;;  %3400 = vst.msk [vmem:[#allocation3 + $0x1e8] sm:$0xff] %vm488_vm0, %v3364_v11  ;;  %5461 = vmatpush.msra.mxu1 %v6707_v14  ;;  %v2676_v46 = vadd.f32 %v8659_v26, %v2369_v29 }
 0x46f   : > { %v9090_v7 = vld [vmem:[#allocation3 + $0x1c9] sm:$0xff]  ;;  %v3243_v40 = vpop.f32.mrf.mxu0  ;;  %v9126_v26 = vld [vmem:[#allocation3 + $0x1d1] sm:$0xff] }
 0x470   : > { %6507 = vmatmul.msk.f32.gmra.mxu1 %vm488_vm0, %v9086_v2  ;;  %v3289_v50 = vadd.f32 %v3243_v40, %v2982_v16  ;;  %v10039_v11 = vld [vmem:[#allocation113_spill] sm:$0xff]  ;;  %v2983_v47 = vadd.f32 %v8681_v58, %v2676_v46 }
 0x471   : > { %6539 = vmatmul.msk.f32.gmra.mxu2 %vm488_vm0, %v9088_v23  ;;  %v2063_v55 = vadd.f32 %v10039_v11, %v1756_v45  ;;  %v10040_v45 = vld [vmem:[#allocation48_spill] sm:$0xff] }
 0x472   : > { %6571 = vmatmul.msk.f32.gmra.mxu3 %vm488_vm0, %v9090_v7  ;;  %v3329_v49 = vadd.f32 %v8968_v48, %v3289_v50  ;;  %6686 = vmatmul.msk.f32.gmra.mxu0 %vm488_vm0, %v8729_v60 }
 0x473   : > { %v3882_v38 = vpop.f32.mrf.mxu2  ;;  %v2370_v60 = vadd.f32 %v8670_v61, %v2063_v55 }
 0x474   : > { %v3883_v9 = vadd.f32 %v3882_v38, %v3673_v51  ;;  %v4122_v6 = vpop.f32.mrf.mxu3  ;;  %v3365_v20 = vmax.f32 %v3329_v49, 0.0  ;;  %v3676_v40 = vpop.f32.mrf.mxu1  ;;  %v10041_v49 = vld [vmem:[#allocation116_spill] sm:$0xff] }
 0x475   : > { %v9114_v16 = vadd.f32 %v4122_v6, %v3880_v25  ;;  %v9116_v63 = vld [vmem:[#allocation3 + $0x1e8] sm:$0xff]  ;;  %v2677_v5 = vadd.f32 %v8686_v52, %v2370_v60  ;;  %v2064_v38 = vadd.f32 %v10041_v49, %v10040_v45  ;;  %v10044_v52 = vld [vmem:[#allocation19_spill] sm:$0xff] }
 0x476   : > { %v9118_v14 = vld [vmem:[#allocation3 + $0x1e7] sm:$0xff]  ;;  %3401 = vst.msk [vmem:[#allocation3 + $0x1f0] sm:$0xff] %vm488_vm0, %v3365_v20  ;;  %v10048_v45 = vld [vmem:[#allocation119_spill] sm:$0xff] }
 0x477   : > { %v3246_v31 = vpop.f32.mrf.mxu0 }
 0x478   : > { %6508 = vmatmul.msk.f32.gmra.mxu1 %vm488_vm0, %v9116_v63  ;;  %v3290_v25 = vadd.f32 %v3246_v31, %v2983_v47  ;;  %v2984_v47 = vadd.f32 %v8709_v15, %v2677_v5  ;;  %v10047_v5 = vld [vmem:[#allocation7_spill] sm:$0xff] }
 0x479   : > { %6540 = vmatmul.msk.f32.gmra.mxu2 %vm488_vm0, %v9118_v14  ;;  %v2065_v49 = vadd.f32 %v10048_v45, %v10047_v5 }
 0x47a   : > { %6572 = vmatmul.msk.f32.gmra.mxu3 %vm488_vm0, %v9126_v26  ;;  %v3330_v51 = vadd.f32 %v8968_v48, %v3290_v25  ;;  %6687 = vmatmul.msk.f32.gmra.mxu0 %vm488_vm0, %v8754_v30  ;;  %v10045_v25 = vld [vmem:[#allocation96_spill] sm:$0xff] }
 0x47b   : > { %v3885_v58 = vpop.f32.mrf.mxu2 }
 0x47c   : > { %v3886_v29 = vadd.f32 %v3885_v58, %v3676_v40  ;;  %v4125_v50 = vpop.f32.mrf.mxu3  ;;  %v3366_v6 = vmax.f32 %v3330_v51, 0.0  ;;  %v3679_v61 = vpop.f32.mrf.mxu1  ;;  %v10046_v58 = vld [vmem:[#allocation21_spill] sm:$0xff] }
 0x47d   : > { %v9137_v46 = vadd.f32 %v4125_v50, %v3883_v9  ;;  %v9139_v11 = vld [vmem:[#allocation3 + $0x1f0] sm:$0xff]  ;;  %v2371_v9 = vadd.f32 %v10044_v52, %v2064_v38 }
 0x47e   : > { %v9141_v55 = vld [vmem:[#allocation3 + $0x1ef] sm:$0xff]  ;;  %3402 = vst.msk [vmem:[#allocation3 + $0x208] sm:$0xff] %vm488_vm0, %v3366_v6 }
 0x47f   : > { %10042 = vst [vmem:[#allocation72_spill] sm:$0xff] %v9137_v46  ;;  %v9143_v20 = vld [vmem:[#allocation3 + $0x1e9] sm:$0xff]  ;;  %v3249_v30 = vpop.f32.mrf.mxu0  ;;  %v2678_v50 = vadd.f32 %v10046_v58, %v2371_v9 }
 0x480   : > { %10043 = vst [vmem:[#allocation31_spill] sm:$0xff] %v9143_v20  ;;  %6509 = vmatmul.msk.f32.gmra.mxu1 %vm488_vm0, %v9139_v11  ;;  %v3291_v40 = vadd.f32 %v3249_v30, %v2984_v47  ;;  %v10049_v47 = vld [vmem:[#allocation65_spill] sm:$0xff]  ;;  %v10050_v9 = vld [vmem:[#allocation94_spill] sm:$0xff] }
 0x481   : > { %6541 = vmatmul.msk.f32.gmra.mxu2 %vm488_vm0, %v9141_v55  ;;  %v2985_v30 = vadd.f32 %v10049_v47, %v2678_v50  ;;  %v10051_v50 = vld [vmem:[#allocation23_spill] sm:$0xff] }
 0x482   : > { %6573 = vmatmul.msk.f32.gmra.mxu3 %vm488_vm0, %v9143_v20  ;;  %v3331_v31 = vadd.f32 %v8968_v48, %v3291_v40  ;;  %6688 = vmatmul.msk.f32.gmra.mxu0 %vm488_vm0, %v10045_v25  ;;  %v9164_v40 = vld [vmem:[#allocation3 + $0x1f1] sm:$0xff]  ;;  %v6811_v20 = vld [vmem:[#allocation3 + $0x27] sm:$0xff] }
 0x483   : > { %v3888_v60 = vpop.f32.mrf.mxu2  ;;  %v10052_v47 = vld [vmem:[#allocation75_spill] sm:$0xff] }
 0x484   : > { %v3889_v15 = vadd.f32 %v3888_v60, %v3679_v61  ;;  %v4128_v51 = vpop.f32.mrf.mxu3  ;;  %v3367_v6 = vmax.f32 %v3331_v31, 0.0  ;;  %v3682_v38 = vpop.f32.mrf.mxu1  ;;  %v6812_v61 = vld [vmem:[#allocation3 + $0x28] sm:$0xff]  ;;  %v2372_v60 = vadd.f32 %v10050_v9, %v2065_v49  ;;  %v6814_v9 = vld [vmem:[#allocation3 + $0x30] sm:$0xff] }
 0x485   : > { %v9160_v46 = vadd.f32 %v4128_v51, %v3886_v29 }
 0x486   : > { %3403 = vst.msk [vmem:[#allocation3 + $0x210] sm:$0xff] %vm488_vm0, %v3367_v6  ;;  %v2679_v5 = vadd.f32 %v10051_v50, %v2372_v60  ;;  %v6815_v60 = vld [vmem:[#allocation3 + $0x29] sm:$0xff] }
 0x487   : > { %v3252_v52 = vpop.f32.mrf.mxu0 }
 0x488   : > { %6576 = vmatmul.msk.f32.vlgmr.msrb.gmra.mxu1 %vm488_vm0, %v6811_v20  ;;  %v3292_v25 = vadd.f32 %v3252_v52, %v2985_v30  ;;  %v2986_v49 = vadd.f32 %v10052_v47, %v2679_v5  ;;  %v10053_v30 = vmov 0.0   ;;  %v6817_v47 = vld [vmem:[#allocation3 + $0x48] sm:$0xff] }
 0x489   : > { %6609 = vmatmul.msk.f32.vlgmr.msrb.gmra.mxu2 %vm488_vm0, %v6812_v61  ;;  %v6813_v61 = vld [vmem:[#allocation3 + $0x2f] sm:$0xff] }
 0x48a   : > { %6574 = vmatmul.msk.f32.gmra.mxu3 %vm488_vm0, %v9164_v40  ;;  %v3332_v29 = vadd.f32 %v8968_v48, %v3292_v25  ;;  %6689 = vmatmul.msk.f32.gmra.mxu0 %vm488_vm0, %v8794_v19 }
 0x48b   : > { %v3891_v31 = vpop.f32.mrf.mxu2 }
 0x48c   : > { %v3892_v51 = vadd.f32 %v3891_v31, %v3682_v38  ;;  %v4131_v58 = vpop.f32.mrf.mxu3  ;;  %v3368_v20 = vmax.f32 %v3332_v29, 0.0  ;;  %v3685_v6 = vpop.f32.mrf.mxu1 }
 0x48d   : > { %v9175_v45 = vadd.f32 %v4131_v58, %v3889_v15 }
 0x48e   : > { %3404 = vst.msk [vmem:[#allocation3 + $0x228] sm:$0xff] %vm488_vm0, %v3368_v20  ;;  %v6816_v20 = vld [vmem:[#allocation3 + $0x47] sm:$0xff] }
 0x48f   : > { %3451 = vst.msk [vmem:[#allocation3 + $0x228] sm:$0xff] %vm488_vm0, %v10053_v30  ;;  %v3255_v52 = vpop.f32.mrf.mxu0 }
 0x490   : > { %6577 = vmatmul.msk.f32.gmra.mxu1 %vm488_vm0, %v6813_v61  ;;  %v3293_v38 = vadd.f32 %v3255_v52, %v2986_v49 }
 0x491   : > { %6610 = vmatmul.msk.f32.gmra.mxu2 %vm488_vm0, %v6814_v9  ;;  %v6819_v9 = vld [vmem:[#allocation3 + $0x4f] sm:$0xff] }
 0x492   : > { %6642 = vmatmul.msk.f32.vlgmr.msrb.gmra.mxu3 %vm488_vm0, %v6815_v60  ;;  %v3333_v15 = vadd.f32 %v8968_v48, %v3293_v38  ;;  %6690 = vmatmul.msk.f32.gmra.mxu0 %vm488_vm0, %v8820_v12  ;;  %v6818_v48 = vld [vmem:[#allocation3 + $0x31] sm:$0xff]  ;;  %v6821_v38 = vld [vmem:[#allocation3 + $0x49] sm:$0xff] }
 0x493   : > { %v3894_v25 = vpop.f32.mrf.mxu2 }
 0x494   : > { %v3895_v29 = vadd.f32 %v3894_v25, %v3685_v6  ;;  %v4134_v31 = vpop.f32.mrf.mxu3  ;;  %v3369_v58 = vmax.f32 %v3333_v15, 0.0  ;;  %v3688_v5 = vpop.f32.mrf.mxu1 }
 0x495   : > { %v9187_v50 = vadd.f32 %v4134_v31, %v3892_v51 }
 0x496   : > { %3405 = vst.msk [vmem:[#allocation3 + $0x230] sm:$0xff] %vm488_vm0, %v3369_v58  ;;  %v6822_v58 = vld [vmem:[#allocation3 + $0x67] sm:$0xff] }
 0x497   : > { %3452 = vst.msk [vmem:[#allocation3 + $0x230] sm:$0xff] %vm488_vm0, %v10053_v30  ;;  %v6820_v30 = vld [vmem:[#allocation3 + $0x50] sm:$0xff] }
 0x498   : > { %6578 = vmatmul.msk.f32.gmra.mxu1 %vm488_vm0, %v6816_v20  ;;  %v6824_v20 = vld [vmem:[#allocation3 + $0x51] sm:$0xff] }
 0x499   : > { %6611 = vmatmul.msk.f32.gmra.mxu2 %vm488_vm0, %v6817_v47 }
 0x49a   : > { %6643 = vmatmul.msk.f32.gmra.mxu3 %vm488_vm0, %v6818_v48  ;;  %6691 = vmatmul.msk.f32.gmra.mxu0 %vm488_vm0, %v8846_v56 }
 0x49b   : > { %v3897_v6 = vpop.f32.mrf.mxu2 }
 0x49c   : > { %v3898_v51 = vadd.f32 %v3897_v6, %v3688_v5  ;;  %v4137_v49 = vpop.f32.mrf.mxu3  ;;  %v3691_v61 = vpop.f32.mrf.mxu1  ;;  %v6823_v5 = vld [vmem:[#allocation3 + $0x68] sm:$0xff] }
 0x49d   : > { %v9197_v52 = vadd.f32 %v4137_v49, %v3895_v29 }
 0x4a0   : > { %6579 = vmatmul.msk.f32.gmra.mxu1 %vm488_vm0, %v6819_v9  ;;  %v6826_v9 = vld [vmem:[#allocation3 + $0x70] sm:$0xff] }
 0x4a1   : > { %6612 = vmatmul.msk.f32.gmra.mxu2 %vm488_vm0, %v6820_v30  ;;  %v6827_v30 = vld [vmem:[#allocation3 + $0x69] sm:$0xff] }
 0x4a2   : > { %6644 = vmatmul.msk.f32.gmra.mxu3 %vm488_vm0, %v6821_v38  ;;  %6692 = vmatmul.msk.f32.gmra.mxu0 %vm488_vm0, %v8872_v62 }
 0x4a3   : > { %v3900_v60 = vpop.f32.mrf.mxu2 }
 0x4a4   : > { %v3901_v15 = vadd.f32 %v3900_v60, %v3691_v61  ;;  %v4140_v25 = vpop.f32.mrf.mxu3  ;;  %v3694_v29 = vpop.f32.mrf.mxu1  ;;  %v6825_v61 = vld [vmem:[#allocation3 + $0x6f] sm:$0xff] }
 0x4a5   : > { %v9204_v31 = vadd.f32 %v4140_v25, %v3898_v51 }
 0x4a8   : > { %6580 = vmatmul.msk.f32.gmra.mxu1 %vm488_vm0, %v6822_v58  ;;  %v6828_v58 = vld [vmem:[#allocation3 + $0x87] sm:$0xff] }
 0x4a9   : > { %6613 = vmatmul.msk.f32.gmra.mxu2 %vm488_vm0, %v6823_v5  ;;  %v6829_v5 = vld [vmem:[#allocation3 + $0x88] sm:$0xff] }
 0x4aa   : > { %6645 = vmatmul.msk.f32.gmra.mxu3 %vm488_vm0, %v6824_v20  ;;  %6693 = vmatmul.msk.f32.gmra.mxu0 %vm488_vm0, %v8898_v28  ;;  %v6830_v20 = vld [vmem:[#allocation3 + $0x71] sm:$0xff] }
 0x4ab   : > { %v3903_v47 = vpop.f32.mrf.mxu2 }
 0x4ac   : > { %v3904_v48 = vadd.f32 %v3903_v47, %v3694_v29  ;;  %v4143_v6 = vpop.f32.mrf.mxu3  ;;  %v3697_v51 = vpop.f32.mrf.mxu1 }
 0x4ad   : > { %v9211_v49 = vadd.f32 %v4143_v6, %v3901_v15 }
 0x4b0   : > { %6581 = vmatmul.msk.f32.gmra.mxu1 %vm488_vm0, %v6825_v61 }
 0x4b1   : > { %6614 = vmatmul.msk.f32.gmra.mxu2 %vm488_vm0, %v6826_v9  ;;  %v6831_v9 = vld [vmem:[#allocation3 + $0x8f] sm:$0xff] }
 0x4b2   : > { %6646 = vmatmul.msk.f32.gmra.mxu3 %vm488_vm0, %v6827_v30  ;;  %6694 = vmatmul.msk.f32.gmra.mxu0 %vm488_vm0, %v8924_v57  ;;  %v6832_v30 = vld [vmem:[#allocation3 + $0x90] sm:$0xff] }
 0x4b3   : > { %v3906_v38 = vpop.f32.mrf.mxu2 }
 0x4b4   : > { %v3907_v60 = vadd.f32 %v3906_v38, %v3697_v51  ;;  %v4146_v25 = vpop.f32.mrf.mxu3  ;;  %v3700_v15 = vpop.f32.mrf.mxu1  ;;  %v6833_v38 = vld [vmem:[#allocation3 + $0x89] sm:$0xff] }
 0x4b5   : > { %v9218_v29 = vadd.f32 %v4146_v25, %v3904_v48 }
 0x4b7   : > { %10054 = vst [vmem:[#allocation88_spill] sm:$0xff] %v9218_v29 }
 0x4b8   : > { %6582 = vmatmul.msk.f32.gmra.mxu1 %vm488_vm0, %v6828_v58 }
 0x4b9   : > { %6615 = vmatmul.msk.f32.gmra.mxu2 %vm488_vm0, %v6829_v5 }
 0x4ba   : > { %6647 = vmatmul.msk.f32.gmra.mxu3 %vm488_vm0, %v6830_v20  ;;  %6695 = vmatmul.msk.f32.gmra.mxu0 %vm488_vm0, %v8950_v39  ;;  %v6834_v20 = vld [vmem:[#allocation3 + $0xa7] sm:$0xff] }
 0x4bb   : > { %v3909_v47 = vpop.f32.mrf.mxu2 }
 0x4bc   : > { %v3910_v6 = vadd.f32 %v3909_v47, %v3700_v15  ;;  %v4149_v61 = vpop.f32.mrf.mxu3  ;;  %v3703_v48 = vpop.f32.mrf.mxu1  ;;  %v6835_v47 = vld [vmem:[#allocation3 + $0xa8] sm:$0xff] }
 0x4bd   : > { %v9225_v51 = vadd.f32 %v4149_v61, %v3907_v60  ;;  %v6836_v61 = vld [vmem:[#allocation3 + $0x91] sm:$0xff] }
 0x4bf   : > { %10055 = vst [vmem:[#allocation4_spill] sm:$0xff] %v9225_v51 }
 0x4c0   : > { %6583 = vmatmul.msk.f32.gmra.mxu1 %vm488_vm0, %v6831_v9 }
 0x4c1   : > { %6616 = vmatmul.msk.f32.gmra.mxu2 %vm488_vm0, %v6832_v30 }
 0x4c2   : > { %6648 = vmatmul.msk.f32.gmra.mxu3 %vm488_vm0, %v6833_v38  ;;  %6696 = vmatmul.msk.f32.gmra.mxu0 %vm488_vm0, %v8981_v8 }
 0x4c3   : > { %v3912_v25 = vpop.f32.mrf.mxu2 }
 0x4c4   : > { %v3913_v58 = vadd.f32 %v3912_v25, %v3703_v48  ;;  %v4152_v5 = vpop.f32.mrf.mxu3  ;;  %v3706_v60 = vpop.f32.mrf.mxu1  ;;  %v6837_v25 = vld [vmem:[#allocation3 + $0xaf] sm:$0xff] }
 0x4c5   : > { %v9232_v15 = vadd.f32 %v4152_v5, %v3910_v6  ;;  %v6838_v5 = vld [vmem:[#allocation3 + $0xb0] sm:$0xff] }
 0x4c7   : > { %10056 = vst [vmem:[#allocation107_spill] sm:$0xff] %v9232_v15 }
 0x4c8   : > { %6584 = vmatmul.msk.f32.gmra.mxu1 %vm488_vm0, %v6834_v20  ;;  %v9243_v20 = vpop.f32.mrf.mxu0 }
 0x4c9   : > { %6617 = vmatmul.msk.f32.gmra.mxu2 %vm488_vm0, %v6835_v47  ;;  %10058 = vst [vmem:[#allocation106_spill] sm:$0xff] %v9243_v20  ;;  %v6839_v47 = vld [vmem:[#allocation3 + $0xa9] sm:$0xff] }
 0x4ca   : > { %6649 = vmatmul.msk.f32.gmra.mxu3 %vm488_vm0, %v6836_v61  ;;  %6697 = vmatmul.msk.f32.gmra.mxu0 %vm488_vm0, %v9007_v54 }
 0x4cb   : > { %v3915_v9 = vpop.f32.mrf.mxu2 }
 0x4cc   : > { %v3916_v30 = vadd.f32 %v3915_v9, %v3706_v60  ;;  %v4155_v38 = vpop.f32.mrf.mxu3 }
 0x4cd   : > { %v9239_v48 = vadd.f32 %v4155_v38, %v3913_v58  ;;  %v3709_v6 = vpop.f32.mrf.mxu1 }
 0x4cf   : > { %10057 = vst [vmem:[#allocation46_spill] sm:$0xff] %v9239_v48  ;;  %v6840_v48 = vld [vmem:[#allocation3 + $0xc7] sm:$0xff] }
 0x4d0   : > { %6585 = vmatmul.msk.f32.gmra.mxu1 %vm488_vm0, %v6837_v25  ;;  %v6841_v25 = vld [vmem:[#allocation3 + $0xc8] sm:$0xff]  ;;  %v9253_v20 = vpop.f32.mrf.mxu0 }
 0x4d1   : > { %6618 = vmatmul.msk.f32.gmra.mxu2 %vm488_vm0, %v6838_v5  ;;  %v6842_v5 = vld [vmem:[#allocation3 + $0xb1] sm:$0xff]  ;;  %10060 = vst [vmem:[#allocation34_spill] sm:$0xff] %v9253_v20 }
 0x4d2   : > { %6650 = vmatmul.msk.f32.gmra.mxu3 %vm488_vm0, %v6839_v47  ;;  %6698 = vmatmul.msk.f32.gmra.mxu0 %vm488_vm0, %v9033_v35 }
 0x4d4   : > { %v3918_v61 = vpop.f32.mrf.mxu2 }
 0x4d5   : > { %v3919_v60 = vadd.f32 %v3918_v61, %v3709_v6  ;;  %v4158_v9 = vpop.f32.mrf.mxu3  ;;  %v3712_v38 = vpop.f32.mrf.mxu1 }
 0x4d6   : > { %v9248_v58 = vadd.f32 %v4158_v9, %v3916_v30 }
 0x4d8   : > { %10059 = vst [vmem:[#allocation74_spill] sm:$0xff] %v9248_v58  ;;  %6586 = vmatmul.msk.f32.gmra.mxu1 %vm488_vm0, %v6840_v48  ;;  %v6843_v58 = vld [vmem:[#allocation3 + $0xcf] sm:$0xff] }
 0x4d9   : > { %6619 = vmatmul.msk.f32.gmra.mxu2 %vm488_vm0, %v6841_v25  ;;  %v6844_v48 = vld [vmem:[#allocation3 + $0xd0] sm:$0xff] }
 0x4da   : > { %6651 = vmatmul.msk.f32.gmra.mxu3 %vm488_vm0, %v6842_v5  ;;  %6699 = vmatmul.msk.f32.gmra.mxu0 %vm488_vm0, %v9059_v3  ;;  %v6845_v25 = vld [vmem:[#allocation3 + $0xc9] sm:$0xff] }
 0x4dc   : > { %v3921_v47 = vpop.f32.mrf.mxu2 }
 0x4dd   : > { %v3922_v6 = vadd.f32 %v3921_v47, %v3712_v38  ;;  %v4161_v61 = vpop.f32.mrf.mxu3  ;;  %v3715_v9 = vpop.f32.mrf.mxu1 }
 0x4de   : > { %v9257_v30 = vadd.f32 %v4161_v61, %v3919_v60  ;;  %v9264_v38 = vpop.f32.mrf.mxu0  ;;  %v6846_v61 = vld [vmem:[#allocation3 + $0xe7] sm:$0xff] }
 0x4df   : > { %10062 = vst [vmem:[#allocation91_spill] sm:$0xff] %v9264_v38  ;;  %v6849_v38 = vld [vmem:[#allocation3 + $0xef] sm:$0xff] }
 0x4e0   : > { %10061 = vst [vmem:[#allocation33_spill] sm:$0xff] %v9257_v30  ;;  %6587 = vmatmul.msk.f32.gmra.mxu1 %vm488_vm0, %v6843_v58  ;;  %v6847_v58 = vld [vmem:[#allocation3 + $0xe8] sm:$0xff] }
 0x4e1   : > { %6620 = vmatmul.msk.f32.gmra.mxu2 %vm488_vm0, %v6844_v48  ;;  %v6848_v48 = vld [vmem:[#allocation3 + $0xd1] sm:$0xff] }
 0x4e2   : > { %6652 = vmatmul.msk.f32.gmra.mxu3 %vm488_vm0, %v6845_v25  ;;  %6700 = vmatmul.msk.f32.gmra.mxu0 %vm488_vm0, %v9088_v23 }
 0x4e4   : > { %v3924_v5 = vpop.f32.mrf.mxu2 }
 0x4e5   : > { %v3925_v20 = vadd.f32 %v3924_v5, %v3715_v9  ;;  %v4164_v15 = vpop.f32.mrf.mxu3  ;;  %v3718_v47 = vpop.f32.mrf.mxu1 }
 0x4e6   : > { %v9266_v60 = vadd.f32 %v4164_v15, %v3922_v6  ;;  %v9275_v6 = vpop.f32.mrf.mxu0 }
 0x4e7   : > { %10065 = vst [vmem:[#allocation51_spill] sm:$0xff] %v9275_v6  ;;  %v6853_v6 = vld [vmem:[#allocation3 + $0x108] sm:$0xff] }
 0x4e8   : > { %10063 = vst [vmem:[#allocation108_spill] sm:$0xff] %v9266_v60  ;;  %6588 = vmatmul.msk.f32.gmra.mxu1 %vm488_vm0, %v6846_v61  ;;  %v6850_v61 = vld [vmem:[#allocation3 + $0xf0] sm:$0xff] }
 0x4e9   : > { %6621 = vmatmul.msk.f32.gmra.mxu2 %vm488_vm0, %v6847_v58  ;;  %v6851_v58 = vld [vmem:[#allocation3 + $0xe9] sm:$0xff] }
 0x4ea   : > { %6653 = vmatmul.msk.f32.gmra.mxu3 %vm488_vm0, %v6848_v48  ;;  %6701 = vmatmul.msk.f32.gmra.mxu0 %vm488_vm0, %v9118_v14 }
 0x4ec   : > { %v3927_v25 = vpop.f32.mrf.mxu2 }
 0x4ed   : > { %v3928_v9 = vadd.f32 %v3927_v25, %v3718_v47  ;;  %v4167_v5 = vpop.f32.mrf.mxu3  ;;  %v3721_v15 = vpop.f32.mrf.mxu1 }
 0x4ee   : > { %v9273_v30 = vadd.f32 %v4167_v5, %v3925_v20 }
 0x4f0   : > { %10064 = vst [vmem:[#allocation9_spill] sm:$0xff] %v9273_v30  ;;  %6589 = vmatmul.msk.f32.gmra.mxu1 %vm488_vm0, %v6849_v38  ;;  %v6852_v30 = vld [vmem:[#allocation3 + $0x107] sm:$0xff]  ;;  %v9286_v38 = vpop.f32.mrf.mxu0 }
 0x4f1   : > { %6622 = vmatmul.msk.f32.gmra.mxu2 %vm488_vm0, %v6850_v61  ;;  %10067 = vst [vmem:[#allocation77_spill] sm:$0xff] %v9286_v38  ;;  %v6854_v61 = vld [vmem:[#allocation3 + $0xf1] sm:$0xff]  ;;  %v6857_v38 = vld [vmem:[#allocation3 + $0x109] sm:$0xff] }
 0x4f2   : > { %6654 = vmatmul.msk.f32.gmra.mxu3 %vm488_vm0, %v6851_v58  ;;  %6702 = vmatmul.msk.f32.gmra.mxu0 %vm488_vm0, %v9141_v55  ;;  %v9289_v58 = vld [vmem:[#allocation3 + $0x207] sm:$0xff] }
 0x4f4   : > { %v3930_v48 = vpop.f32.mrf.mxu2 }
 0x4f5   : > { %v3931_v47 = vadd.f32 %v3930_v48, %v3721_v15  ;;  %v4170_v25 = vpop.f32.mrf.mxu3  ;;  %v3724_v5 = vpop.f32.mrf.mxu1 }
 0x4f6   : > { %v9282_v20 = vadd.f32 %v4170_v25, %v3928_v9 }
 0x4f8   : > { %10066 = vst [vmem:[#allocation110_spill] sm:$0xff] %v9282_v20  ;;  %6590 = vmatmul.msk.f32.gmra.mxu1 %vm488_vm0, %v6852_v30  ;;  %v6855_v30 = vld [vmem:[#allocation3 + $0x10f] sm:$0xff]  ;;  %v9300_v20 = vpop.f32.mrf.mxu0 }
 0x4f9   : > { %6623 = vmatmul.msk.f32.gmra.mxu2 %vm488_vm0, %v6853_v6  ;;  %v6856_v6 = vld [vmem:[#allocation3 + $0x110] sm:$0xff]  ;;  %10069 = vst [vmem:[#allocation35_spill] sm:$0xff] %v9300_v20 }
 0x4fa   : > { %6655 = vmatmul.msk.f32.gmra.mxu3 %vm488_vm0, %v6854_v61  ;;  %6703 = vmatmul.msk.f32.gmra.mxu0 %vm488_vm0, %v9289_v58  ;;  %v9298_v61 = vld [vmem:[#allocation3 + $0x20f] sm:$0xff] }
 0x4fc   : > { %v3933_v60 = vpop.f32.mrf.mxu2 }
 0x4fd   : > { %v3934_v9 = vadd.f32 %v3933_v60, %v3724_v5  ;;  %v4173_v15 = vpop.f32.mrf.mxu3  ;;  %v3727_v25 = vpop.f32.mrf.mxu1 }
 0x4fe   : > { %v9293_v48 = vadd.f32 %v4173_v15, %v3931_v47 }
 0x500   : > { %10068 = vst [vmem:[#allocation6_spill] sm:$0xff] %v9293_v48  ;;  %6591 = vmatmul.msk.f32.gmra.mxu1 %vm488_vm0, %v6855_v30 }
 0x501   : > { %6624 = vmatmul.msk.f32.gmra.mxu2 %vm488_vm0, %v6856_v6 }
 0x502   : > { %6656 = vmatmul.msk.f32.gmra.mxu3 %vm488_vm0, %v6857_v38  ;;  %6704 = vmatmul.msk.f32.gmra.mxu0 %vm488_vm0, %v9298_v61  ;;  %v10070_v38 = vld [vmem:[#allocation67_spill] sm:$0xff] }
 0x504   : > { %v3936_v51 = vpop.f32.mrf.mxu2 }
 0x505   : > { %v3937_v60 = vadd.f32 %v3936_v51, %v3727_v25  ;;  %v4176_v47 = vpop.f32.mrf.mxu3  ;;  %v4362_v15 = vpop.f32.mrf.mxu1 }
 0x506   : > { %v9304_v5 = vadd.f32 %v4176_v47, %v3934_v9  ;;  %v4458_v30 = vadd.f32 %v4362_v15, %v10070_v38 }
 0x508   : > { %6592 = vmatmul.msk.f32.gmra.mxu1 %vm488_vm0, %v8794_v19 }
 0x509   : > { %6625 = vmatmul.msk.f32.gmra.mxu2 %vm488_vm0, %v8792_v44  ;;  %v10071_v44 = vld [vmem:[#allocation25_spill] sm:$0xff] }
 0x50a   : > { %6657 = vmatmul.msk.f32.gmra.mxu3 %vm488_vm0, %v8802_v22 }
 0x50c   : > { %v4637_v6 = vpop.f32.mrf.mxu2 }
 0x50d   : > { %v4179_v20 = vpop.f32.mrf.mxu3  ;;  %v4733_v48 = vadd.f32 %v4637_v6, %v4458_v30  ;;  %v4365_v51 = vpop.f32.mrf.mxu1 }
 0x50e   : > { %v9313_v29 = vadd.f32 %v4179_v20, %v3937_v60  ;;  %v4459_v19 = vadd.f32 %v4365_v51, %v10071_v44 }
 0x510   : > { %6593 = vmatmul.msk.f32.gmra.mxu1 %vm488_vm0, %v8820_v12  ;;  %v10072_v12 = vld [vmem:[#allocation39_spill] sm:$0xff] }
 0x511   : > { %6626 = vmatmul.msk.f32.gmra.mxu2 %vm488_vm0, %v8818_v37  ;;  %v10073_v37 = vld [vmem:[#allocation78_spill] sm:$0xff] }
 0x512   : > { %6658 = vmatmul.msk.f32.gmra.mxu3 %vm488_vm0, %v8822_v17 }
 0x514   : > { %v4640_v22 = vpop.f32.mrf.mxu2 }
 0x515   : > { %v4734_v9 = vadd.f32 %v4640_v22, %v4459_v19  ;;  %v4912_v25 = vpop.f32.mrf.mxu3  ;;  %v4368_v15 = vpop.f32.mrf.mxu1 }
 0x516   : > { %v9322_v47 = vadd.f32 %v4912_v25, %v4733_v48  ;;  %v4460_v20 = vadd.f32 %v4368_v15, %v10073_v37 }
 0x518   : > { %6594 = vmatmul.msk.f32.gmra.mxu1 %vm488_vm0, %v8846_v56 }
 0x519   : > { %6627 = vmatmul.msk.f32.gmra.mxu2 %vm488_vm0, %v8844_v42  ;;  %v10074_v42 = vld [vmem:[#allocation69_spill] sm:$0xff] }
 0x51a   : > { %6659 = vmatmul.msk.f32.gmra.mxu3 %vm488_vm0, %v10072_v12 }
 0x51c   : > { %v4643_v17 = vpop.f32.mrf.mxu2 }
 0x51d   : > { %v4735_v60 = vadd.f32 %v4643_v17, %v4460_v20  ;;  %v4915_v38 = vpop.f32.mrf.mxu3  ;;  %v4371_v6 = vpop.f32.mrf.mxu1  ;;  %v10076_v17 = vld [vmem:[#allocation41_spill] sm:$0xff] }
 0x51e   : > { %v9331_v30 = vadd.f32 %v4915_v38, %v4734_v9  ;;  %v4461_v56 = vadd.f32 %v4371_v6, %v10074_v42 }
 0x520   : > { %6595 = vmatmul.msk.f32.gmra.mxu1 %vm488_vm0, %v8872_v62 }
 0x521   : > { %6628 = vmatmul.msk.f32.gmra.mxu2 %vm488_vm0, %v8870_v13 }
 0x522   : > { %6660 = vmatmul.msk.f32.gmra.mxu3 %vm488_vm0, %v8874_v33 }
 0x524   : > { %v4646_v48 = vpop.f32.mrf.mxu2 }
 0x525   : > { %v4736_v51 = vadd.f32 %v4646_v48, %v4461_v56  ;;  %v4918_v44 = vpop.f32.mrf.mxu3  ;;  %v4374_v22 = vpop.f32.mrf.mxu1  ;;  %v10080_v48 = vld [vmem:[#allocation29_spill] sm:$0xff] }
 0x526   : > { %v9340_v19 = vadd.f32 %v4918_v44, %v4735_v60  ;;  %v4462_v13 = vadd.f32 %v4374_v22, %v8894_v59 }
 0x528   : > { %6596 = vmatmul.msk.f32.gmra.mxu1 %vm488_vm0, %v8898_v28 }
 0x529   : > { %6629 = vmatmul.msk.f32.gmra.mxu2 %vm488_vm0, %v8896_v53  ;;  %v10075_v53 = vld [vmem:[#allocation27_spill] sm:$0xff] }
 0x52a   : > { %6661 = vmatmul.msk.f32.gmra.mxu3 %vm488_vm0, %v8906_v21 }
 0x52c   : > { %v4649_v62 = vpop.f32.mrf.mxu2 }
 0x52d   : > { %v4737_v33 = vadd.f32 %v4649_v62, %v4462_v13  ;;  %v4921_v9 = vpop.f32.mrf.mxu3  ;;  %v4377_v15 = vpop.f32.mrf.mxu1 }
 0x52e   : > { %v9349_v25 = vadd.f32 %v4921_v9, %v4736_v51  ;;  %v4463_v28 = vadd.f32 %v4377_v15, %v10075_v53 }
 0x530   : > { %6597 = vmatmul.msk.f32.gmra.mxu1 %vm488_vm0, %v8924_v57  ;;  %v10077_v57 = vld [vmem:[#allocation71_spill] sm:$0xff] }
 0x531   : > { %6630 = vmatmul.msk.f32.gmra.mxu2 %vm488_vm0, %v8922_v1  ;;  %v10078_v1 = vld [vmem:[#allocation81_spill] sm:$0xff] }
 0x532   : > { %6662 = vmatmul.msk.f32.gmra.mxu3 %vm488_vm0, %v8926_v41 }
 0x534   : > { %v4652_v21 = vpop.f32.mrf.mxu2 }
 0x535   : > { %v4738_v12 = vadd.f32 %v4652_v21, %v4463_v28  ;;  %v4924_v59 = vpop.f32.mrf.mxu3  ;;  %v4380_v20 = vpop.f32.mrf.mxu1 }
 0x536   : > { %v9358_v37 = vadd.f32 %v4924_v59, %v4737_v33  ;;  %v4464_v60 = vadd.f32 %v4380_v20, %v10078_v1 }
 0x538   : > { %6598 = vmatmul.msk.f32.gmra.mxu1 %vm488_vm0, %v8950_v39  ;;  %v10079_v39 = vld [vmem:[#allocation84_spill] sm:$0xff] }
 0x539   : > { %6631 = vmatmul.msk.f32.gmra.mxu2 %vm488_vm0, %v10076_v17  ;;  %v5072_v17 = vld [vmem:[#allocation3 + $0x22f] sm:$0xff] }
 0x53a   : > { %6663 = vmatmul.msk.f32.gmra.mxu3 %vm488_vm0, %v10077_v57 }
 0x53c   : > { %v4655_v41 = vpop.f32.mrf.mxu2 }
 0x53d   : > { %v4739_v38 = vadd.f32 %v4655_v41, %v4464_v60  ;;  %v4927_v6 = vpop.f32.mrf.mxu3  ;;  %v4383_v56 = vpop.f32.mrf.mxu1  ;;  %v9440_v41 = vld [vmem:[#allocation3 + $0x208] sm:$0xff] }
 0x53e   : > { %v9367_v42 = vadd.f32 %v4927_v6, %v4738_v12  ;;  %v4465_v51 = vadd.f32 %v4383_v56, %v10080_v48  ;;  %v9451_v56 = vld [vmem:[#allocation3 + $0x210] sm:$0xff] }
 0x540   : > { %6599 = vmatmul.msk.f32.gmra.mxu1 %vm488_vm0, %v8981_v8 }
 0x541   : > { %6632 = vmatmul.msk.f32.gmra.mxu2 %vm488_vm0, %v8979_v32  ;;  %v10081_v32 = vld [vmem:[#allocation43_spill] sm:$0xff] }
 0x542   : > { %6664 = vmatmul.msk.f32.gmra.mxu3 %vm488_vm0, %v10079_v39 }
 0x544   : > { %v4658_v44 = vpop.f32.mrf.mxu2 }
 0x545   : > { %v4740_v22 = vadd.f32 %v4658_v44, %v4465_v51  ;;  %v4930_v13 = vpop.f32.mrf.mxu3  ;;  %v4386_v33 = vpop.f32.mrf.mxu1  ;;  %v5316_v51 = vld [vmem:[#allocation3 + $0x48] sm:$0xff] }
 0x546   : > { %v9376_v62 = vadd.f32 %v4930_v13, %v4739_v38  ;;  %v4466_v8 = vadd.f32 %v4386_v33, %v10081_v32  ;;  %v5591_v44 = vld [vmem:[#allocation3 + $0x49] sm:$0xff] }
 0x547   : > { %v5317_v32 = vld [vmem:[#allocation3 + $0x50] sm:$0xff] }
 0x548   : > { %6600 = vmatmul.msk.f32.gmra.mxu1 %vm488_vm0, %v9007_v54 }
 0x549   : > { %6633 = vmatmul.msk.f32.gmra.mxu2 %vm488_vm0, %v9005_v10 }
 0x54a   : > { %6665 = vmatmul.msk.f32.gmra.mxu3 %vm488_vm0, %v9015_v36 }
 0x54c   : > { %v4661_v9 = vpop.f32.mrf.mxu2 }
 0x54d   : > { %v9385_v15 = vadd.f32 %v4661_v9, %v4466_v8  ;;  %v4933_v53 = vpop.f32.mrf.mxu3  ;;  %v4389_v21 = vpop.f32.mrf.mxu1  ;;  %v5592_v8 = vld [vmem:[#allocation3 + $0x51] sm:$0xff] }
 0x54e   : > { %v9387_v28 = vadd.f32 %v4933_v53, %v4740_v22  ;;  %v4467_v10 = vadd.f32 %v4389_v21, %v9029_v27  ;;  %v9464_v22 = vld [vmem:[#allocation3 + $0x211] sm:$0xff] }
 0x550   : > { %6601 = vmatmul.msk.f32.gmra.mxu1 %vm488_vm0, %v9033_v35 }
 0x551   : > { %6634 = vmatmul.msk.f32.gmra.mxu2 %vm488_vm0, %v9031_v43 }
 0x552   : > { %6666 = vmatmul.msk.f32.gmra.mxu3 %vm488_vm0, %v9035_v0 }
 0x554   : > { %v4664_v54 = vpop.f32.mrf.mxu2 }
 0x555   : > { %v9396_v36 = vadd.f32 %v4664_v54, %v4467_v10  ;;  %v4392_v12 = vpop.f32.mrf.mxu1  ;;  %v5318_v54 = vld [vmem:[#allocation3 + $0x68] sm:$0xff] }
 0x556   : > { %v4468_v43 = vadd.f32 %v4392_v12, %v9055_v18  ;;  %v9416_v18 = vpop.f32.mrf.mxu0  ;;  %v5593_v12 = vld [vmem:[#allocation3 + $0x69] sm:$0xff] }
 0x558   : > { %6602 = vmatmul.msk.f32.gmra.mxu1 %vm488_vm0, %v9059_v3 }
 0x559   : > { %6635 = vmatmul.msk.f32.gmra.mxu2 %vm488_vm0, %v9057_v34 }
 0x55a   : > { %6667 = vmatmul.msk.f32.gmra.mxu3 %vm488_vm0, %v9070_v24 }
 0x55c   : > { %v4667_v35 = vpop.f32.mrf.mxu2 }
 0x55d   : > { %v9405_v59 = vadd.f32 %v4667_v35, %v4468_v43  ;;  %v4395_v0 = vpop.f32.mrf.mxu1 }
 0x55e   : > { %v4469_v27 = vadd.f32 %v4395_v0, %v9084_v4 }
 0x560   : > { %6603 = vmatmul.msk.f32.gmra.mxu1 %vm488_vm0, %v9088_v23 }
 0x561   : > { %6636 = vmatmul.msk.f32.gmra.mxu2 %vm488_vm0, %v9086_v2  ;;  %v5071_v2 = vld [vmem:[#allocation3 + $0x227] sm:$0xff] }
 0x562   : > { %6668 = vmatmul.msk.f32.gmra.mxu3 %vm488_vm0, %v9090_v7  ;;  %6705 = vmatmul.msk.f32.gmra.mxu0 %vm488_vm0, %v5071_v2 }
 0x564   : > { %v4670_v34 = vpop.f32.mrf.mxu2 }
 0x565   : > { %v9414_v3 = vadd.f32 %v4670_v34, %v4469_v27  ;;  %v4398_v24 = vpop.f32.mrf.mxu1  ;;  %v5319_v27 = vld [vmem:[#allocation3 + $0x70] sm:$0xff] }
 0x566   : > { %v4470_v23 = vadd.f32 %v4398_v24, %v9114_v16  ;;  %v5594_v34 = vld [vmem:[#allocation3 + $0x71] sm:$0xff] }
 0x568   : > { %6604 = vmatmul.msk.f32.gmra.mxu1 %vm488_vm0, %v9118_v14  ;;  %v9434_v14 = vpop.f32.mrf.mxu0 }
 0x569   : > { %6637 = vmatmul.msk.f32.gmra.mxu2 %vm488_vm0, %v9116_v63  ;;  %v10082_v63 = vld [vmem:[#allocation31_spill] sm:$0xff] }
 0x56a   : > { %6669 = vmatmul.msk.f32.gmra.mxu3 %vm488_vm0, %v9126_v26  ;;  %v10083_v26 = vld [vmem:[#allocation72_spill] sm:$0xff]  ;;  %6706 = vmatmul.msk.f32.gmra.mxu0 %vm488_vm0, %v5072_v17 }
 0x56c   : > { %v4673_v4 = vpop.f32.mrf.mxu2 }
 0x56d   : > { %v9426_v7 = vadd.f32 %v4673_v4, %v4470_v23  ;;  %v4401_v20 = vpop.f32.mrf.mxu1  ;;  %v5320_v4 = vld [vmem:[#allocation3 + $0x88] sm:$0xff] }
 0x56e   : > { %v4471_v16 = vadd.f32 %v4401_v20, %v10083_v26  ;;  %v5595_v20 = vld [vmem:[#allocation3 + $0x89] sm:$0xff] }
 0x570   : > { %6605 = vmatmul.msk.f32.gmra.mxu1 %vm488_vm0, %v9141_v55 }
 0x571   : > { %6638 = vmatmul.msk.f32.gmra.mxu2 %vm488_vm0, %v9139_v11 }
 0x572   : > { %6670 = vmatmul.msk.f32.gmra.mxu3 %vm488_vm0, %v10082_v63 }
 0x574   : > { %v4676_v57 = vpop.f32.mrf.mxu2 }
 0x575   : > { %v9438_v1 = vadd.f32 %v4676_v57, %v4471_v16  ;;  %v4404_v60 = vpop.f32.mrf.mxu1  ;;  %v5321_v57 = vld [vmem:[#allocation3 + $0x90] sm:$0xff] }
 0x576   : > { %v4472_v11 = vadd.f32 %v4404_v60, %v9160_v46  ;;  %v5596_v60 = vld [vmem:[#allocation3 + $0x91] sm:$0xff] }
 0x578   : > { %6606 = vmatmul.msk.f32.gmra.mxu1 %vm488_vm0, %v9289_v58  ;;  %v9457_v58 = vld [vmem:[#allocation3 + $0x209] sm:$0xff] }
 0x579   : > { %6639 = vmatmul.msk.f32.gmra.mxu2 %vm488_vm0, %v9440_v41 }
 0x57a   : > { %6671 = vmatmul.msk.f32.gmra.mxu3 %vm488_vm0, %v9164_v40 }
 0x57c   : > { %v4679_v55 = vpop.f32.mrf.mxu2 }
 0x57d   : > { %v9449_v38 = vadd.f32 %v4679_v55, %v4472_v11  ;;  %v4407_v6 = vpop.f32.mrf.mxu1 }
 0x57e   : > { %v4473_v40 = vadd.f32 %v4407_v6, %v9175_v45 }
 0x580   : > { %6607 = vmatmul.msk.f32.gmra.mxu1 %vm488_vm0, %v9298_v61 }
 0x581   : > { %6640 = vmatmul.msk.f32.gmra.mxu2 %vm488_vm0, %v9451_v56 }
 0x582   : > { %6672 = vmatmul.msk.f32.gmra.mxu3 %vm488_vm0, %v9457_v58 }
 0x584   : > { %v4682_v46 = vpop.f32.mrf.mxu2 }
 0x585   : > { %v9462_v39 = vadd.f32 %v4682_v46, %v4473_v40  ;;  %v4410_v48 = vpop.f32.mrf.mxu1  ;;  %v5322_v46 = vld [vmem:[#allocation3 + $0xa8] sm:$0xff] }
 0x586   : > { %v4474_v61 = vadd.f32 %v4410_v48, %v9187_v50  ;;  %v5597_v48 = vld [vmem:[#allocation3 + $0xa9] sm:$0xff] }
 0x588   : > { %6708 = vmatmul.msk.f32.vlgmr.msra.gmra.mxu1 %vm488_vm0, %v5316_v51  ;;  %v10086_v51 = vld [vmem:[#allocation107_spill] sm:$0xff] }
 0x589   : > { %6741 = vmatmul.msk.f32.vlgmr.msra.gmra.mxu2 %vm488_vm0, %v5591_v44 }
 0x58a   : > { %6673 = vmatmul.msk.f32.gmra.mxu3 %vm488_vm0, %v9464_v22 }
 0x58c   : > { %v4685_v13 = vpop.f32.mrf.mxu2 }
 0x58d   : > { %v9471_v33 = vadd.f32 %v4685_v13, %v4474_v61  ;;  %v4413_v45 = vpop.f32.mrf.mxu1 }
 0x58e   : > { %v4475_v9 = vadd.f32 %v4413_v45, %v9197_v52 }
 0x590   : > { %6709 = vmatmul.msk.f32.gmra.mxu1 %vm488_vm0, %v5317_v32  ;;  %v5323_v32 = vld [vmem:[#allocation3 + $0xb0] sm:$0xff] }
 0x591   : > { %6742 = vmatmul.msk.f32.gmra.mxu2 %vm488_vm0, %v5592_v8  ;;  %v5598_v8 = vld [vmem:[#allocation3 + $0xb1] sm:$0xff] }
 0x594   : > { %v4688_v53 = vpop.f32.mrf.mxu2 }
 0x595   : > { %v9476_v21 = vadd.f32 %v4688_v53, %v4475_v9  ;;  %v4416_v10 = vpop.f32.mrf.mxu1  ;;  %v10087_v9 = vld [vmem:[#allocation46_spill] sm:$0xff] }
 0x596   : > { %v4476_v50 = vadd.f32 %v4416_v10, %v9204_v31  ;;  %v10084_v31 = vld [vmem:[#allocation88_spill] sm:$0xff] }
 0x598   : > { %6710 = vmatmul.msk.f32.gmra.mxu1 %vm488_vm0, %v5318_v54 }
 0x599   : > { %6743 = vmatmul.msk.f32.gmra.mxu2 %vm488_vm0, %v5593_v12 }
 0x59c   : > { %v4691_v43 = vpop.f32.mrf.mxu2 }
 0x59d   : > { %v9481_v35 = vadd.f32 %v4691_v43, %v4476_v50  ;;  %v4419_v0 = vpop.f32.mrf.mxu1  ;;  %v5324_v50 = vld [vmem:[#allocation3 + $0xc8] sm:$0xff] }
 0x59e   : > { %v4477_v52 = vadd.f32 %v4419_v0, %v9211_v49  ;;  %v10085_v49 = vld [vmem:[#allocation4_spill] sm:$0xff]  ;;  %v5599_v43 = vld [vmem:[#allocation3 + $0xc9] sm:$0xff] }
 0x59f   : > { %v10088_v0 = vld [vmem:[#allocation74_spill] sm:$0xff] }
 0x5a0   : > { %6711 = vmatmul.msk.f32.gmra.mxu1 %vm488_vm0, %v5319_v27 }
 0x5a1   : > { %6744 = vmatmul.msk.f32.gmra.mxu2 %vm488_vm0, %v5594_v34 }
 0x5a4   : > { %v4694_v24 = vpop.f32.mrf.mxu2 }
 0x5a5   : > { %v9486_v2 = vadd.f32 %v4694_v24, %v4477_v52  ;;  %v4422_v23 = vpop.f32.mrf.mxu1 }
 0x5a6   : > { %v4478_v17 = vadd.f32 %v4422_v23, %v10084_v31  ;;  %v5325_v23 = vld [vmem:[#allocation3 + $0xd0] sm:$0xff] }
 0x5a8   : > { %6712 = vmatmul.msk.f32.gmra.mxu1 %vm488_vm0, %v5320_v4  ;;  %v5600_v4 = vld [vmem:[#allocation3 + $0xd1] sm:$0xff] }
 0x5a9   : > { %6745 = vmatmul.msk.f32.gmra.mxu2 %vm488_vm0, %v5595_v20  ;;  %v10089_v20 = vld [vmem:[#allocation33_spill] sm:$0xff] }
 0x5ac   : > { %v4697_v63 = vpop.f32.mrf.mxu2 }
 0x5ad   : > { %v9491_v26 = vadd.f32 %v4697_v63, %v4478_v17  ;;  %v4425_v16 = vpop.f32.mrf.mxu1 }
 0x5ae   : > { %v4479_v11 = vadd.f32 %v4425_v16, %v10085_v49  ;;  %v10090_v49 = vld [vmem:[#allocation108_spill] sm:$0xff] }
 0x5b0   : > { %6713 = vmatmul.msk.f32.gmra.mxu1 %vm488_vm0, %v5321_v57  ;;  %v5326_v57 = vld [vmem:[#allocation3 + $0xe8] sm:$0xff] }
 0x5b1   : > { %6746 = vmatmul.msk.f32.gmra.mxu2 %vm488_vm0, %v5596_v60  ;;  %v5601_v60 = vld [vmem:[#allocation3 + $0xe9] sm:$0xff] }
 0x5b4   : > { %v4700_v55 = vpop.f32.mrf.mxu2 }
 0x5b5   : > { %v9496_v6 = vadd.f32 %v4700_v55, %v4479_v11  ;;  %v4428_v40 = vpop.f32.mrf.mxu1 }
 0x5b6   : > { %v4480_v44 = vadd.f32 %v4428_v40, %v10086_v51  ;;  %v5602_v51 = vld [vmem:[#allocation3 + $0xf1] sm:$0xff] }
 0x5b8   : > { %6714 = vmatmul.msk.f32.gmra.mxu1 %vm488_vm0, %v5322_v46 }
 0x5b9   : > { %6747 = vmatmul.msk.f32.gmra.mxu2 %vm488_vm0, %v5597_v48  ;;  %v5327_v48 = vld [vmem:[#allocation3 + $0xf0] sm:$0xff] }
 0x5bc   : > { %v4703_v61 = vpop.f32.mrf.mxu2 }
 0x5bd   : > { %v9501_v13 = vadd.f32 %v4703_v61, %v4480_v44  ;;  %v4431_v45 = vpop.f32.mrf.mxu1  ;;  %v10091_v44 = vld [vmem:[#allocation9_spill] sm:$0xff] }
 0x5be   : > { %v4481_v53 = vadd.f32 %v4431_v45, %v10087_v9  ;;  %v5328_v9 = vld [vmem:[#allocation3 + $0x108] sm:$0xff] }
 0x5c0   : > { %6715 = vmatmul.msk.f32.gmra.mxu1 %vm488_vm0, %v5323_v32 }
 0x5c1   : > { %6748 = vmatmul.msk.f32.gmra.mxu2 %vm488_vm0, %v5598_v8 }
 0x5c4   : > { %v4706_v10 = vpop.f32.mrf.mxu2 }
 0x5c5   : > { %v9506_v54 = vadd.f32 %v4706_v10, %v4481_v53  ;;  %v4434_v12 = vpop.f32.mrf.mxu1  ;;  %v5603_v53 = vld [vmem:[#allocation3 + $0x109] sm:$0xff] }
 0x5c6   : > { %v4482_v27 = vadd.f32 %v4434_v12, %v10088_v0  ;;  %v10092_v10 = vld [vmem:[#allocation110_spill] sm:$0xff] }
 0x5c8   : > { %6716 = vmatmul.msk.f32.gmra.mxu1 %vm488_vm0, %v5324_v50 }
 0x5c9   : > { %6749 = vmatmul.msk.f32.gmra.mxu2 %vm488_vm0, %v5599_v43 }
 0x5cc   : > { %v4709_v34 = vpop.f32.mrf.mxu2 }
 0x5cd   : > { %v9511_v52 = vadd.f32 %v4709_v34, %v4482_v27  ;;  %v4437_v24 = vpop.f32.mrf.mxu1  ;;  %v5329_v27 = vld [vmem:[#allocation3 + $0x110] sm:$0xff] }
 0x5ce   : > { %v4483_v31 = vadd.f32 %v4437_v24, %v10089_v20  ;;  %v5604_v34 = vld [vmem:[#allocation3 + $0x111] sm:$0xff] }
 0x5cf   : > { %v10093_v24 = vld [vmem:[#allocation6_spill] sm:$0xff] }
 0x5d0   : > { %6717 = vmatmul.msk.f32.gmra.mxu1 %vm488_vm0, %v5325_v23 }
 0x5d1   : > { %6750 = vmatmul.msk.f32.gmra.mxu2 %vm488_vm0, %v5600_v4 }
 0x5d4   : > { %v4712_v17 = vpop.f32.mrf.mxu2 }
 0x5d5   : > { %v9516_v63 = vadd.f32 %v4712_v17, %v4483_v31  ;;  %v4440_v16 = vpop.f32.mrf.mxu1  ;;  %v5330_v17 = vld [vmem:[#allocation3 + $0x128] sm:$0xff] }
 0x5d6   : > { %v4484_v11 = vadd.f32 %v4440_v16, %v10090_v49  ;;  %v5605_v16 = vld [vmem:[#allocation3 + $0x129] sm:$0xff] }
 0x5d8   : > { %6718 = vmatmul.msk.f32.gmra.mxu1 %vm488_vm0, %v5326_v57 }
 0x5d9   : > { %6751 = vmatmul.msk.f32.gmra.mxu2 %vm488_vm0, %v5601_v60 }
 0x5dc   : > { %v4715_v55 = vpop.f32.mrf.mxu2 }
 0x5dd   : > { %v9521_v40 = vadd.f32 %v4715_v55, %v4484_v11  ;;  %v4443_v46 = vpop.f32.mrf.mxu1  ;;  %v5331_v55 = vld [vmem:[#allocation3 + $0x130] sm:$0xff] }
 0x5de   : > { %v4485_v61 = vadd.f32 %v4443_v46, %v10091_v44  ;;  %v5606_v46 = vld [vmem:[#allocation3 + $0x131] sm:$0xff] }
 0x5e0   : > { %6719 = vmatmul.msk.f32.gmra.mxu1 %vm488_vm0, %v5327_v48 }
 0x5e1   : > { %6752 = vmatmul.msk.f32.gmra.mxu2 %vm488_vm0, %v5602_v51 }
 0x5e4   : > { %v4718_v45 = vpop.f32.mrf.mxu2 }
 0x5e5   : > { %v9526_v32 = vadd.f32 %v4718_v45, %v4485_v61  ;;  %v4446_v8 = vpop.f32.mrf.mxu1  ;;  %v5332_v45 = vld [vmem:[#allocation3 + $0x148] sm:$0xff] }
 0x5e6   : > { %v4486_v12 = vadd.f32 %v4446_v8, %v10092_v10  ;;  %v5607_v8 = vld [vmem:[#allocation3 + $0x149] sm:$0xff]  ;;  %v9555_v10 = vld [vmem:[%s9719_s6] ss:$0 sm:$0xff] }
 0x5e8   : > { %6720 = vmatmul.msk.f32.gmra.mxu1 %vm488_vm0, %v5328_v9 }
 0x5e9   : > { %6753 = vmatmul.msk.f32.gmra.mxu2 %vm488_vm0, %v5603_v53 }
 0x5ec   : > { %v4721_v50 = vpop.f32.mrf.mxu2 }
 0x5ed   : > { %v9531_v43 = vadd.f32 %v4721_v50, %v4486_v12  ;;  %v4449_v0 = vpop.f32.mrf.mxu1 }
 0x5ee   : > { %v4487_v23 = vadd.f32 %v4449_v0, %v10093_v24  ;;  %v10095_v24 = vld [vmem:[#allocation34_spill] sm:$0xff] }
 0x5f0   : > { %6721 = vmatmul.msk.f32.gmra.mxu1 %vm488_vm0, %v5329_v27  ;;  %v5333_v27 = vld [vmem:[#allocation3 + $0x150] sm:$0xff] }
 0x5f1   : > { %6754 = vmatmul.msk.f32.gmra.mxu2 %vm488_vm0, %v5604_v34  ;;  %v5608_v34 = vld [vmem:[#allocation3 + $0x151] sm:$0xff] }
 0x5f4   : > { %v4724_v4 = vpop.f32.mrf.mxu2 }
 0x5f5   : > { %v9536_v20 = vadd.f32 %v4724_v4, %v4487_v23  ;;  %v4452_v31 = vpop.f32.mrf.mxu1 }
 0x5f6   : > { %v4488_v57 = vadd.f32 %v4452_v31, %v9304_v5  ;;  %v10094_v5 = vld [vmem:[#allocation106_spill] sm:$0xff]  ;;  %v9562_v31 = vpop.f32.mrf.mxu3 }
 0x5f7   : > { %v5284_v9 = vadd.f32 %v10094_v5, %v9322_v47  ;;  %v5285_v47 = vadd.f32 %v10095_v24, %v9331_v30 }
 0x5f8   : > { %6722 = vmatmul.msk.f32.gmra.mxu1 %vm488_vm0, %v5330_v17 }
 0x5f9   : > { %6755 = vmatmul.msk.f32.gmra.mxu2 %vm488_vm0, %v5605_v16 }
 0x5fc   : > { %v4727_v60 = vpop.f32.mrf.mxu2 }
 0x5fd   : > { %v9541_v49 = vadd.f32 %v4727_v60, %v4488_v57  ;;  %v4455_v11 = vpop.f32.mrf.mxu1 }
 0x5fe   : > { %v4489_v48 = vadd.f32 %v4455_v11, %v9313_v29  ;;  %v5334_v11 = vld [vmem:[#allocation3 + $0x168] sm:$0xff]  ;;  %v9571_v5 = vpop.f32.mrf.mxu3 }
 0x600   : > { %6723 = vmatmul.msk.f32.gmra.mxu1 %vm488_vm0, %v5331_v55  ;;  %v5609_v55 = vld [vmem:[#allocation3 + $0x169] sm:$0xff] }
 0x601   : > { %6756 = vmatmul.msk.f32.gmra.mxu2 %vm488_vm0, %v5606_v46  ;;  %v10096_v46 = vld [vmem:[#allocation91_spill] sm:$0xff] }
 0x604   : > { %v4730_v51 = vpop.f32.mrf.mxu2 }
 0x605   : > { %v9546_v44 = vadd.f32 %v4730_v51, %v4489_v48  ;;  %v5463_v61 = vpop.f32.mrf.mxu1  ;;  %v5286_v48 = vadd.f32 %v10096_v46, %v9340_v19  ;;  %v9569_v51 = vpop.f32.mrf.mxu0  ;;  %v10097_v19 = vld [vmem:[#allocation51_spill] sm:$0xff] }
 0x606   : > { %v5559_v53 = vadd.f32 %v5463_v61, %v5284_v9 }
 0x608   : > { %6724 = vmatmul.msk.f32.gmra.mxu1 %vm488_vm0, %v5332_v45 }
 0x609   : > { %6757 = vmatmul.msk.f32.gmra.mxu2 %vm488_vm0, %v5607_v8 }
 0x60c   : > { %v5738_v29 = vpop.f32.mrf.mxu2 }
 0x60d   : > { %v5834_v12 = vadd.f32 %v5738_v29, %v5559_v53  ;;  %v5466_v50 = vpop.f32.mrf.mxu1  ;;  %v5335_v29 = vld [vmem:[#allocation3 + $0x170] sm:$0xff] }
 0x60e   : > { %v5560_v4 = vadd.f32 %v5466_v50, %v5285_v47  ;;  %v5287_v50 = vadd.f32 %v10097_v19, %v9349_v25  ;;  %v10098_v25 = vld [vmem:[#allocation77_spill] sm:$0xff] }
 0x60f   : > { %v5870_v0 = vadd.f32 %v9555_v10, %v5834_v12  ;;  %v5610_v12 = vld [vmem:[#allocation3 + $0x171] sm:$0xff] }
 0x610   : > { %6725 = vmatmul.msk.f32.gmra.mxu1 %vm488_vm0, %v5333_v27 }
 0x611   : > { %6758 = vmatmul.msk.f32.gmra.mxu2 %vm488_vm0, %v5608_v34  ;;  %v5902_v23 = vmax.f32 %v5870_v0, 0.0  ;;  %v9578_v34 = vpop.f32.mrf.mxu0 }
 0x613   : > { %5934 = vxpose.xlu0.b32.start [1/16] (narrow) %v5902_v23, 8 }
 0x614   : > { %v5741_v17 = vpop.f32.mrf.mxu2 }
 0x615   : > { %v5835_v16 = vadd.f32 %v5741_v17, %v5560_v4  ;;  %v5469_v57 = vpop.f32.mrf.mxu1  ;;  %v9581_v17 = vpop.f32.mrf.mxu3 }
 0x616   : > { %v5561_v61 = vadd.f32 %v5469_v57, %v5286_v48  ;;  %v5611_v57 = vld [vmem:[#allocation3 + $0x189] sm:$0xff] }
 0x617   : > { %v5871_v60 = vadd.f32 %v9555_v10, %v5835_v16  ;;  %v5336_v16 = vld [vmem:[#allocation3 + $0x188] sm:$0xff] }
 0x618   : > { %6726 = vmatmul.msk.f32.gmra.mxu1 %vm488_vm0, %v5334_v11 }
 0x619   : > { %6759 = vmatmul.msk.f32.gmra.mxu2 %vm488_vm0, %v5609_v55  ;;  %v5903_v30 = vmax.f32 %v5871_v60, 0.0  ;;  %v5288_v60 = vadd.f32 %v10098_v25, %v9358_v37 }
 0x61b   : > { %5935 = vxpose.xlu0.b32.cont [2/16] (narrow) %v5903_v30, 8  ;;  %v9587_v30 = vpop.f32.mrf.mxu0 }
 0x61c   : > { %v5744_v45 = vpop.f32.mrf.mxu2 }
 0x61d   : > { %v5836_v8 = vadd.f32 %v5744_v45, %v5561_v61  ;;  %v5472_v9 = vpop.f32.mrf.mxu1 }
 0x61e   : > { %v5562_v27 = vadd.f32 %v5472_v9, %v5287_v50  ;;  %v5612_v9 = vld [vmem:[#allocation3 + $0x191] sm:$0xff] }
 0x61f   : > { %v5872_v53 = vadd.f32 %v9555_v10, %v5836_v8  ;;  %v5337_v8 = vld [vmem:[#allocation3 + $0x190] sm:$0xff] }
 0x620   : > { %6727 = vmatmul.msk.f32.gmra.mxu1 %vm488_vm0, %v5335_v29 }
 0x621   : > { %6760 = vmatmul.msk.f32.gmra.mxu2 %vm488_vm0, %v5610_v12  ;;  %v5904_v0 = vmax.f32 %v5872_v53, 0.0  ;;  %v10099_v53 = vld [vmem:[#allocation35_spill] sm:$0xff]  ;;  %v9594_v12 = vpop.f32.mrf.mxu3 }
 0x622   : > { %v5289_v29 = vadd.f32 %v10099_v53, %v9367_v42  ;;  %v5290_v42 = vadd.f32 %v9416_v18, %v9376_v62  ;;  %v5016_v53 = vadd.f32 %v9562_v31, %v9385_v15  ;;  %v5017_v31 = vadd.f32 %v9571_v5, %v9396_v36 }
 0x623   : > { %5936 = vxpose.xlu0.b32.cont [3/16] (narrow) %v5904_v0, 8  ;;  %v5018_v36 = vadd.f32 %v9581_v17, %v9405_v59  ;;  %v5019_v59 = vadd.f32 %v9594_v12, %v9414_v3 }
 0x624   : > { %v5747_v24 = vpop.f32.mrf.mxu2 }
 0x625   : > { %v5837_v47 = vadd.f32 %v5747_v24, %v5562_v27  ;;  %v5475_v23 = vpop.f32.mrf.mxu1 }
 0x626   : > { %v5563_v55 = vadd.f32 %v5475_v23, %v5288_v60  ;;  %v5338_v23 = vld [vmem:[#allocation3 + $0x1a8] sm:$0xff] }
 0x627   : > { %v5873_v4 = vadd.f32 %v9555_v10, %v5837_v47  ;;  %v9597_v47 = vpop.f32.mrf.mxu0 }
 0x628   : > { %6728 = vmatmul.msk.f32.gmra.mxu1 %vm488_vm0, %v5336_v16 }
 0x629   : > { %6761 = vmatmul.msk.f32.gmra.mxu2 %vm488_vm0, %v5611_v57  ;;  %v5905_v11 = vmax.f32 %v5873_v4, 0.0  ;;  %v5613_v4 = vld [vmem:[#allocation3 + $0x1a9] sm:$0xff]  ;;  %v9603_v25 = vpop.f32.mrf.mxu3 }
 0x62a   : > { %v5020_v3 = vadd.f32 %v9603_v25, %v9426_v7 }
 0x62b   : > { %5937 = vxpose.xlu0.b32.cont [4/16] (narrow) %v5905_v11, 8 }
 0x62c   : > { %v5750_v46 = vpop.f32.mrf.mxu2 }
 0x62d   : > { %v5838_v48 = vadd.f32 %v5750_v46, %v5563_v55  ;;  %v5478_v61 = vpop.f32.mrf.mxu1 }
 0x62e   : > { %v5564_v19 = vadd.f32 %v5478_v61, %v5289_v29  ;;  %v5614_v61 = vld [vmem:[#allocation3 + $0x1b1] sm:$0xff] }
 0x62f   : > { %v5874_v45 = vadd.f32 %v9555_v10, %v5838_v48  ;;  %v5339_v48 = vld [vmem:[#allocation3 + $0x1b0] sm:$0xff]  ;;  %v9610_v18 = vpop.f32.mrf.mxu0 }
 0x630   : > { %6729 = vmatmul.msk.f32.gmra.mxu1 %vm488_vm0, %v5337_v8 }
 0x631   : > { %6762 = vmatmul.msk.f32.gmra.mxu2 %vm488_vm0, %v5612_v9  ;;  %v5906_v37 = vmax.f32 %v5874_v45, 0.0  ;;  %v5291_v45 = vadd.f32 %v9434_v14, %v9387_v28  ;;  %v5340_v28 = vld [vmem:[#allocation3 + $0x1c8] sm:$0xff] }
 0x632   : > { %v5615_v14 = vld [vmem:[#allocation3 + $0x1c9] sm:$0xff] }
 0x633   : > { %5938 = vxpose.xlu0.b32.cont [5/16] (narrow) %v5906_v37, 8  ;;  %v9614_v37 = vpop.f32.mrf.mxu3 }
 0x634   : > { %v5753_v50 = vpop.f32.mrf.mxu2  ;;  %v5021_v7 = vadd.f32 %v9614_v37, %v9438_v1 }
 0x635   : > { %v5839_v0 = vadd.f32 %v5753_v50, %v5564_v19  ;;  %v5481_v27 = vpop.f32.mrf.mxu1 }
 0x636   : > { %v5565_v57 = vadd.f32 %v5481_v27, %v5290_v42 }
 0x637   : > { %v5875_v24 = vadd.f32 %v9555_v10, %v5839_v0  ;;  %v5292_v0 = vadd.f32 %v9569_v51, %v5016_v53  ;;  %v5341_v51 = vld [vmem:[#allocation3 + $0x1d0] sm:$0xff] }
 0x638   : > { %6730 = vmatmul.msk.f32.gmra.mxu1 %vm488_vm0, %v5338_v23  ;;  %v9620_v23 = vpop.f32.mrf.mxu0 }
 0x639   : > { %6763 = vmatmul.msk.f32.gmra.mxu2 %vm488_vm0, %v5613_v4  ;;  %v5907_v16 = vmax.f32 %v5875_v24, 0.0 }
 0x63b   : > { %5939 = vxpose.xlu0.b32.cont [6/16] (narrow) %v5907_v16, 8 }
 0x63c   : > { %v5756_v60 = vpop.f32.mrf.mxu2 }
 0x63d   : > { %v5840_v11 = vadd.f32 %v5756_v60, %v5565_v57  ;;  %v5484_v55 = vpop.f32.mrf.mxu1  ;;  %v9625_v57 = vpop.f32.mrf.mxu3  ;;  %v5616_v60 = vld [vmem:[#allocation3 + $0x1d1] sm:$0xff] }
 0x63e   : > { %v5566_v8 = vadd.f32 %v5484_v55, %v5291_v45  ;;  %v5022_v1 = vadd.f32 %v9625_v57, %v9449_v38 }
 0x63f   : > { %v5876_v46 = vadd.f32 %v9555_v10, %v5840_v11  ;;  %v5293_v11 = vadd.f32 %v9578_v34, %v5017_v31  ;;  %v5294_v34 = vadd.f32 %v9587_v30, %v5018_v36  ;;  %v5295_v30 = vadd.f32 %v9597_v47, %v5019_v59 }
 0x640   : > { %6731 = vmatmul.msk.f32.gmra.mxu1 %vm488_vm0, %v5339_v48 }
 0x641   : > { %6764 = vmatmul.msk.f32.gmra.mxu2 %vm488_vm0, %v5614_v61  ;;  %v5908_v62 = vmax.f32 %v5876_v46, 0.0  ;;  %v5230_v61 = vpop.f32.mrf.mxu0 }
 0x643   : > { %5940 = vxpose.xlu0.b32.cont [7/16] (narrow) %v5908_v62, 8 }
 0x644   : > { %v5759_v9 = vpop.f32.mrf.mxu2 }
 0x645   : > { %v5841_v29 = vadd.f32 %v5759_v9, %v5566_v8  ;;  %v5487_v19 = vpop.f32.mrf.mxu1  ;;  %v5342_v8 = vld [vmem:[#allocation3 + $0x1e8] sm:$0xff] }
 0x646   : > { %v5567_v24 = vadd.f32 %v5487_v19, %v5292_v0  ;;  %v5617_v9 = vld [vmem:[#allocation3 + $0x1e9] sm:$0xff] }
 0x647   : > { %v5877_v50 = vadd.f32 %v9555_v10, %v5841_v29  ;;  %v4957_v29 = vpop.f32.mrf.mxu3 }
 0x648   : > { %6732 = vmatmul.msk.f32.gmra.mxu1 %vm488_vm0, %v5340_v28  ;;  %v5023_v59 = vadd.f32 %v4957_v29, %v9462_v39 }
 0x649   : > { %6765 = vmatmul.msk.f32.gmra.mxu2 %vm488_vm0, %v5615_v14  ;;  %v5909_v27 = vmax.f32 %v5877_v50, 0.0  ;;  %v5233_v0 = vpop.f32.mrf.mxu0 }
 0x64b   : > { %5941 = vxpose.xlu0.b32.cont [8/16] (narrow) %v5909_v27, 8  ;;  %v5343_v27 = vld [vmem:[#allocation3 + $0x1f0] sm:$0xff] }
 0x64c   : > { %v5762_v15 = vpop.f32.mrf.mxu2 }
 0x64d   : > { %v5842_v4 = vadd.f32 %v5762_v15, %v5567_v24  ;;  %v5490_v42 = vpop.f32.mrf.mxu1  ;;  %v5618_v24 = vld [vmem:[#allocation3 + $0x1f1] sm:$0xff] }
 0x64e   : > { %v5568_v46 = vadd.f32 %v5490_v42, %v5293_v11 }
 0x64f   : > { %v5878_v16 = vadd.f32 %v9555_v10, %v5842_v4  ;;  %v4960_v4 = vpop.f32.mrf.mxu3 }
 0x650   : > { %6733 = vmatmul.msk.f32.gmra.mxu1 %vm488_vm0, %v5341_v51 }
 0x651   : > { %6766 = vmatmul.msk.f32.gmra.mxu2 %vm488_vm0, %v5616_v60  ;;  %v5910_v55 = vmax.f32 %v5878_v16, 0.0  ;;  %v5296_v60 = vadd.f32 %v9610_v18, %v5020_v3  ;;  %v5236_v11 = vpop.f32.mrf.mxu0  ;;  %v5297_v18 = vadd.f32 %v9620_v23, %v5021_v7 }
 0x653   : > { %5942 = vxpose.xlu0.b32.cont [9/16] (narrow) %v5910_v55, 8 }
 0x654   : > { %v5765_v48 = vpop.f32.mrf.mxu2 }
 0x655   : > { %v5843_v5 = vadd.f32 %v5765_v48, %v5568_v46  ;;  %v5493_v45 = vpop.f32.mrf.mxu1 }
 0x656   : > { %v5569_v19 = vadd.f32 %v5493_v45, %v5294_v34  ;;  %v5621_v34 = vld [vmem:[#allocation3 + $0x229] sm:$0xff] }
 0x657   : > { %v5879_v62 = vadd.f32 %v9555_v10, %v5843_v5  ;;  %v4963_v48 = vpop.f32.mrf.mxu3 }
 0x658   : > { %6734 = vmatmul.msk.f32.gmra.mxu1 %vm488_vm0, %v5342_v8 }
 0x659   : > { %6767 = vmatmul.msk.f32.gmra.mxu2 %vm488_vm0, %v5617_v9  ;;  %v5911_v53 = vmax.f32 %v5879_v62, 0.0  ;;  %v5239_v45 = vpop.f32.mrf.mxu0  ;;  %v5346_v9 = vld [vmem:[#allocation3 + $0x228] sm:$0xff] }
 0x65b   : > { %5943 = vxpose.xlu0.b32.cont [10/16] (narrow) %v5911_v53, 8 }
 0x65c   : > { %v5768_v50 = vpop.f32.mrf.mxu2 }
 0x65d   : > { %v5844_v17 = vadd.f32 %v5768_v50, %v5569_v19  ;;  %v5496_v28 = vpop.f32.mrf.mxu1  ;;  %v5298_v19 = vadd.f32 %v5230_v61, %v5022_v1 }
 0x65e   : > { %v5570_v31 = vadd.f32 %v5496_v28, %v5295_v30  ;;  %v5347_v28 = vld [vmem:[#allocation3 + $0x230] sm:$0xff] }
 0x65f   : > { %v5880_v14 = vadd.f32 %v9555_v10, %v5844_v17  ;;  %v4966_v53 = vpop.f32.mrf.mxu3 }
 0x660   : > { %6735 = vmatmul.msk.f32.gmra.mxu1 %vm488_vm0, %v5343_v27 }
 0x661   : > { %6768 = vmatmul.msk.f32.gmra.mxu2 %vm488_vm0, %v5618_v24  ;;  %v5912_v15 = vmax.f32 %v5880_v14, 0.0  ;;  %v5242_v38 = vpop.f32.mrf.mxu0  ;;  %v5622_v14 = vld [vmem:[#allocation3 + $0x231] sm:$0xff]  ;;  %v5299_v24 = vadd.f32 %v5233_v0, %v5023_v59 }
 0x663   : > { %5944 = vxpose.xlu0.b32.cont [11/16] (narrow) %v5912_v15, 8 }
 0x664   : > { %v5771_v42 = vpop.f32.mrf.mxu2 }
 0x665   : > { %v5845_v12 = vadd.f32 %v5771_v42, %v5570_v31  ;;  %v5499_v16 = vpop.f32.mrf.mxu1  ;;  %v5024_v42 = vadd.f32 %v4960_v4, %v9471_v33 }
 0x666   : > { %v5571_v55 = vadd.f32 %v5499_v16, %v5296_v60 }
 0x667   : > { %v5881_v51 = vadd.f32 %v9555_v10, %v5845_v12  ;;  %v4969_v30 = vpop.f32.mrf.mxu3  ;;  %v5300_v16 = vadd.f32 %v5236_v11, %v5024_v42 }
 0x668   : > { %6736 = vmatmul.msk.f32.gmra.mxu1 %vm488_vm0, %v9440_v41 }
 0x669   : > { %6769 = vmatmul.msk.f32.gmra.mxu2 %vm488_vm0, %v9457_v58  ;;  %v5913_v47 = vmax.f32 %v5881_v51, 0.0  ;;  %v5245_v12 = vpop.f32.mrf.mxu0 }
 0x66b   : > { %5945 = vxpose.xlu0.b32.cont [12/16] (narrow) %v5913_v47, 8 }
 0x66c   : > { %v5774_v46 = vpop.f32.mrf.mxu2 }
 0x66d   : > { %v5846_v25 = vadd.f32 %v5774_v46, %v5571_v55  ;;  %v5502_v36 = vpop.f32.mrf.mxu1  ;;  %v5025_v55 = vadd.f32 %v4963_v48, %v9476_v21 }
 0x66e   : > { %v5572_v58 = vadd.f32 %v5502_v36, %v5297_v18 }
 0x66f   : > { %v5882_v5 = vadd.f32 %v9555_v10, %v5846_v25  ;;  %v4972_v0 = vpop.f32.mrf.mxu3  ;;  %v5301_v36 = vadd.f32 %v5239_v45, %v5025_v55  ;;  %v5027_v45 = vadd.f32 %v4969_v30, %v9486_v2 }
 0x670   : > { %6737 = vmatmul.msk.f32.gmra.mxu1 %vm488_vm0, %v9451_v56  ;;  %v5028_v59 = vadd.f32 %v4972_v0, %v9491_v26 }
 0x671   : > { %6770 = vmatmul.msk.f32.gmra.mxu2 %vm488_vm0, %v9464_v22  ;;  %v5914_v41 = vmax.f32 %v5882_v5, 0.0  ;;  %v5248_v33 = vpop.f32.mrf.mxu0 }
 0x673   : > { %5946 = vxpose.xlu0.b32.cont [13/16] (narrow) %v5914_v41, 8  ;;  %v5026_v41 = vadd.f32 %v4966_v53, %v9481_v35 }
 0x674   : > { %v5777_v62 = vpop.f32.mrf.mxu2 }
 0x675   : > { %v5847_v37 = vadd.f32 %v5777_v62, %v5572_v58  ;;  %v5505_v8 = vpop.f32.mrf.mxu1 }
 0x676   : > { %v5573_v22 = vadd.f32 %v5505_v8, %v5298_v19 }
 0x677   : > { %v5883_v23 = vadd.f32 %v9555_v10, %v5847_v37  ;;  %v4975_v58 = vpop.f32.mrf.mxu3  ;;  %v5302_v37 = vadd.f32 %v5242_v38, %v5026_v41 }
 0x678   : > { %6738 = vmatmul.msk.f32.gmra.mxu1 %vm488_vm0, %v5346_v9  ;;  %v5029_v30 = vadd.f32 %v4975_v58, %v9496_v6 }
 0x679   : > { %6771 = vmatmul.msk.f32.gmra.mxu2 %vm488_vm0, %v5621_v34  ;;  %v5915_v56 = vmax.f32 %v5883_v23, 0.0  ;;  %v5251_v48 = vpop.f32.mrf.mxu0 }
 0x67b   : > { %5947 = vxpose.xlu0.b32.cont [14/16] (narrow) %v5915_v56, 8 }
 0x67c   : > { %v5780_v50 = vpop.f32.mrf.mxu2 }
 0x67d   : > { %v5848_v17 = vadd.f32 %v5780_v50, %v5573_v22  ;;  %v5508_v57 = vpop.f32.mrf.mxu1  ;;  %v5303_v22 = vadd.f32 %v5245_v12, %v5027_v45 }
 0x67e   : > { %v5574_v15 = vadd.f32 %v5508_v57, %v5299_v24 }
 0x67f   : > { %v5884_v27 = vadd.f32 %v9555_v10, %v5848_v17  ;;  %v4978_v56 = vpop.f32.mrf.mxu3 }
 0x680   : > { %6739 = vmatmul.msk.f32.gmra.mxu1 %vm488_vm0, %v5347_v28 }
 0x681   : > { %6772 = vmatmul.msk.f32.gmra.mxu2 %vm488_vm0, %v5622_v14  ;;  %v5916_v61 = vmax.f32 %v5884_v27, 0.0  ;;  %v5254_v38 = vpop.f32.mrf.mxu0  ;;  %v5304_v14 = vadd.f32 %v5248_v33, %v5028_v59 }
 0x683   : > { %5948 = vxpose.xlu0.b32.cont [15/16] (narrow) %v5916_v61, 8 }
 0x684   : > { %v5783_v31 = vpop.f32.mrf.mxu2 }
 0x685   : > { %v5849_v39 = vadd.f32 %v5783_v31, %v5574_v15  ;;  %v5511_v29 = vpop.f32.mrf.mxu1 }
 0x686   : > { %v5575_v60 = vadd.f32 %v5511_v29, %v5300_v16  ;;  %v5305_v29 = vadd.f32 %v5251_v48, %v5029_v30 }
 0x687   : > { %v5885_v3 = vadd.f32 %v9555_v10, %v5849_v39  ;;  %v4981_v2 = vpop.f32.mrf.mxu3 }
 0x689   : > { %v5917_v51 = vmax.f32 %v5885_v3, 0.0  ;;  %v5257_v39 = vpop.f32.mrf.mxu0 }
 0x68b   : > { %5949 = vxpose.xlu0.b32.end [16/16] (narrow) %v5917_v51, 8  ;;  %v5030_v51 = vadd.f32 %v4978_v56, %v9501_v13 }
 0x68c   : > { %v5786_v47 = vpop.f32.mrf.mxu2 }
 0x68d   : > { %v5850_v46 = vadd.f32 %v5786_v47, %v5575_v60  ;;  %v5514_v7 = vpop.f32.mrf.mxu1  ;;  %v5306_v55 = vadd.f32 %v5254_v38, %v5030_v51 }
 0x68e   : > { %v5576_v4 = vadd.f32 %v5514_v7, %v5301_v36  ;;  %v5031_v36 = vadd.f32 %v4981_v2, %v9506_v54 }
 0x68f   : > { %v5886_v25 = vadd.f32 %v9555_v10, %v5850_v46  ;;  %v4984_v12 = vpop.f32.mrf.mxu3 }
 0x690   : > { %v5307_v41 = vadd.f32 %v5257_v39, %v5031_v36 }
 0x691   : > { %v5918_v5 = vmax.f32 %v5886_v25, 0.0  ;;  %v5260_v6 = vpop.f32.mrf.mxu0 }
 0x693   : > { %5966 = vxpose.xlu1.b32.start [1/16] (narrow) %v5918_v5, 8 }
 0x694   : > { %v5789_v18 = vpop.f32.mrf.mxu2 }
 0x695   : > { %v5851_v11 = vadd.f32 %v5789_v18, %v5576_v4  ;;  %v5517_v62 = vpop.f32.mrf.mxu1 }
 0x696   : > { %v5577_v21 = vadd.f32 %v5517_v62, %v5302_v37 }
 0x697   : > { %v5887_v1 = vadd.f32 %v9555_v10, %v5851_v11  ;;  %v4987_v33 = vpop.f32.mrf.mxu3 }
 0x699   : > { %v5919_v8 = vmax.f32 %v5887_v1, 0.0  ;;  %v5263_v58 = vpop.f32.mrf.mxu0  ;;  %v5032_v1 = vadd.f32 %v4984_v12, %v9511_v52 }
 0x69b   : > { %5967 = vxpose.xlu1.b32.cont [2/16] (narrow) %v5919_v8, 8 }
 0x69c   : > { %v5792_v9 = vpop.f32.mrf.mxu2 }
 0x69d   : > { %v5852_v34 = vadd.f32 %v5792_v9, %v5577_v21  ;;  %v5520_v23 = vpop.f32.mrf.mxu1  ;;  %v5308_v9 = vadd.f32 %v5260_v6, %v5032_v1 }
 0x69e   : > { %v5578_v53 = vadd.f32 %v5520_v23, %v5303_v22  ;;  %v5033_v23 = vadd.f32 %v4987_v33, %v9516_v63 }
 0x69f   : > { %v5888_v19 = vadd.f32 %v9555_v10, %v5852_v34  ;;  %v4990_v48 = vpop.f32.mrf.mxu3 }
 0x6a0   : > { %v5034_v38 = vadd.f32 %v4990_v48, %v9521_v40 }
 0x6a1   : > { %v5920_v35 = vmax.f32 %v5888_v19, 0.0  ;;  %v5266_v56 = vpop.f32.mrf.mxu0 }
 0x6a2   : > { %v5310_v2 = vadd.f32 %v5266_v56, %v5034_v38 }
 0x6a3   : > { %5968 = vxpose.xlu1.b32.cont [3/16] (narrow) %v5920_v35, 8 }
 0x6a4   : > { %v5795_v50 = vpop.f32.mrf.mxu2 }
 0x6a5   : > { %v5853_v17 = vadd.f32 %v5795_v50, %v5578_v53  ;;  %v5523_v57 = vpop.f32.mrf.mxu1  ;;  %v5309_v53 = vadd.f32 %v5263_v58, %v5033_v23 }
 0x6a6   : > { %v5579_v24 = vadd.f32 %v5523_v57, %v5304_v14 }
 0x6a7   : > { %v5889_v28 = vadd.f32 %v9555_v10, %v5853_v17  ;;  %v4993_v52 = vpop.f32.mrf.mxu3 }
 0x6a9   : > { %v5921_v27 = vmax.f32 %v5889_v28, 0.0 }
 0x6ab   : > { %5969 = vxpose.xlu1.b32.cont [4/16] (narrow) %v5921_v27, 8  ;;  %v5269_v27 = vpop.f32.mrf.mxu0 }
 0x6ac   : > { %v5798_v61 = vpop.f32.mrf.mxu2 }
 0x6ad   : > { %v5854_v15 = vadd.f32 %v5798_v61, %v5579_v24  ;;  %v5526_v31 = vpop.f32.mrf.mxu1 }
 0x6ae   : > { %v5580_v3 = vadd.f32 %v5526_v31, %v5305_v29 }
 0x6af   : > { %v5890_v42 = vadd.f32 %v9555_v10, %v5854_v15  ;;  %v4996_v61 = vpop.f32.mrf.mxu3  ;;  %v5035_v15 = vadd.f32 %v4993_v52, %v9526_v32 }
 0x6b1   : > { %v5922_v26 = vmax.f32 %v5890_v42, 0.0  ;;  %v5311_v29 = vadd.f32 %v5269_v27, %v5035_v15 }
 0x6b3   : > { %5970 = vxpose.xlu1.b32.cont [5/16] (narrow) %v5922_v26, 8  ;;  %v5272_v40 = vpop.f32.mrf.mxu0 }
 0x6b4   : > { %v5801_v16 = vpop.f32.mrf.mxu2 }
 0x6b5   : > { %v5855_v60 = vadd.f32 %v5801_v16, %v5580_v3  ;;  %v5529_v0 = vpop.f32.mrf.mxu1  ;;  %v5036_v16 = vadd.f32 %v4996_v61, %v9531_v43 }
 0x6b6   : > { %v5581_v7 = vadd.f32 %v5529_v0, %v5306_v55 }
 0x6b7   : > { %v5891_v47 = vadd.f32 %v9555_v10, %v5855_v60  ;;  %v4999_v60 = vpop.f32.mrf.mxu3  ;;  %v5312_v55 = vadd.f32 %v5272_v40, %v5036_v16 }
 0x6b9   : > { %v5923_v46 = vmax.f32 %v5891_v47, 0.0 }
 0x6bb   : > { %5971 = vxpose.xlu1.b32.cont [6/16] (narrow) %v5923_v46, 8  ;;  %v5275_v6 = vpop.f32.mrf.mxu0 }
 0x6bc   : > { %v5804_v25 = vpop.f32.mrf.mxu2 }
 0x6bd   : > { %v5856_v5 = vadd.f32 %v5804_v25, %v5581_v7  ;;  %v5532_v4 = vpop.f32.mrf.mxu1  ;;  %v5037_v25 = vadd.f32 %v4999_v60, %v9536_v20 }
 0x6be   : > { %v5582_v13 = vadd.f32 %v5532_v4, %v5307_v41 }
 0x6bf   : > { %v5892_v18 = vadd.f32 %v9555_v10, %v5856_v5  ;;  %v5002_v4 = vpop.f32.mrf.mxu3 }
 0x6c0   : > { %v5038_v58 = vadd.f32 %v5002_v4, %v9541_v49 }
 0x6c1   : > { %v5924_v11 = vmax.f32 %v5892_v18, 0.0  ;;  %v5313_v18 = vadd.f32 %v5275_v6, %v5037_v25 }
 0x6c3   : > { %5972 = vxpose.xlu1.b32.cont [7/16] (narrow) %v5924_v11, 8  ;;  %v5278_v11 = vpop.f32.mrf.mxu0 }
 0x6c4   : > { %v5807_v62 = vpop.f32.mrf.mxu2 }
 0x6c5   : > { %v5857_v37 = vadd.f32 %v5807_v62, %v5582_v13  ;;  %v5535_v8 = vpop.f32.mrf.mxu1 }
 0x6c6   : > { %v5583_v45 = vadd.f32 %v5535_v8, %v5308_v9  ;;  %v5314_v8 = vadd.f32 %v5278_v11, %v5038_v58 }
 0x6c7   : > { %v5893_v21 = vadd.f32 %v9555_v10, %v5857_v37  ;;  %v5005_v20 = vpop.f32.mrf.mxu3 }
 0x6c9   : > { %v5925_v54 = vmax.f32 %v5893_v21, 0.0 }
 0x6cb   : > { %5973 = vxpose.xlu1.b32.cont [8/16] (narrow) %v5925_v54, 8  ;;  %v5039_v54 = vadd.f32 %v5005_v20, %v9546_v44  ;;  %v5950_v44 = vpop.trf.xlu0 }
 0x6cc   : > { %v5810_v34 = vpop.f32.mrf.mxu2  ;;  %5998 = vst [vmem:[%s453_s10] sm:$0xff] %v5950_v44 }
 0x6cd   : > { %v5858_v19 = vadd.f32 %v5810_v34, %v5583_v45  ;;  %v5538_v22 = vpop.f32.mrf.mxu1  ;;  %v5281_v34 = vpop.f32.mrf.mxu0 }
 0x6ce   : > { %v5584_v59 = vadd.f32 %v5538_v22, %v5309_v53  ;;  %v5315_v56 = vadd.f32 %v5281_v34, %v5039_v54 }
 0x6cf   : > { %v5894_v35 = vadd.f32 %v9555_v10, %v5858_v19 }
 0x6d1   : > { %v5926_v50 = vmax.f32 %v5894_v35, 0.0 }
 0x6d3   : > { %5974 = vxpose.xlu1.b32.cont [9/16] (narrow) %v5926_v50, 8 }
 0x6d4   : > { %v5813_v17 = vpop.f32.mrf.mxu2 }
 0x6d5   : > { %v5859_v57 = vadd.f32 %v5813_v17, %v5584_v59  ;;  %v5541_v28 = vpop.f32.mrf.mxu1 }
 0x6d6   : > { %v5585_v24 = vadd.f32 %v5541_v28, %v5310_v2 }
 0x6d7   : > { %v5895_v14 = vadd.f32 %v9555_v10, %v5859_v57 }
 0x6d9   : > { %v5927_v63 = vmax.f32 %v5895_v14, 0.0 }
 0x6db   : > { %5975 = vxpose.xlu1.b32.cont [10/16] (narrow) %v5927_v63, 8 }
 0x6dc   : > { %v5816_v30 = vpop.f32.mrf.mxu2 }
 0x6dd   : > { %v5860_v31 = vadd.f32 %v5816_v30, %v5585_v24  ;;  %v5544_v42 = vpop.f32.mrf.mxu1 }
 0x6de   : > { %v5586_v3 = vadd.f32 %v5544_v42, %v5311_v29 }
 0x6df   : > { %v5896_v39 = vadd.f32 %v9555_v10, %v5860_v31 }
 0x6e1   : > { %v5928_v26 = vmax.f32 %v5896_v39, 0.0 }
 0x6e3   : > { %5976 = vxpose.xlu1.b32.cont [11/16] (narrow) %v5928_v26, 8 }
 0x6e4   : > { %v5819_v12 = vpop.f32.mrf.mxu2 }
 0x6e5   : > { %v5861_v51 = vadd.f32 %v5819_v12, %v5586_v3  ;;  %v5547_v0 = vpop.f32.mrf.mxu1 }
 0x6e6   : > { %v5587_v32 = vadd.f32 %v5547_v0, %v5312_v55 }
 0x6e7   : > { %v5897_v47 = vadd.f32 %v9555_v10, %v5861_v51 }
 0x6e9   : > { %v5929_v46 = vmax.f32 %v5897_v47, 0.0 }
 0x6eb   : > { %5977 = vxpose.xlu1.b32.cont [12/16] (narrow) %v5929_v46, 8 }
 0x6ec   : > { %v5822_v7 = vpop.f32.mrf.mxu2 }
 0x6ed   : > { %v5862_v36 = vadd.f32 %v5822_v7, %v5587_v32  ;;  %v5550_v5 = vpop.f32.mrf.mxu1 }
 0x6ee   : > { %v5588_v41 = vadd.f32 %v5550_v5, %v5313_v18 }
 0x6ef   : > { %v5898_v33 = vadd.f32 %v9555_v10, %v5862_v36 }
 0x6f1   : > { %v5930_v43 = vmax.f32 %v5898_v33, 0.0 }
 0x6f3   : > { %5978 = vxpose.xlu1.b32.cont [13/16] (narrow) %v5930_v43, 8 }
 0x6f4   : > { %v5825_v13 = vpop.f32.mrf.mxu2 }
 0x6f5   : > { %v5863_v62 = vadd.f32 %v5825_v13, %v5588_v41  ;;  %v5553_v1 = vpop.f32.mrf.mxu1 }
 0x6f6   : > { %v5589_v48 = vadd.f32 %v5553_v1, %v5314_v8 }
 0x6f7   : > { %v5899_v37 = vadd.f32 %v9555_v10, %v5863_v62 }
 0x6f9   : > { %v5931_v21 = vmax.f32 %v5899_v37, 0.0 }
 0x6fb   : > { %5979 = vxpose.xlu1.b32.cont [14/16] (narrow) %v5931_v21, 8 }
 0x6fc   : > { %v5828_v9 = vpop.f32.mrf.mxu2 }
 0x6fd   : > { %v5864_v45 = vadd.f32 %v5828_v9, %v5589_v48  ;;  %v5556_v19 = vpop.f32.mrf.mxu1 }
 0x6fe   : > { %v5590_v22 = vadd.f32 %v5556_v19, %v5315_v56 }
 0x6ff   : > { %v5900_v23 = vadd.f32 %v9555_v10, %v5864_v45 }
 0x701   : > { %v5932_v49 = vmax.f32 %v5900_v23, 0.0 }
 0x703   : > { %5980 = vxpose.xlu1.b32.cont [15/16] (narrow) %v5932_v49, 8 }
 0x704   : > { %v5831_v35 = vpop.f32.mrf.mxu2 }
 0x705   : > { %v5865_v53 = vadd.f32 %v5831_v35, %v5590_v22 }
 0x707   : > { %v5901_v50 = vadd.f32 %v9555_v10, %v5865_v53 }
 0x709   : > { %v5933_v52 = vmax.f32 %v5901_v50, 0.0 }
 0x70b   : > { %5981 = vxpose.xlu1.b32.end [16/16] (narrow) %v5933_v52, 8 }
 0x737   : > { %v5982_v59 = vpop.trf.xlu1 }
 0x738   : > { %5999 = vst [vmem:[%s453_s10 + $0x8] sm:$0xff] %v5982_v59 }
 0x739 PF: > { %s17_s2 = sadd.s32 1, %s6880_s2   ;;  %s10100_s24 = smov %s6876_s1 }
 0x73a   : > { %p14_p5 = scmp.ge.s32.totalorder %s17_s2, 4   ;;  %s10101_s1 = smov %s10103_s25 }
 0x73c   :  { %16 = sbr.rel (!%p14_p5) target bundleno = 2 (0x2), region = 127 }

</bundles_post_ra>
